<compile_context>
chip_gen: v7x
topology: tpu7x:2x2x1
jax: 0.10.0
libtpu: 0.0.40
codegen_flags: <defaults>
</compile_context>

<pallas_src>
import functools
import math

import jax
import jax.numpy as jnp
from jax.experimental import pallas as pl
from jax.experimental.pallas import tpu as pltpu


def _rms_norm(x, gain, eps=1e-5):
    # x: (S, D) f32, gain: (1, D) f32
    ms = jnp.mean(x * x, axis=-1, keepdims=True)
    return x * jax.lax.rsqrt(ms + eps) * gain


def transformer_block_kernel(
    x_ref,                              # (S, D)  input dtype (batch dim squeezed)
    wq_ref, wk_ref, wv_ref, wo_ref,     # (D, D)  bf16
    w1_ref, w3_ref,                     # (D, F)  bf16
    w2_ref,                             # (F, D)  bf16
    g_attn_ref, g_ffn_ref,              # (1, D)  f32
    cos_ref, sin_ref,                   # (S, dh) f32 (full width; sin is sign-folded)
    out_ref,                            # (S, D)
    *, num_heads, f_tile,
):
    x = x_ref[...].astype(jnp.float32)              # residual stream in f32
    S, D = x.shape
    H = num_heads
    dh = D // H
    half = dh // 2
    scale = 1.0 / math.sqrt(dh)
    cdt = wq_ref.dtype                               # compute (MXU operand) dtype: bf16

    cos = cos_ref[...]                               # (S, dh) f32
    sin = sin_ref[...]                               # (S, dh) f32, [-sin, +sin]

    # ---------------- attention sub-block ----------------
    xn = _rms_norm(x, g_attn_ref[...].astype(jnp.float32))
    xn_c = xn.astype(cdt)

    q = jnp.dot(xn_c, wq_ref[...], preferred_element_type=jnp.float32)   # (S, D) f32
    k = jnp.dot(xn_c, wk_ref[...], preferred_element_type=jnp.float32)
    v = jnp.dot(xn_c, wv_ref[...], preferred_element_type=jnp.float32)

    def rope(t):                                     # t: (S, H, dh) f32, rotate-half
        rot = jnp.concatenate([t[..., half:], t[..., :half]], axis=-1)
        return t * cos[:, None, :] + rot * sin[:, None, :]

    qh = (rope(q.reshape(S, H, dh)) * scale).astype(cdt)   # (S, H, dh)
    kh = rope(k.reshape(S, H, dh)).astype(cdt)              # (S, H, dh)
    vh = v.reshape(S, H, dh).astype(cdt)                    # (S, H, dh)

    # batched-over-heads scores: (H, S, S), f32 accumulation on the MXU
    s = jnp.einsum("qhd,khd->hqk", qh, kh, preferred_element_type=jnp.float32)

    # causal mask (query i attends to keys j <= i)
    row = jax.lax.broadcasted_iota(jnp.int32, (S, S), 0)
    col = jax.lax.broadcasted_iota(jnp.int32, (S, S), 1)
    causal = (row >= col)[None, :, :]
    s = jnp.where(causal, s, -1e30)

    m = jnp.max(s, axis=-1, keepdims=True)
    p = jnp.exp(s - m)
    l = jnp.sum(p, axis=-1, keepdims=True)
    p = p * pl.reciprocal(l, approx=True)            # EUP reciprocal (free slot)

    ctx = jnp.einsum("hqk,khd->qhd", p.astype(cdt), vh,
                     preferred_element_type=jnp.float32)     # (S, H, dh) f32
    ctx = ctx.reshape(S, D)

    attn_out = jnp.dot(ctx.astype(cdt), wo_ref[...],
                       preferred_element_type=jnp.float32)
    x1 = x + attn_out                                         # residual 1 (f32)

    # ---------------- SwiGLU FFN sub-block (F-tiled) ----------------
    xn2 = _rms_norm(x1, g_ffn_ref[...].astype(jnp.float32)).astype(cdt)
    F = w1_ref.shape[1]
    num_tiles = F // f_tile
    ffn_acc = jnp.zeros((S, D), jnp.float32)
    for t in range(num_tiles):                       # static starts -> zero-cost ref views
        lo, hi = t * f_tile, (t + 1) * f_tile
        a = jnp.dot(xn2, w1_ref[:, lo:hi], preferred_element_type=jnp.float32)
        b = jnp.dot(xn2, w3_ref[:, lo:hi], preferred_element_type=jnp.float32)
        hmid = (a * jax.nn.sigmoid(a)) * b           # SiLU(a) * b, f32
        ffn_acc = ffn_acc + jnp.dot(hmid.astype(cdt), w2_ref[lo:hi, :],
                                    preferred_element_type=jnp.float32)

    out_ref[...] = (x1 + ffn_acc).astype(out_ref.dtype)       # residual 2


def _build_call(kernel, B, S, D, F, dh, out_dtype, single_buffer_weights):
    def const_spec(shape):
        kwargs = {}
        if single_buffer_weights:
            # constant index_map across the grid -> one buffer is enough
            kwargs["pipeline_mode"] = pl.Buffered(1)
        return pl.BlockSpec(shape, lambda b: (0,) * len(shape), **kwargs)

    return pl.pallas_call(
        kernel,
        out_shape=jax.ShapeDtypeStruct((B, S, D), out_dtype),
        grid_spec=pltpu.PrefetchScalarGridSpec(
            num_scalar_prefetch=0,
            grid=(B,),
            in_specs=[
                pl.BlockSpec((None, S, D), lambda b: (b, 0, 0)),          # x (batch squeezed)
                const_spec((D, D)), const_spec((D, D)),                   # wq wk
                const_spec((D, D)), const_spec((D, D)),                   # wv wo
                const_spec((D, F)), const_spec((D, F)),                   # w1 w3
                const_spec((F, D)),                                       # w2
                const_spec((1, D)), const_spec((1, D)),                   # rms gains
                const_spec((S, dh)), const_spec((S, dh)),                 # cos / sin
            ],
            out_specs=pl.BlockSpec((None, S, D), lambda b: (b, 0, 0)),
        ),
        compiler_params=pltpu.CompilerParams(
            dimension_semantics=("parallel",),          # batch axis -> megacore sharding
            vmem_limit_bytes=48 * 1024 * 1024,          # safe on v5e/v6e/v7x
        ),
    )


def transformer_block(x, params, *, num_heads, theta, f_tile=512):
    """x: (B, S, D) float32.  params: dict of weights (see init_params)."""
    B, S, D = x.shape
    dh = D // num_heads
    half = dh // 2
    F = params["w1"].shape[1]
    f_tile = min(f_tile, F)
    assert F % f_tile == 0, "d_ff must be divisible by the F tile size"

    # RoPE tables (glue, plain JAX): full lane-dense width, sign-folded sin so the
    # kernel does r = t*cos + rotate_half(t)*sin_signed with one shuffle.
    pos = jnp.arange(S, dtype=jnp.float32)[:, None]                       # (S, 1)
    inv_freq = theta ** (-jnp.arange(half, dtype=jnp.float32) / half)     # (half,)
    ang = pos * inv_freq[None, :]                                         # (S, half)
    cos_h, sin_h = jnp.cos(ang), jnp.sin(ang)
    cos_full = jnp.concatenate([cos_h, cos_h], axis=-1)                   # (S, dh)
    sin_signed = jnp.concatenate([-sin_h, sin_h], axis=-1)                # (S, dh)

    cdt = jnp.bfloat16
    wq, wk, wv, wo = (params[n].astype(cdt) for n in ("wq", "wk", "wv", "wo"))
    w1, w3, w2 = (params[n].astype(cdt) for n in ("w1", "w3", "w2"))

    kernel = functools.partial(transformer_block_kernel,
                               num_heads=num_heads, f_tile=f_tile)
    args = (x, wq, wk, wv, wo, w1, w3, w2,
            params["g_attn"].astype(jnp.float32),
            params["g_ffn"].astype(jnp.float32),
            cos_full, sin_signed)

    last_err = None
    for single_buffer_weights in (True, False):
        try:
            fn = _build_call(kernel, B, S, D, F, dh, x.dtype, single_buffer_weights)
            out = fn(*args)
            return jax.block_until_ready(out)
        except Exception as e:  # fall back if 1-deep buffering is rejected
            last_err = e
    raise last_err


# ---------------- pure-JAX reference (for verification) ----------------
def reference_block(x, params, *, num_heads, theta):
    B, S, D = x.shape
    dh = D // num_heads
    half = dh // 2
    pos = jnp.arange(S, dtype=jnp.float32)[:, None]
    inv_freq = theta ** (-jnp.arange(half, dtype=jnp.float32) / half)
    ang = pos * inv_freq[None, :]
    cos, sin = jnp.cos(ang), jnp.sin(ang)

    def rms(t, g):
        return t * jax.lax.rsqrt(jnp.mean(t * t, -1, keepdims=True) + 1e-5) * g

    def rope(t):  # (B, H, S, dh)
        t1, t2 = t[..., :half], t[..., half:]
        return jnp.concatenate([t1 * cos - t2 * sin, t2 * cos + t1 * sin], -1)

    xn = rms(x, params["g_attn"])
    q = (xn @ params["wq"]).reshape(B, S, num_heads, dh).transpose(0, 2, 1, 3)
    k = (xn @ params["wk"]).reshape(B, S, num_heads, dh).transpose(0, 2, 1, 3)
    v = (xn @ params["wv"]).reshape(B, S, num_heads, dh).transpose(0, 2, 1, 3)
    q, k = rope(q), rope(k)
    s = jnp.einsum("bhqd,bhkd->bhqk", q, k) / math.sqrt(dh)
    causal = jnp.tril(jnp.ones((S, S), bool))
    s = jnp.where(causal, s, -1e30)
    p = jax.nn.softmax(s, axis=-1)
    ctx = jnp.einsum("bhqk,bhkd->bhqd", p, v).transpose(0, 2, 1, 3).reshape(B, S, D)
    x1 = x + ctx @ params["wo"]

    xn2 = rms(x1, params["g_ffn"])
    a = xn2 @ params["w1"]
    h = (a * jax.nn.sigmoid(a)) * (xn2 @ params["w3"])
    return x1 + h @ params["w2"]


def init_params(key, d_model, d_ff):
    keys = jax.random.split(key, 7)
    sd = 1.0 / math.sqrt(d_model)
    sf = 1.0 / math.sqrt(d_ff)
    return {
        "wq": jax.random.normal(keys[0], (d_model, d_model), jnp.float32) * sd,
        "wk": jax.random.normal(keys[1], (d_model, d_model), jnp.float32) * sd,
        "wv": jax.random.normal(keys[2], (d_model, d_model), jnp.float32) * sd,
        "wo": jax.random.normal(keys[3], (d_model, d_model), jnp.float32) * sd,
        "w1": jax.random.normal(keys[4], (d_model, d_ff), jnp.float32) * sd,
        "w3": jax.random.normal(keys[5], (d_model, d_ff), jnp.float32) * sd,
        "w2": jax.random.normal(keys[6], (d_ff, d_model), jnp.float32) * sf,
        "g_attn": jnp.ones((1, d_model), jnp.float32),
        "g_ffn": jnp.ones((1, d_model), jnp.float32),
    }


if __name__ == "__main__":
    B, S, D, H, F = 2, 8, 32, 4, 64
    theta = 10000.0

    key = jax.random.PRNGKey(0)
    kx, kp = jax.random.split(key)
    x = jax.random.normal(kx, (B, S, D), jnp.float32)
    params = init_params(kp, D, F)

    out = transformer_block(x, params, num_heads=H, theta=theta)
    out = jax.block_until_ready(out)

    ref = reference_block(x, params, num_heads=H, theta=theta)
    assert out.shape == (B, S, D)
    max_err = float(jnp.max(jnp.abs(out - ref)))
    assert jnp.allclose(out, ref, atol=3e-2, rtol=3e-2), \
        f"mismatch vs JAX reference (max abs err {max_err})"

    print("KERNEL_OK")
</pallas_src>

<mosaic_0001>
module attributes {stable_mosaic.version = 11 : i64} {
  func.func @transformer_block_kernel(%arg0: i32, %arg1: memref<1x8x32xf32, #tpu.memory_space<vmem>>, %arg2: memref<32x32xbf16, #tpu.memory_space<vmem>>, %arg3: memref<32x32xbf16, #tpu.memory_space<vmem>>, %arg4: memref<32x32xbf16, #tpu.memory_space<vmem>>, %arg5: memref<32x32xbf16, #tpu.memory_space<vmem>>, %arg6: memref<32x64xbf16, #tpu.memory_space<vmem>>, %arg7: memref<32x64xbf16, #tpu.memory_space<vmem>>, %arg8: memref<64x32xbf16, #tpu.memory_space<vmem>>, %arg9: memref<1x32xf32, #tpu.memory_space<vmem>>, %arg10: memref<1x32xf32, #tpu.memory_space<vmem>>, %arg11: memref<8x8xf32, #tpu.memory_space<vmem>>, %arg12: memref<8x8xf32, #tpu.memory_space<vmem>>, %arg13: memref<1x8x32xf32, #tpu.memory_space<vmem>>) attributes {dimension_semantics = [#tpu.dimension_semantics<parallel>], iteration_bounds = array<i64: 2>, scalar_prefetch = 0 : i64, scratch_operands = 0 : i64, tpu.core_type = #tpu.core_type<tc>, window_params = [{transform_indices = @transform_0, window_bounds = array<i64: 1, 8, 32>}, {pipeline_mode = #tpu.pipeline_mode<synchronous>, transform_indices = @transform_1, window_bounds = array<i64: 32, 32>}, {pipeline_mode = #tpu.pipeline_mode<synchronous>, transform_indices = @transform_2, window_bounds = array<i64: 32, 32>}, {pipeline_mode = #tpu.pipeline_mode<synchronous>, transform_indices = @transform_3, window_bounds = array<i64: 32, 32>}, {pipeline_mode = #tpu.pipeline_mode<synchronous>, transform_indices = @transform_4, window_bounds = array<i64: 32, 32>}, {pipeline_mode = #tpu.pipeline_mode<synchronous>, transform_indices = @transform_5, window_bounds = array<i64: 32, 64>}, {pipeline_mode = #tpu.pipeline_mode<synchronous>, transform_indices = @transform_6, window_bounds = array<i64: 32, 64>}, {pipeline_mode = #tpu.pipeline_mode<synchronous>, transform_indices = @transform_7, window_bounds = array<i64: 64, 32>}, {pipeline_mode = #tpu.pipeline_mode<synchronous>, transform_indices = @transform_8, window_bounds = array<i64: 1, 32>}, {pipeline_mode = #tpu.pipeline_mode<synchronous>, transform_indices = @transform_9, window_bounds = array<i64: 1, 32>}, {pipeline_mode = #tpu.pipeline_mode<synchronous>, transform_indices = @transform_10, window_bounds = array<i64: 8, 8>}, {pipeline_mode = #tpu.pipeline_mode<synchronous>, transform_indices = @transform_11, window_bounds = array<i64: 8, 8>}, {transform_indices = @transform_12, window_bounds = array<i64: 1, 8, 32>}]} {
    %c0 = arith.constant 0 : index
    %c0_0 = arith.constant 0 : index
    %c0_1 = arith.constant 0 : index
    %0 = vector.load %arg1[%c0, %c0_0, %c0_1] : memref<1x8x32xf32, #tpu.memory_space<vmem>>, vector<1x8x32xf32>
    %1 = vector.shape_cast %0 : vector<1x8x32xf32> to vector<8x32xf32>
    %c0_2 = arith.constant 0 : index
    %c0_3 = arith.constant 0 : index
    %2 = vector.load %arg11[%c0_2, %c0_3] : memref<8x8xf32, #tpu.memory_space<vmem>>, vector<8x8xf32>
    %c0_4 = arith.constant 0 : index
    %c0_5 = arith.constant 0 : index
    %3 = vector.load %arg12[%c0_4, %c0_5] : memref<8x8xf32, #tpu.memory_space<vmem>>, vector<8x8xf32>
    %c0_6 = arith.constant 0 : index
    %c0_7 = arith.constant 0 : index
    %4 = vector.load %arg9[%c0_6, %c0_7] : memref<1x32xf32, #tpu.memory_space<vmem>>, vector<1x32xf32>
    %5 = arith.mulf %1, %1 : vector<8x32xf32>
    %cst = arith.constant dense<0.000000e+00> : vector<8xf32>
    %6 = vector.multi_reduction <add>, %5, %cst [1] : vector<8x32xf32> to vector<8xf32>
    %7 = vector.shape_cast %6 : vector<8xf32> to vector<8x1xf32>
    %cst_8 = arith.constant 3.200000e+01 : f32
    %8 = vector.broadcast %cst_8 : f32 to vector<8x1xf32>
    %9 = arith.divf %7, %8 : vector<8x1xf32>
    %cst_9 = arith.constant 9.99999974E-6 : f32
    %10 = vector.broadcast %cst_9 : f32 to vector<8x1xf32>
    %11 = arith.addf %9, %10 : vector<8x1xf32>
    %12 = math.rsqrt %11 : vector<8x1xf32>
    %13 = vector.broadcast %12 : vector<8x1xf32> to vector<8x32xf32>
    %14 = arith.mulf %1, %13 : vector<8x32xf32>
    %15 = vector.broadcast %4 : vector<1x32xf32> to vector<8x32xf32>
    %16 = arith.mulf %14, %15 : vector<8x32xf32>
    %17 = arith.truncf %16 : vector<8x32xf32> to vector<8x32xbf16>
    %c0_10 = arith.constant 0 : index
    %c0_11 = arith.constant 0 : index
    %18 = vector.load %arg2[%c0_10, %c0_11] : memref<32x32xbf16, #tpu.memory_space<vmem>>, vector<32x32xbf16>
    %cst_12 = arith.constant dense<0.000000e+00> : vector<8x32xf32>
    %19 = tpu.matmul %17, %18, %cst_12 {dimension_numbers = #tpu.dot_dimension_numbers<[1], [0], [0], [1], [0, 0, 1, 1], [], []>} : vector<8x32xbf16>, vector<32x32xbf16>, vector<8x32xf32> -> vector<8x32xf32>
    %c0_13 = arith.constant 0 : index
    %c0_14 = arith.constant 0 : index
    %20 = vector.load %arg3[%c0_13, %c0_14] : memref<32x32xbf16, #tpu.memory_space<vmem>>, vector<32x32xbf16>
    %cst_15 = arith.constant dense<0.000000e+00> : vector<8x32xf32>
    %21 = tpu.matmul %17, %20, %cst_15 {dimension_numbers = #tpu.dot_dimension_numbers<[1], [0], [0], [1], [0, 0, 1, 1], [], []>} : vector<8x32xbf16>, vector<32x32xbf16>, vector<8x32xf32> -> vector<8x32xf32>
    %c0_16 = arith.constant 0 : index
    %c0_17 = arith.constant 0 : index
    %22 = vector.load %arg4[%c0_16, %c0_17] : memref<32x32xbf16, #tpu.memory_space<vmem>>, vector<32x32xbf16>
    %cst_18 = arith.constant dense<0.000000e+00> : vector<8x32xf32>
    %23 = tpu.matmul %17, %22, %cst_18 {dimension_numbers = #tpu.dot_dimension_numbers<[1], [0], [0], [1], [0, 0, 1, 1], [], []>} : vector<8x32xbf16>, vector<32x32xbf16>, vector<8x32xf32> -> vector<8x32xf32>
    %24 = vector.shape_cast %19 : vector<8x32xf32> to vector<8x4x8xf32>
    %25 = vector.extract_strided_slice %24 {offsets = [0, 0, 4], sizes = [8, 4, 4], strides = [1, 1, 1]} : vector<8x4x8xf32> to vector<8x4x4xf32>
    %26 = vector.extract_strided_slice %24 {offsets = [0, 0, 0], sizes = [8, 4, 4], strides = [1, 1, 1]} : vector<8x4x8xf32> to vector<8x4x4xf32>
    %27 = tpu.concatenate %25, %26 in 2 : vector<8x4x4xf32>, vector<8x4x4xf32> -> vector<8x4x8xf32>
    %28 = vector.shape_cast %2 : vector<8x8xf32> to vector<8x1x8xf32>
    %29 = vector.broadcast %28 : vector<8x1x8xf32> to vector<8x4x8xf32>
    %30 = arith.mulf %24, %29 : vector<8x4x8xf32>
    %31 = vector.shape_cast %3 : vector<8x8xf32> to vector<8x1x8xf32>
    %32 = vector.broadcast %31 : vector<8x1x8xf32> to vector<8x4x8xf32>
    %33 = arith.mulf %27, %32 : vector<8x4x8xf32>
    %34 = arith.addf %30, %33 : vector<8x4x8xf32>
    %cst_19 = arith.constant 0.353553385 : f32
    %35 = vector.broadcast %cst_19 : f32 to vector<8x4x8xf32>
    %36 = arith.mulf %34, %35 : vector<8x4x8xf32>
    %37 = arith.truncf %36 : vector<8x4x8xf32> to vector<8x4x8xbf16>
    %38 = vector.shape_cast %21 : vector<8x32xf32> to vector<8x4x8xf32>
    %39 = vector.extract_strided_slice %38 {offsets = [0, 0, 4], sizes = [8, 4, 4], strides = [1, 1, 1]} : vector<8x4x8xf32> to vector<8x4x4xf32>
    %40 = vector.extract_strided_slice %38 {offsets = [0, 0, 0], sizes = [8, 4, 4], strides = [1, 1, 1]} : vector<8x4x8xf32> to vector<8x4x4xf32>
    %41 = tpu.concatenate %39, %40 in 2 : vector<8x4x4xf32>, vector<8x4x4xf32> -> vector<8x4x8xf32>
    %42 = vector.shape_cast %2 : vector<8x8xf32> to vector<8x1x8xf32>
    %43 = vector.broadcast %42 : vector<8x1x8xf32> to vector<8x4x8xf32>
    %44 = arith.mulf %38, %43 : vector<8x4x8xf32>
    %45 = vector.shape_cast %3 : vector<8x8xf32> to vector<8x1x8xf32>
    %46 = vector.broadcast %45 : vector<8x1x8xf32> to vector<8x4x8xf32>
    %47 = arith.mulf %41, %46 : vector<8x4x8xf32>
    %48 = arith.addf %44, %47 : vector<8x4x8xf32>
    %49 = arith.truncf %48 : vector<8x4x8xf32> to vector<8x4x8xbf16>
    %50 = vector.shape_cast %23 : vector<8x32xf32> to vector<8x4x8xf32>
    %51 = arith.truncf %50 : vector<8x4x8xf32> to vector<8x4x8xbf16>
    "tpu.trace_start"() <{level = 10 : i32, message = "qhd,khd->hqk"}> : () -> ()
    %cst_20 = arith.constant dense<0.000000e+00> : vector<4x8x8xf32>
    %52 = tpu.matmul %37, %49, %cst_20 {dimension_numbers = #tpu.dot_dimension_numbers<[2], [2], [0], [0], [0, 1, 0, 0, 1, 0], [1], [1]>} : vector<8x4x8xbf16>, vector<8x4x8xbf16>, vector<4x8x8xf32> -> vector<4x8x8xf32>
    "tpu.trace_stop"() : () -> ()
    %53 = tpu.iota {dimensions = array<i32: 0>} : vector<8x8xi32>
    %54 = tpu.iota {dimensions = array<i32: 1>} : vector<8x8xi32>
    %55 = arith.cmpi sge, %53, %54 : vector<8x8xi32>
    %56 = vector.shape_cast %55 : vector<8x8xi1> to vector<1x8x8xi1>
    %cst_21 = arith.constant -1.000000e+30 : f32
    %57 = vector.shape_cast %56 : vector<1x8x8xi1> to vector<1x8x8xi1>
    %58 = vector.broadcast %57 : vector<1x8x8xi1> to vector<4x8x8xi1>
    %59 = vector.broadcast %cst_21 : f32 to vector<4x8x8xf32>
    %60 = arith.select %58, %52, %59 : vector<4x8x8xi1>, vector<4x8x8xf32>
    %cst_22 = arith.constant dense<0xFF800000> : vector<4x8xf32>
    %61 = vector.multi_reduction <maximumf>, %60, %cst_22 [2] : vector<4x8x8xf32> to vector<4x8xf32>
    %62 = vector.shape_cast %61 : vector<4x8xf32> to vector<4x8x1xf32>
    %63 = vector.broadcast %62 : vector<4x8x1xf32> to vector<4x8x8xf32>
    %64 = arith.subf %60, %63 : vector<4x8x8xf32>
    %65 = math.exp %64 : vector<4x8x8xf32>
    %cst_23 = arith.constant dense<0.000000e+00> : vector<4x8xf32>
    %66 = vector.multi_reduction <add>, %65, %cst_23 [2] : vector<4x8x8xf32> to vector<4x8xf32>
    %67 = vector.shape_cast %66 : vector<4x8xf32> to vector<4x8x1xf32>
    %68 = tpu.reciprocal %67 {approx = true} : vector<4x8x1xf32> -> vector<4x8x1xf32>
    %69 = vector.broadcast %68 : vector<4x8x1xf32> to vector<4x8x8xf32>
    %70 = arith.mulf %65, %69 : vector<4x8x8xf32>
    %71 = arith.truncf %70 : vector<4x8x8xf32> to vector<4x8x8xbf16>
    "tpu.trace_start"() <{level = 10 : i32, message = "hqk,khd->qhd"}> : () -> ()
    %cst_24 = arith.constant dense<0.000000e+00> : vector<4x8x8xf32>
    %72 = tpu.matmul %51, %71, %cst_24 {dimension_numbers = #tpu.dot_dimension_numbers<[0], [2], [2], [1], [0, 1, 0, 2, 1, 1], [1], [0]>} : vector<8x4x8xbf16>, vector<4x8x8xbf16>, vector<4x8x8xf32> -> vector<4x8x8xf32>
    %73 = tpu.transpose %72, [2, 0, 1] : vector<4x8x8xf32> -> vector<8x4x8xf32>
    "tpu.trace_stop"() : () -> ()
    %74 = vector.shape_cast %73 : vector<8x4x8xf32> to vector<8x32xf32>
    %75 = arith.truncf %74 : vector<8x32xf32> to vector<8x32xbf16>
    %c0_25 = arith.constant 0 : index
    %c0_26 = arith.constant 0 : index
    %76 = vector.load %arg5[%c0_25, %c0_26] : memref<32x32xbf16, #tpu.memory_space<vmem>>, vector<32x32xbf16>
    %cst_27 = arith.constant dense<0.000000e+00> : vector<8x32xf32>
    %77 = tpu.matmul %75, %76, %cst_27 {dimension_numbers = #tpu.dot_dimension_numbers<[1], [0], [0], [1], [0, 0, 1, 1], [], []>} : vector<8x32xbf16>, vector<32x32xbf16>, vector<8x32xf32> -> vector<8x32xf32>
    %78 = arith.addf %1, %77 : vector<8x32xf32>
    %c0_28 = arith.constant 0 : index
    %c0_29 = arith.constant 0 : index
    %79 = vector.load %arg10[%c0_28, %c0_29] : memref<1x32xf32, #tpu.memory_space<vmem>>, vector<1x32xf32>
    %80 = arith.mulf %78, %78 : vector<8x32xf32>
    %cst_30 = arith.constant dense<0.000000e+00> : vector<8xf32>
    %81 = vector.multi_reduction <add>, %80, %cst_30 [1] : vector<8x32xf32> to vector<8xf32>
    %82 = vector.shape_cast %81 : vector<8xf32> to vector<8x1xf32>
    %cst_31 = arith.constant 3.200000e+01 : f32
    %83 = vector.broadcast %cst_31 : f32 to vector<8x1xf32>
    %84 = arith.divf %82, %83 : vector<8x1xf32>
    %cst_32 = arith.constant 9.99999974E-6 : f32
    %85 = vector.broadcast %cst_32 : f32 to vector<8x1xf32>
    %86 = arith.addf %84, %85 : vector<8x1xf32>
    %87 = math.rsqrt %86 : vector<8x1xf32>
    %88 = vector.broadcast %87 : vector<8x1xf32> to vector<8x32xf32>
    %89 = arith.mulf %78, %88 : vector<8x32xf32>
    %90 = vector.broadcast %79 : vector<1x32xf32> to vector<8x32xf32>
    %91 = arith.mulf %89, %90 : vector<8x32xf32>
    %92 = arith.truncf %91 : vector<8x32xf32> to vector<8x32xbf16>
    %cst_33 = arith.constant 0.000000e+00 : f32
    %93 = vector.broadcast %cst_33 : f32 to vector<8x32xf32>
    %c0_34 = arith.constant 0 : index
    %c0_35 = arith.constant 0 : index
    %94 = vector.load %arg6[%c0_34, %c0_35] : memref<32x64xbf16, #tpu.memory_space<vmem>>, vector<32x64xbf16>
    %cst_36 = arith.constant dense<0.000000e+00> : vector<8x64xf32>
    %95 = tpu.matmul %92, %94, %cst_36 {dimension_numbers = #tpu.dot_dimension_numbers<[1], [0], [0], [1], [0, 0, 1, 1], [], []>} : vector<8x32xbf16>, vector<32x64xbf16>, vector<8x64xf32> -> vector<8x64xf32>
    %c0_37 = arith.constant 0 : index
    %c0_38 = arith.constant 0 : index
    %96 = vector.load %arg7[%c0_37, %c0_38] : memref<32x64xbf16, #tpu.memory_space<vmem>>, vector<32x64xbf16>
    %cst_39 = arith.constant dense<0.000000e+00> : vector<8x64xf32>
    %97 = tpu.matmul %92, %96, %cst_39 {dimension_numbers = #tpu.dot_dimension_numbers<[1], [0], [0], [1], [0, 0, 1, 1], [], []>} : vector<8x32xbf16>, vector<32x64xbf16>, vector<8x64xf32> -> vector<8x64xf32>
    %98 = arith.negf %95 : vector<8x64xf32>
    %99 = math.exp %98 : vector<8x64xf32>
    %cst_40 = arith.constant 1.000000e+00 : f32
    %100 = vector.broadcast %cst_40 : f32 to vector<8x64xf32>
    %101 = arith.addf %100, %99 : vector<8x64xf32>
    %102 = arith.divf %100, %101 : vector<8x64xf32>
    %103 = arith.mulf %95, %102 : vector<8x64xf32>
    %104 = arith.mulf %103, %97 : vector<8x64xf32>
    %105 = arith.truncf %104 : vector<8x64xf32> to vector<8x64xbf16>
    %c0_41 = arith.constant 0 : index
    %c0_42 = arith.constant 0 : index
    %106 = vector.load %arg8[%c0_41, %c0_42] : memref<64x32xbf16, #tpu.memory_space<vmem>>, vector<64x32xbf16>
    %cst_43 = arith.constant dense<0.000000e+00> : vector<8x32xf32>
    %107 = tpu.matmul %105, %106, %cst_43 {dimension_numbers = #tpu.dot_dimension_numbers<[1], [0], [0], [1], [0, 0, 1, 1], [], []>} : vector<8x64xbf16>, vector<64x32xbf16>, vector<8x32xf32> -> vector<8x32xf32>
    %108 = arith.addf %93, %107 : vector<8x32xf32>
    %109 = arith.addf %78, %108 : vector<8x32xf32>
    %c0_44 = arith.constant 0 : index
    %c0_45 = arith.constant 0 : index
    %c0_46 = arith.constant 0 : index
    %110 = vector.load %arg13[%c0_44, %c0_45, %c0_46] : memref<1x8x32xf32, #tpu.memory_space<vmem>>, vector<1x8x32xf32>
    %111 = vector.shape_cast %110 : vector<1x8x32xf32> to vector<8x32xf32>
    %112 = vector.shape_cast %109 : vector<8x32xf32> to vector<1x8x32xf32>
    tpu.vector_store %arg13[%c0_44, %c0_45, %c0_46], %112 {strides = array<i32>} : memref<1x8x32xf32, #tpu.memory_space<vmem>>, vector<1x8x32xf32>,
    return
  }
  func.func @transform_0(%arg0: i32) -> (i32, i32, i32) {
    %c0_i32 = arith.constant 0 : i32
    %c0_i32_0 = arith.constant 0 : i32
    %c0_i32_1 = arith.constant 0 : i32
    return %arg0, %c0_i32, %c0_i32_0 : i32, i32, i32
  }
  func.func @transform_1(%arg0: i32) -> (i32, i32) {
    %c0_i32 = arith.constant 0 : i32
    %c0_i32_0 = arith.constant 0 : i32
    %c0_i32_1 = arith.constant 0 : i32
    return %c0_i32, %c0_i32_0 : i32, i32
  }
  func.func @transform_2(%arg0: i32) -> (i32, i32) {
    %c0_i32 = arith.constant 0 : i32
    %c0_i32_0 = arith.constant 0 : i32
    %c0_i32_1 = arith.constant 0 : i32
    return %c0_i32, %c0_i32_0 : i32, i32
  }
  func.func @transform_3(%arg0: i32) -> (i32, i32) {
    %c0_i32 = arith.constant 0 : i32
    %c0_i32_0 = arith.constant 0 : i32
    %c0_i32_1 = arith.constant 0 : i32
    return %c0_i32, %c0_i32_0 : i32, i32
  }
  func.func @transform_4(%arg0: i32) -> (i32, i32) {
    %c0_i32 = arith.constant 0 : i32
    %c0_i32_0 = arith.constant 0 : i32
    %c0_i32_1 = arith.constant 0 : i32
    return %c0_i32, %c0_i32_0 : i32, i32
  }
  func.func @transform_5(%arg0: i32) -> (i32, i32) {
    %c0_i32 = arith.constant 0 : i32
    %c0_i32_0 = arith.constant 0 : i32
    %c0_i32_1 = arith.constant 0 : i32
    return %c0_i32, %c0_i32_0 : i32, i32
  }
  func.func @transform_6(%arg0: i32) -> (i32, i32) {
    %c0_i32 = arith.constant 0 : i32
    %c0_i32_0 = arith.constant 0 : i32
    %c0_i32_1 = arith.constant 0 : i32
    return %c0_i32, %c0_i32_0 : i32, i32
  }
  func.func @transform_7(%arg0: i32) -> (i32, i32) {
    %c0_i32 = arith.constant 0 : i32
    %c0_i32_0 = arith.constant 0 : i32
    %c0_i32_1 = arith.constant 0 : i32
    return %c0_i32, %c0_i32_0 : i32, i32
  }
  func.func @transform_8(%arg0: i32) -> (i32, i32) {
    %c0_i32 = arith.constant 0 : i32
    %c0_i32_0 = arith.constant 0 : i32
    %c0_i32_1 = arith.constant 0 : i32
    return %c0_i32, %c0_i32_0 : i32, i32
  }
  func.func @transform_9(%arg0: i32) -> (i32, i32) {
    %c0_i32 = arith.constant 0 : i32
    %c0_i32_0 = arith.constant 0 : i32
    %c0_i32_1 = arith.constant 0 : i32
    return %c0_i32, %c0_i32_0 : i32, i32
  }
  func.func @transform_10(%arg0: i32) -> (i32, i32) {
    %c0_i32 = arith.constant 0 : i32
    %c0_i32_0 = arith.constant 0 : i32
    %c0_i32_1 = arith.constant 0 : i32
    return %c0_i32, %c0_i32_0 : i32, i32
  }
  func.func @transform_11(%arg0: i32) -> (i32, i32) {
    %c0_i32 = arith.constant 0 : i32
    %c0_i32_0 = arith.constant 0 : i32
    %c0_i32_1 = arith.constant 0 : i32
    return %c0_i32, %c0_i32_0 : i32, i32
  }
  func.func @transform_12(%arg0: i32) -> (i32, i32, i32) {
    %c0_i32 = arith.constant 0 : i32
    %c0_i32_0 = arith.constant 0 : i32
    %c0_i32_1 = arith.constant 0 : i32
    return %arg0, %c0_i32, %c0_i32_0 : i32, i32, i32
  }
}

module attributes {stable_mosaic.version = 11 : i64} {
  func.func @transformer_block_kernel(%arg0: i32, %arg1: memref<1x8x32xf32, #tpu.memory_space<vmem>>, %arg2: memref<32x32xbf16, #tpu.memory_space<vmem>>, %arg3: memref<32x32xbf16, #tpu.memory_space<vmem>>, %arg4: memref<32x32xbf16, #tpu.memory_space<vmem>>, %arg5: memref<32x32xbf16, #tpu.memory_space<vmem>>, %arg6: memref<32x64xbf16, #tpu.memory_space<vmem>>, %arg7: memref<32x64xbf16, #tpu.memory_space<vmem>>, %arg8: memref<64x32xbf16, #tpu.memory_space<vmem>>, %arg9: memref<1x32xf32, #tpu.memory_space<vmem>>, %arg10: memref<1x32xf32, #tpu.memory_space<vmem>>, %arg11: memref<8x8xf32, #tpu.memory_space<vmem>>, %arg12: memref<8x8xf32, #tpu.memory_space<vmem>>, %arg13: memref<1x8x32xf32, #tpu.memory_space<vmem>>) attributes {dimension_semantics = [#tpu.dimension_semantics<parallel>], iteration_bounds = array<i64: 2>, scalar_prefetch = 0 : i64, scratch_operands = 0 : i64, tpu.core_type = #tpu.core_type<tc>, window_params = [{transform_indices = @transform_0, window_bounds = array<i64: 1, 8, 32>}, {pipeline_mode = #tpu.pipeline_mode<synchronous>, transform_indices = @transform_1, window_bounds = array<i64: 32, 32>}, {pipeline_mode = #tpu.pipeline_mode<synchronous>, transform_indices = @transform_2, window_bounds = array<i64: 32, 32>}, {pipeline_mode = #tpu.pipeline_mode<synchronous>, transform_indices = @transform_3, window_bounds = array<i64: 32, 32>}, {pipeline_mode = #tpu.pipeline_mode<synchronous>, transform_indices = @transform_4, window_bounds = array<i64: 32, 32>}, {pipeline_mode = #tpu.pipeline_mode<synchronous>, transform_indices = @transform_5, window_bounds = array<i64: 32, 64>}, {pipeline_mode = #tpu.pipeline_mode<synchronous>, transform_indices = @transform_6, window_bounds = array<i64: 32, 64>}, {pipeline_mode = #tpu.pipeline_mode<synchronous>, transform_indices = @transform_7, window_bounds = array<i64: 64, 32>}, {pipeline_mode = #tpu.pipeline_mode<synchronous>, transform_indices = @transform_8, window_bounds = array<i64: 1, 32>}, {pipeline_mode = #tpu.pipeline_mode<synchronous>, transform_indices = @transform_9, window_bounds = array<i64: 1, 32>}, {pipeline_mode = #tpu.pipeline_mode<synchronous>, transform_indices = @transform_10, window_bounds = array<i64: 8, 8>}, {pipeline_mode = #tpu.pipeline_mode<synchronous>, transform_indices = @transform_11, window_bounds = array<i64: 8, 8>}, {transform_indices = @transform_12, window_bounds = array<i64: 1, 8, 32>}]} {
    %c0 = arith.constant 0 : index
    %c0_0 = arith.constant 0 : index
    %c0_1 = arith.constant 0 : index
    %0 = vector.load %arg1[%c0, %c0_0, %c0_1] : memref<1x8x32xf32, #tpu.memory_space<vmem>>, vector<1x8x32xf32>
    %1 = vector.shape_cast %0 : vector<1x8x32xf32> to vector<8x32xf32>
    %c0_2 = arith.constant 0 : index
    %c0_3 = arith.constant 0 : index
    %2 = vector.load %arg11[%c0_2, %c0_3] : memref<8x8xf32, #tpu.memory_space<vmem>>, vector<8x8xf32>
    %c0_4 = arith.constant 0 : index
    %c0_5 = arith.constant 0 : index
    %3 = vector.load %arg12[%c0_4, %c0_5] : memref<8x8xf32, #tpu.memory_space<vmem>>, vector<8x8xf32>
    %c0_6 = arith.constant 0 : index
    %c0_7 = arith.constant 0 : index
    %4 = vector.load %arg9[%c0_6, %c0_7] : memref<1x32xf32, #tpu.memory_space<vmem>>, vector<1x32xf32>
    %5 = arith.mulf %1, %1 : vector<8x32xf32>
    %cst = arith.constant dense<0.000000e+00> : vector<8xf32>
    %6 = vector.multi_reduction <add>, %5, %cst [1] : vector<8x32xf32> to vector<8xf32>
    %7 = vector.shape_cast %6 : vector<8xf32> to vector<8x1xf32>
    %cst_8 = arith.constant 3.200000e+01 : f32
    %8 = vector.broadcast %cst_8 : f32 to vector<8x1xf32>
    %9 = arith.divf %7, %8 : vector<8x1xf32>
    %cst_9 = arith.constant 9.99999974E-6 : f32
    %10 = vector.broadcast %cst_9 : f32 to vector<8x1xf32>
    %11 = arith.addf %9, %10 : vector<8x1xf32>
    %12 = math.rsqrt %11 : vector<8x1xf32>
    %13 = vector.broadcast %12 : vector<8x1xf32> to vector<8x32xf32>
    %14 = arith.mulf %1, %13 : vector<8x32xf32>
    %15 = vector.broadcast %4 : vector<1x32xf32> to vector<8x32xf32>
    %16 = arith.mulf %14, %15 : vector<8x32xf32>
    %17 = arith.truncf %16 : vector<8x32xf32> to vector<8x32xbf16>
    %c0_10 = arith.constant 0 : index
    %c0_11 = arith.constant 0 : index
    %18 = vector.load %arg2[%c0_10, %c0_11] : memref<32x32xbf16, #tpu.memory_space<vmem>>, vector<32x32xbf16>
    %cst_12 = arith.constant dense<0.000000e+00> : vector<8x32xf32>
    %19 = tpu.matmul %17, %18, %cst_12 {dimension_numbers = #tpu.dot_dimension_numbers<[1], [0], [0], [1], [0, 0, 1, 1], [], []>} : vector<8x32xbf16>, vector<32x32xbf16>, vector<8x32xf32> -> vector<8x32xf32>
    %c0_13 = arith.constant 0 : index
    %c0_14 = arith.constant 0 : index
    %20 = vector.load %arg3[%c0_13, %c0_14] : memref<32x32xbf16, #tpu.memory_space<vmem>>, vector<32x32xbf16>
    %cst_15 = arith.constant dense<0.000000e+00> : vector<8x32xf32>
    %21 = tpu.matmul %17, %20, %cst_15 {dimension_numbers = #tpu.dot_dimension_numbers<[1], [0], [0], [1], [0, 0, 1, 1], [], []>} : vector<8x32xbf16>, vector<32x32xbf16>, vector<8x32xf32> -> vector<8x32xf32>
    %c0_16 = arith.constant 0 : index
    %c0_17 = arith.constant 0 : index
    %22 = vector.load %arg4[%c0_16, %c0_17] : memref<32x32xbf16, #tpu.memory_space<vmem>>, vector<32x32xbf16>
    %cst_18 = arith.constant dense<0.000000e+00> : vector<8x32xf32>
    %23 = tpu.matmul %17, %22, %cst_18 {dimension_numbers = #tpu.dot_dimension_numbers<[1], [0], [0], [1], [0, 0, 1, 1], [], []>} : vector<8x32xbf16>, vector<32x32xbf16>, vector<8x32xf32> -> vector<8x32xf32>
    %24 = vector.shape_cast %19 : vector<8x32xf32> to vector<8x4x8xf32>
    %25 = vector.extract_strided_slice %24 {offsets = [0, 0, 4], sizes = [8, 4, 4], strides = [1, 1, 1]} : vector<8x4x8xf32> to vector<8x4x4xf32>
    %26 = vector.extract_strided_slice %24 {offsets = [0, 0, 0], sizes = [8, 4, 4], strides = [1, 1, 1]} : vector<8x4x8xf32> to vector<8x4x4xf32>
    %27 = tpu.concatenate %25, %26 in 2 : vector<8x4x4xf32>, vector<8x4x4xf32> -> vector<8x4x8xf32>
    %28 = vector.shape_cast %2 : vector<8x8xf32> to vector<8x1x8xf32>
    %29 = vector.broadcast %28 : vector<8x1x8xf32> to vector<8x4x8xf32>
    %30 = arith.mulf %24, %29 : vector<8x4x8xf32>
    %31 = vector.shape_cast %3 : vector<8x8xf32> to vector<8x1x8xf32>
    %32 = vector.broadcast %31 : vector<8x1x8xf32> to vector<8x4x8xf32>
    %33 = arith.mulf %27, %32 : vector<8x4x8xf32>
    %34 = arith.addf %30, %33 : vector<8x4x8xf32>
    %cst_19 = arith.constant 0.353553385 : f32
    %35 = vector.broadcast %cst_19 : f32 to vector<8x4x8xf32>
    %36 = arith.mulf %34, %35 : vector<8x4x8xf32>
    %37 = arith.truncf %36 : vector<8x4x8xf32> to vector<8x4x8xbf16>
    %38 = vector.shape_cast %21 : vector<8x32xf32> to vector<8x4x8xf32>
    %39 = vector.extract_strided_slice %38 {offsets = [0, 0, 4], sizes = [8, 4, 4], strides = [1, 1, 1]} : vector<8x4x8xf32> to vector<8x4x4xf32>
    %40 = vector.extract_strided_slice %38 {offsets = [0, 0, 0], sizes = [8, 4, 4], strides = [1, 1, 1]} : vector<8x4x8xf32> to vector<8x4x4xf32>
    %41 = tpu.concatenate %39, %40 in 2 : vector<8x4x4xf32>, vector<8x4x4xf32> -> vector<8x4x8xf32>
    %42 = vector.shape_cast %2 : vector<8x8xf32> to vector<8x1x8xf32>
    %43 = vector.broadcast %42 : vector<8x1x8xf32> to vector<8x4x8xf32>
    %44 = arith.mulf %38, %43 : vector<8x4x8xf32>
    %45 = vector.shape_cast %3 : vector<8x8xf32> to vector<8x1x8xf32>
    %46 = vector.broadcast %45 : vector<8x1x8xf32> to vector<8x4x8xf32>
    %47 = arith.mulf %41, %46 : vector<8x4x8xf32>
    %48 = arith.addf %44, %47 : vector<8x4x8xf32>
    %49 = arith.truncf %48 : vector<8x4x8xf32> to vector<8x4x8xbf16>
    %50 = vector.shape_cast %23 : vector<8x32xf32> to vector<8x4x8xf32>
    %51 = arith.truncf %50 : vector<8x4x8xf32> to vector<8x4x8xbf16>
    "tpu.trace_start"() <{level = 10 : i32, message = "qhd,khd->hqk"}> : () -> ()
    %cst_20 = arith.constant dense<0.000000e+00> : vector<4x8x8xf32>
    %52 = tpu.matmul %37, %49, %cst_20 {dimension_numbers = #tpu.dot_dimension_numbers<[2], [2], [0], [0], [0, 1, 0, 0, 1, 0], [1], [1]>} : vector<8x4x8xbf16>, vector<8x4x8xbf16>, vector<4x8x8xf32> -> vector<4x8x8xf32>
    "tpu.trace_stop"() : () -> ()
    %53 = tpu.iota {dimensions = array<i32: 0>} : vector<8x8xi32>
    %54 = tpu.iota {dimensions = array<i32: 1>} : vector<8x8xi32>
    %55 = arith.cmpi sge, %53, %54 : vector<8x8xi32>
    %56 = vector.shape_cast %55 : vector<8x8xi1> to vector<1x8x8xi1>
    %cst_21 = arith.constant -1.000000e+30 : f32
    %57 = vector.shape_cast %56 : vector<1x8x8xi1> to vector<1x8x8xi1>
    %58 = vector.broadcast %57 : vector<1x8x8xi1> to vector<4x8x8xi1>
    %59 = vector.broadcast %cst_21 : f32 to vector<4x8x8xf32>
    %60 = arith.select %58, %52, %59 : vector<4x8x8xi1>, vector<4x8x8xf32>
    %cst_22 = arith.constant dense<0xFF800000> : vector<4x8xf32>
    %61 = vector.multi_reduction <maximumf>, %60, %cst_22 [2] : vector<4x8x8xf32> to vector<4x8xf32>
    %62 = vector.shape_cast %61 : vector<4x8xf32> to vector<4x8x1xf32>
    %63 = vector.broadcast %62 : vector<4x8x1xf32> to vector<4x8x8xf32>
    %64 = arith.subf %60, %63 : vector<4x8x8xf32>
    %65 = math.exp %64 : vector<4x8x8xf32>
    %cst_23 = arith.constant dense<0.000000e+00> : vector<4x8xf32>
    %66 = vector.multi_reduction <add>, %65, %cst_23 [2] : vector<4x8x8xf32> to vector<4x8xf32>
    %67 = vector.shape_cast %66 : vector<4x8xf32> to vector<4x8x1xf32>
    %68 = tpu.reciprocal %67 {approx = true} : vector<4x8x1xf32> -> vector<4x8x1xf32>
    %69 = vector.broadcast %68 : vector<4x8x1xf32> to vector<4x8x8xf32>
    %70 = arith.mulf %65, %69 : vector<4x8x8xf32>
    %71 = arith.truncf %70 : vector<4x8x8xf32> to vector<4x8x8xbf16>
    "tpu.trace_start"() <{level = 10 : i32, message = "hqk,khd->qhd"}> : () -> ()
    %cst_24 = arith.constant dense<0.000000e+00> : vector<4x8x8xf32>
    %72 = tpu.matmul %51, %71, %cst_24 {dimension_numbers = #tpu.dot_dimension_numbers<[0], [2], [2], [1], [0, 1, 0, 2, 1, 1], [1], [0]>} : vector<8x4x8xbf16>, vector<4x8x8xbf16>, vector<4x8x8xf32> -> vector<4x8x8xf32>
    %73 = tpu.transpose %72, [2, 0, 1] : vector<4x8x8xf32> -> vector<8x4x8xf32>
    "tpu.trace_stop"() : () -> ()
    %74 = vector.shape_cast %73 : vector<8x4x8xf32> to vector<8x32xf32>
    %75 = arith.truncf %74 : vector<8x32xf32> to vector<8x32xbf16>
    %c0_25 = arith.constant 0 : index
    %c0_26 = arith.constant 0 : index
    %76 = vector.load %arg5[%c0_25, %c0_26] : memref<32x32xbf16, #tpu.memory_space<vmem>>, vector<32x32xbf16>
    %cst_27 = arith.constant dense<0.000000e+00> : vector<8x32xf32>
    %77 = tpu.matmul %75, %76, %cst_27 {dimension_numbers = #tpu.dot_dimension_numbers<[1], [0], [0], [1], [0, 0, 1, 1], [], []>} : vector<8x32xbf16>, vector<32x32xbf16>, vector<8x32xf32> -> vector<8x32xf32>
    %78 = arith.addf %1, %77 : vector<8x32xf32>
    %c0_28 = arith.constant 0 : index
    %c0_29 = arith.constant 0 : index
    %79 = vector.load %arg10[%c0_28, %c0_29] : memref<1x32xf32, #tpu.memory_space<vmem>>, vector<1x32xf32>
    %80 = arith.mulf %78, %78 : vector<8x32xf32>
    %cst_30 = arith.constant dense<0.000000e+00> : vector<8xf32>
    %81 = vector.multi_reduction <add>, %80, %cst_30 [1] : vector<8x32xf32> to vector<8xf32>
    %82 = vector.shape_cast %81 : vector<8xf32> to vector<8x1xf32>
    %cst_31 = arith.constant 3.200000e+01 : f32
    %83 = vector.broadcast %cst_31 : f32 to vector<8x1xf32>
    %84 = arith.divf %82, %83 : vector<8x1xf32>
    %cst_32 = arith.constant 9.99999974E-6 : f32
    %85 = vector.broadcast %cst_32 : f32 to vector<8x1xf32>
    %86 = arith.addf %84, %85 : vector<8x1xf32>
    %87 = math.rsqrt %86 : vector<8x1xf32>
    %88 = vector.broadcast %87 : vector<8x1xf32> to vector<8x32xf32>
    %89 = arith.mulf %78, %88 : vector<8x32xf32>
    %90 = vector.broadcast %79 : vector<1x32xf32> to vector<8x32xf32>
    %91 = arith.mulf %89, %90 : vector<8x32xf32>
    %92 = arith.truncf %91 : vector<8x32xf32> to vector<8x32xbf16>
    %cst_33 = arith.constant 0.000000e+00 : f32
    %93 = vector.broadcast %cst_33 : f32 to vector<8x32xf32>
    %c0_34 = arith.constant 0 : index
    %c0_35 = arith.constant 0 : index
    %94 = vector.load %arg6[%c0_34, %c0_35] : memref<32x64xbf16, #tpu.memory_space<vmem>>, vector<32x64xbf16>
    %cst_36 = arith.constant dense<0.000000e+00> : vector<8x64xf32>
    %95 = tpu.matmul %92, %94, %cst_36 {dimension_numbers = #tpu.dot_dimension_numbers<[1], [0], [0], [1], [0, 0, 1, 1], [], []>} : vector<8x32xbf16>, vector<32x64xbf16>, vector<8x64xf32> -> vector<8x64xf32>
    %c0_37 = arith.constant 0 : index
    %c0_38 = arith.constant 0 : index
    %96 = vector.load %arg7[%c0_37, %c0_38] : memref<32x64xbf16, #tpu.memory_space<vmem>>, vector<32x64xbf16>
    %cst_39 = arith.constant dense<0.000000e+00> : vector<8x64xf32>
    %97 = tpu.matmul %92, %96, %cst_39 {dimension_numbers = #tpu.dot_dimension_numbers<[1], [0], [0], [1], [0, 0, 1, 1], [], []>} : vector<8x32xbf16>, vector<32x64xbf16>, vector<8x64xf32> -> vector<8x64xf32>
    %98 = arith.negf %95 : vector<8x64xf32>
    %99 = math.exp %98 : vector<8x64xf32>
    %cst_40 = arith.constant 1.000000e+00 : f32
    %100 = vector.broadcast %cst_40 : f32 to vector<8x64xf32>
    %101 = arith.addf %100, %99 : vector<8x64xf32>
    %102 = arith.divf %100, %101 : vector<8x64xf32>
    %103 = arith.mulf %95, %102 : vector<8x64xf32>
    %104 = arith.mulf %103, %97 : vector<8x64xf32>
    %105 = arith.truncf %104 : vector<8x64xf32> to vector<8x64xbf16>
    %c0_41 = arith.constant 0 : index
    %c0_42 = arith.constant 0 : index
    %106 = vector.load %arg8[%c0_41, %c0_42] : memref<64x32xbf16, #tpu.memory_space<vmem>>, vector<64x32xbf16>
    %cst_43 = arith.constant dense<0.000000e+00> : vector<8x32xf32>
    %107 = tpu.matmul %105, %106, %cst_43 {dimension_numbers = #tpu.dot_dimension_numbers<[1], [0], [0], [1], [0, 0, 1, 1], [], []>} : vector<8x64xbf16>, vector<64x32xbf16>, vector<8x32xf32> -> vector<8x32xf32>
    %108 = arith.addf %93, %107 : vector<8x32xf32>
    %109 = arith.addf %78, %108 : vector<8x32xf32>
    %c0_44 = arith.constant 0 : index
    %c0_45 = arith.constant 0 : index
    %c0_46 = arith.constant 0 : index
    %110 = vector.load %arg13[%c0_44, %c0_45, %c0_46] : memref<1x8x32xf32, #tpu.memory_space<vmem>>, vector<1x8x32xf32>
    %111 = vector.shape_cast %110 : vector<1x8x32xf32> to vector<8x32xf32>
    %112 = vector.shape_cast %109 : vector<8x32xf32> to vector<1x8x32xf32>
    tpu.vector_store %arg13[%c0_44, %c0_45, %c0_46], %112 {strides = array<i32>} : memref<1x8x32xf32, #tpu.memory_space<vmem>>, vector<1x8x32xf32>,
    return
  }
  func.func @transform_0(%arg0: i32) -> (i32, i32, i32) {
    %c0_i32 = arith.constant 0 : i32
    %c0_i32_0 = arith.constant 0 : i32
    %c0_i32_1 = arith.constant 0 : i32
    return %arg0, %c0_i32, %c0_i32_0 : i32, i32, i32
  }
  func.func @transform_1(%arg0: i32) -> (i32, i32) {
    %c0_i32 = arith.constant 0 : i32
    %c0_i32_0 = arith.constant 0 : i32
    %c0_i32_1 = arith.constant 0 : i32
    return %c0_i32, %c0_i32_0 : i32, i32
  }
  func.func @transform_2(%arg0: i32) -> (i32, i32) {
    %c0_i32 = arith.constant 0 : i32
    %c0_i32_0 = arith.constant 0 : i32
    %c0_i32_1 = arith.constant 0 : i32
    return %c0_i32, %c0_i32_0 : i32, i32
  }
  func.func @transform_3(%arg0: i32) -> (i32, i32) {
    %c0_i32 = arith.constant 0 : i32
    %c0_i32_0 = arith.constant 0 : i32
    %c0_i32_1 = arith.constant 0 : i32
    return %c0_i32, %c0_i32_0 : i32, i32
  }
  func.func @transform_4(%arg0: i32) -> (i32, i32) {
    %c0_i32 = arith.constant 0 : i32
    %c0_i32_0 = arith.constant 0 : i32
    %c0_i32_1 = arith.constant 0 : i32
    return %c0_i32, %c0_i32_0 : i32, i32
  }
  func.func @transform_5(%arg0: i32) -> (i32, i32) {
    %c0_i32 = arith.constant 0 : i32
    %c0_i32_0 = arith.constant 0 : i32
    %c0_i32_1 = arith.constant 0 : i32
    return %c0_i32, %c0_i32_0 : i32, i32
  }
  func.func @transform_6(%arg0: i32) -> (i32, i32) {
    %c0_i32 = arith.constant 0 : i32
    %c0_i32_0 = arith.constant 0 : i32
    %c0_i32_1 = arith.constant 0 : i32
    return %c0_i32, %c0_i32_0 : i32, i32
  }
  func.func @transform_7(%arg0: i32) -> (i32, i32) {
    %c0_i32 = arith.constant 0 : i32
    %c0_i32_0 = arith.constant 0 : i32
    %c0_i32_1 = arith.constant 0 : i32
    return %c0_i32, %c0_i32_0 : i32, i32
  }
  func.func @transform_8(%arg0: i32) -> (i32, i32) {
    %c0_i32 = arith.constant 0 : i32
    %c0_i32_0 = arith.constant 0 : i32
    %c0_i32_1 = arith.constant 0 : i32
    return %c0_i32, %c0_i32_0 : i32, i32
  }
  func.func @transform_9(%arg0: i32) -> (i32, i32) {
    %c0_i32 = arith.constant 0 : i32
    %c0_i32_0 = arith.constant 0 : i32
    %c0_i32_1 = arith.constant 0 : i32
    return %c0_i32, %c0_i32_0 : i32, i32
  }
  func.func @transform_10(%arg0: i32) -> (i32, i32) {
    %c0_i32 = arith.constant 0 : i32
    %c0_i32_0 = arith.constant 0 : i32
    %c0_i32_1 = arith.constant 0 : i32
    return %c0_i32, %c0_i32_0 : i32, i32
  }
  func.func @transform_11(%arg0: i32) -> (i32, i32) {
    %c0_i32 = arith.constant 0 : i32
    %c0_i32_0 = arith.constant 0 : i32
    %c0_i32_1 = arith.constant 0 : i32
    return %c0_i32, %c0_i32_0 : i32, i32
  }
  func.func @transform_12(%arg0: i32) -> (i32, i32, i32) {
    %c0_i32 = arith.constant 0 : i32
    %c0_i32_0 = arith.constant 0 : i32
    %c0_i32_1 = arith.constant 0 : i32
    return %arg0, %c0_i32, %c0_i32_0 : i32, i32, i32
  }
}

</mosaic_0001>

<bundles_post_ra>
// kernel: tpu_custom_call.1
= control target key start
LH: loop header
LB: loop body
LE: loop exit
PB: predicated region body
PF: predicated region fallthrough
CT: control target
= control target key end

     0   :  { %s4696_s0 = inlined_call_operand.vmem [shape: f32[2,8,32], index: 0, kind: input, shape index: {}]   ;;  %s4697_s1 = inlined_call_operand.vmem [shape: bf16[32,32], index: 1, kind: input, shape index: {}]   ;;  %s4698_s2 = inlined_call_operand.vmem [shape: bf16[32,32], index: 2, kind: input, shape index: {}]   ;;  %s4699_s3 = inlined_call_operand.hbm [shape: bf16[32,32], index: 3, kind: input, shape index: {}]   ;;  %s4700_s4 = inlined_call_operand.hbm [shape: bf16[32,32], index: 4, kind: input, shape index: {}]   ;;  %s4701_s5 = inlined_call_operand.hbm [shape: bf16[32,64], index: 5, kind: input, shape index: {}]   ;;  %s4702_s6 = inlined_call_operand.hbm [shape: bf16[32,64], index: 6, kind: input, shape index: {}]   ;;  %s4703_s7 = inlined_call_operand.vmem [shape: bf16[64,32], index: 7, kind: input, shape index: {}]   ;;  %s4704_s8 = inlined_call_operand.vmem [shape: f32[1,32], index: 8, kind: input, shape index: {}]   ;;  %s4705_s9 = inlined_call_operand.vmem [shape: f32[1,32], index: 9, kind: input, shape index: {}]   ;;  %s4706_s10 = inlined_call_operand.vmem [shape: f32[8,8], index: 10, kind: input, shape index: {}]   ;;  %s4707_s11 = inlined_call_operand.vmem [shape: f32[8,8], index: 11, kind: input, shape index: {}]   ;;  %s4708_s12 = inlined_call_operand.hbm [shape: f32[2,8,32], index: 12, kind: output, shape index: {}]  }
   0x1   :  { %4721 = sst [smem:[#allocation22_spill]] %s4708_s12 }
   0x2   :  { %17 = vsyncpa [#allocation3], 0 }
   0x3   :  { %18 = vsyncpa [#allocation6], 0 }
   0x4   :  { %19 = vsyncpa [#allocation9], 0 }
   0x5   :  { %20 = vsyncpa [#allocation4], 0 }
   0x6   :  { %22 = vsyncpa [#allocation4 + $0x1], 0  ;;  %s3905_s21 = smov 0   ;;  %s3907_s22 = smov 0  }
   0x7   :  { %s3909_s23 = smov 0   ;;  %s3911_s24 = smov 0  }
   0x8 LB: > { %4722 = sst [smem:[#allocation15_spill]] %s3805_s21  ;;  %s3926_s25 = sadd.s32 4294967295, %s3817_s24   ;;  %s3817_s24 = sphi %s3911_s24, %s4748_s24   ;;  %s3813_s23 = sphi %s3909_s23, %s4750_s23   ;;  %s3809_s22 = sphi %s3907_s22, %s4752_s22   ;;  %s3805_s21 = sphi %s3905_s21, %s4751_s21  }
   0x9   : > { %4723 = sst [smem:[#allocation16_spill]] %s3813_s23  ;;  %s3287_s26 = sadd.s32 4294967294, %s3817_s24  }
   0xa   : > { %4724 = sst [smem:[#allocation17_spill]] %s3817_s24  ;;  %s3930_s27 = sadd.s32 1, %s3817_s24  }
   0xb   : > { %4725 = sst [smem:[#allocation18_spill]] %s3930_s27  ;;  %s292_s28 = sadd.s32 1, %s3813_s23 }
   0xc   : > { %s289_s29 = ssub.s32 %s3817_s24, %s3930_s27  ;;  %p302_p0 = scmp.ne.s32.totalorder %s3813_s23, %s3809_s22 }
   0xd   : > { %p290_p1 = scmp.eq.s32.totalorder %s289_s29, 0  ;;  %p303_p2 = scmp.eq.s32.totalorder %s3926_s25, 1 }
   0xe   : > { %p308_p3 = scmp.ne.s32.totalorder %s3809_s22, %s3805_s21  ;;  %p309_p4 = scmp.eq.s32.totalorder %s3287_s26, 1 }
   0xf   : > { %s3941_s30 = scalar_select %p290_p1, %s3813_s23, %s292_s28  }
  0x10   : > { %p3943_p5 = por %p303_p2, %p302_p0  ;;  %p3947_p6 = por %p309_p4, %p308_p3 }
  0x11   : > { %4726 = sst [smem:[#allocation19_spill]] %s3941_s30  ;;  %p3288_p7 = scmp.ge.s32.totalorder %s3817_s24, 1 }
  0x12   : > { %s4727_s13 = scalar_select %p3943_p5, 1, 0 }
  0x13   : > { %s4729_s14 = scalar_select %p3947_p6, 1, 0 }
  0x14   : > { %4728 = sst [smem:[#allocation20_spill]] %s4727_s13  ;;  %p316_p8 = scmp.lt.s32.totalorder %s3817_s24, 3 }
  0x15   : > { %4730 = sst [smem:[#allocation21_spill]] %s4729_s14  ;;  %p4713_p9 = scmp.eq.s32.totalorder %s3926_s25, 0 }
  0x16   : > { %p3954_p10 = pnand %p3288_p7, %p316_p8  ;;  %s3819_s16 = smov [#allocation5]  }
  0x17   : > { %s347_s17 = sshll.u32 %s3819_s16, 4  ;;  %s3820_s19 = smov [#allocation2]   ;;  %s3960_s17 = int_to_ptr.vmem [resolvable:$true] %s347_s17 }
  0x18   : > { %s4731_s15 = scalar_select %p3954_p10, 1, 0 }
  0x19   : > { %p3510_p11 = pneg %p3954_p10  ;;  %s334_s20 = sshll.u32 %s3820_s19, 4  ;;  %s3968_s20 = int_to_ptr.vmem [resolvable:$true] %s334_s20 }
  0x1a   : > { %s3821_s26 = smov [#allocation7]   ;;  %s3631_s23 = scalar_lea.hbm %s4700_s4, 256 }
  0x1b   : > { %p3964_p12 = pnand %p4713_p9, %p3510_p11  ;;  %s3970_s28 = sshll.u32 %s3821_s26, 4  ;;  %s361_s28 = int_to_ptr.vmem [resolvable:$true] %s3970_s28 }
  0x1c   : > { %p3632_p13 = scmp.ne.s32.totalorder %s4700_s4, %s3631_s23  ;;  %p3638_p3 = scmp.lt.u32.totalorder %s3631_s23, %s4700_s4 }
  0x1d   : > { %p3980_p0 = pneg %p3964_p12 }
  0x1f   : > { %p3634_p1 = pnand %p3980_p0, %p3632_p13 }
  0x21   : > { %p3635_p2 = pneg %p3634_p1 }
  0x23   : > { %p3640_p4 = pnand %p3638_p3, %p3635_p2 }
  0x25   : > { %3643 = shalt.err (!%p3640_p4)
}
  0x26   : > { %s3644_s27 = scalar_lea.vmem %s3960_s17, 256  ;;  %p3652_p9 = scmp.lt.s32.totalorder %s3960_s17, %s3960_s17 }
  0x27   : > { %p3645_p7 = scmp.ne.s32.totalorder %s3960_s17, %s3644_s27  ;;  %p3653_p6 = scmp.lt.s32.totalorder %s3644_s27, %s3644_s27 }
  0x29   : > { %p3647_p8 = pnand %p3645_p7, %p3980_p0  ;;  %p3654_p13 = por %p3653_p6, %p3652_p9 }
  0x2b   : > { %p3648_p11 = pneg %p3647_p8 }
  0x2d   : > { %p3655_p1 = pnand %p3654_p13, %p3648_p11 }
  0x2f   : > { %3658 = shalt.err (!%p3655_p1)
}
  0x30   : > { %s3822_s30 = smov 64   ;;  %s3823_s23 = smov 4  }
  0x31   : > { %3516 = dma.hbm_to_vmem [thread:$0]  (!%p3964_p12), %s4700_s4, 256, %s3960_s17, [#allocation6], %s3822_s30, %s3822_s30, %s3823_s23  }
  0x32   : > { %s3659_s27 = scalar_lea.hbm %s4699_s3, 256 }
  0x33   : > { %p3660_p6 = scmp.ne.s32.totalorder %s4699_s3, %s3659_s27  ;;  %p3666_p3 = scmp.lt.u32.totalorder %s3659_s27, %s4699_s3 }
  0x35   : > { %p3662_p9 = pnand %p3660_p6, %p3980_p0 }
  0x37   : > { %p3663_p2 = pneg %p3662_p9 }
  0x39   : > { %p3668_p4 = pnand %p3666_p3, %p3663_p2 }
  0x3b   : > { %3671 = shalt.err (!%p3668_p4)
}
  0x3c   : > { %s3672_s17 = scalar_lea.vmem %s3968_s20, 256  ;;  %p3680_p13 = scmp.lt.s32.totalorder %s3968_s20, %s3968_s20 }
  0x3d   : > { %p3673_p7 = scmp.ne.s32.totalorder %s3968_s20, %s3672_s17  ;;  %p3681_p1 = scmp.lt.s32.totalorder %s3672_s17, %s3672_s17 }
  0x3f   : > { %p3675_p8 = pnand %p3673_p7, %p3980_p0  ;;  %p3682_p6 = por %p3681_p1, %p3680_p13 }
  0x41   : > { %p3676_p11 = pneg %p3675_p8 }
  0x43   : > { %p3683_p9 = pnand %p3682_p6, %p3676_p11 }
  0x45   : > { %3686 = shalt.err (!%p3683_p9)
}
  0x46   : > { %3513 = dma.hbm_to_vmem [thread:$0]  (!%p3964_p12), %s4699_s3, 256, %s3968_s20, [#allocation3], %s3822_s30, %s3822_s30, %s3823_s23  }
  0x47   : > { %s3687_s29 = scalar_lea.hbm %s4701_s5, 256 }
  0x48   : > { %p3688_p2 = scmp.ne.s32.totalorder %s4701_s5, %s3687_s29  ;;  %p3694_p7 = scmp.lt.u32.totalorder %s3687_s29, %s4701_s5 }
  0x4a   : > { %p3690_p3 = pnand %p3688_p2, %p3980_p0 }
  0x4c   : > { %p3691_p4 = pneg %p3690_p3 }
  0x4e   : > { %p3696_p8 = pnand %p3694_p7, %p3691_p4 }
  0x50   : > { %3699 = shalt.err (!%p3696_p8)
}
  0x51   : > { %s3700_s17 = scalar_lea.vmem %s361_s28, 256  ;;  %p3708_p6 = scmp.lt.s32.totalorder %s361_s28, %s361_s28 }
  0x52   : > { %p3701_p11 = scmp.ne.s32.totalorder %s361_s28, %s3700_s17  ;;  %p3709_p9 = scmp.lt.s32.totalorder %s3700_s17, %s3700_s17 }
  0x54   : > { %p3703_p13 = pnand %p3701_p11, %p3980_p0  ;;  %p3710_p5 = por %p3709_p9, %p3708_p6 }
  0x56   : > { %p3704_p1 = pneg %p3703_p13 }
  0x58   : > { %p3711_p10 = pnand %p3710_p5, %p3704_p1 }
  0x5a   : > { %3714 = shalt.err (!%p3711_p10)
}
  0x5b   : > { %3519 = dma.hbm_to_vmem [thread:$0]  (!%p3964_p12), %s4701_s5, 256, %s361_s28, [#allocation6], %s3822_s30, %s3822_s30, %s3823_s23  }
  0x5c   : > { %s3824_s21 = smov [#allocation8]   ;;  %s3715_s16 = scalar_lea.hbm %s4702_s6, 256 }
  0x5d   : > { %s373_s24 = sshll.u32 %s3824_s21, 4  ;;  %p3716_p5 = scmp.ne.s32.totalorder %s4702_s6, %s3715_s16  ;;  %s374_s24 = int_to_ptr.vmem [resolvable:$true] %s373_s24 }
  0x5e   : > { %p3722_p3 = scmp.lt.u32.totalorder %s3715_s16, %s4702_s6 }
  0x5f   : > { %p3718_p10 = pnand %p3716_p5, %p3980_p0 }
  0x61   : > { %p3719_p2 = pneg %p3718_p10 }
  0x63   : > { %p3724_p4 = pnand %p3722_p3, %p3719_p2 }
  0x65   : > { %3727 = shalt.err (!%p3724_p4)
}
  0x66   : > { %s3728_s28 = scalar_lea.vmem %s374_s24, 256  ;;  %p3736_p13 = scmp.lt.s32.totalorder %s374_s24, %s374_s24 }
  0x67   : > { %p3729_p7 = scmp.ne.s32.totalorder %s374_s24, %s3728_s28  ;;  %p3737_p1 = scmp.lt.s32.totalorder %s3728_s28, %s3728_s28 }
  0x69   : > { %p3731_p8 = pnand %p3729_p7, %p3980_p0  ;;  %p3738_p6 = por %p3737_p1, %p3736_p13 }
  0x6b   : > { %p3732_p11 = pneg %p3731_p8 }
  0x6d   : > { %p3739_p9 = pnand %p3738_p6, %p3732_p11 }
  0x6f   : > { %3742 = shalt.err (!%p3739_p9)
}
  0x70   : > { %3522 = dma.hbm_to_vmem [thread:$0]  (!%p3964_p12), %s4702_s6, 256, %s374_s24, [#allocation9], %s3822_s30, %s3822_s30, %s3823_s23  }
  0x71   : > { %p4734_p5 = scmp.ne.s32.totalorder %s4731_s15, 0 }
  0x72   : > { %p4735_p0 = scmp.eq.s32.totalorder (!%p4734_p5), %s3926_s25, 0 }
  0x73   : > { %411 = sbr.rel (%p4734_p5) target bundleno = 3044 (0xbe4), region = 68 }
  0x7a   : > { %3788 = dma.done.wait (%p4735_p0), [#allocation3], 256   ;;  %p4736_p10 = pmov %p4735_p0 }
  0x7b   : > { %p4737_p2 = pmov %p4735_p0 }
  0x7c   : > { %3790 = vsyncadd (%p4736_p10), [#allocation3], 4294967040 }
  0x7d   : > { %3792 = dma.done.wait (%p4737_p2), [#allocation6], 512   ;;  %p4738_p3 = pmov %p4735_p0 }
  0x7e   : > { %p4739_p4 = pmov %p4735_p0 }
  0x7f   : > { %3794 = vsyncadd (%p4738_p3), [#allocation6], 4294966784 }
  0x80   : > { %3796 = dma.done.wait (%p4739_p4), [#allocation9], 256   ;;  %p4740_p12 = pmov %p4735_p0 }
  0x81   : > { %p464_p7 = scmp.lt.s32.totalorder %s3926_s25, 1  ;;  %vm474_vm0 = vcmask 261120   ;;  %v3588_v3 = vld [vmem:[%s4697_s1] sm:$0xff]   ;;  %v3825_v5 = vmov 0.0   ;;  %v3590_v6 = vld [vmem:[%s4697_s1 + $0x8] sm:$0xff]   ;;  %vm3826_vm1 = vmmov 0   ;;  %v677_v32 = vlaneseq }
  0x82   : > { %3798 = vsyncadd (%p4740_p12), [#allocation9], 4294967040  ;;  %v3589_v4 = vld [vmem:[#allocation2] sm:$0xff]   ;;  %3384 = vmatprep.subr.bf16.mxu1 %v3825_v5  ;;  %3400 = vmatprep.subr.bf16.mxu0 %v3825_v5  ;;  %v3591_v7 = vld [vmem:[#allocation2 + $0x8] sm:$0xff]   ;;  %s3827_s20 = smov 112   ;;  %s3828_s12 = smov 120  }
  0x83   : > { %s465_s14 = scalar_select %p464_p7, %s3926_s25, 1  ;;  %3385 = vmatpush3.bf16.msra.mxu1 %v3588_v3  ;;  %3401 = vmatpush3.bf16.msra.mxu0 %v3589_v4  ;;  %v3301_v12 = vld [vmem:[%s4704_s8] ss:$0 sm:$0xff]  ;;  %v3593_v17 = vld [vmem:[%s4698_s2 + $0x8] sm:$0xff]   ;;  %v3830_v30 = vmov 1966171168  }
  0x84   : > { %3386 = vmatprep.subr.bf16.mxu1 %v3825_v5  ;;  %3402 = vmatprep.subr.bf16.mxu0 %v3825_v5  ;;  %v3592_v15 = vld [vmem:[%s4698_s2] sm:$0xff]   ;;  %v808_v31 = vunpack.c.l.s4 %v3830_v30  ;;  %v4141_v35 = vshrl.u32 %v677_v32, 7  ;;  %v3831_v37 = vmov 1983009808   ;;  %v3832_v43 = vmov 1934713408  }
  0x85   : > { %s3300_s15 = sshll.u32 %s465_s14, 3  ;;  %3388 = vmatprep.mubr.msk.bf16.mxu1 %vm3826_vm1, %v3825_v5  ;;  %3404 = vmatprep.mubr.msk.bf16.mxu0 %vm3826_vm1, %v3825_v5  ;;  %s3829_s14 = smov 104   ;;  %v675_v38 = vunpack.c.l.s4 %v3831_v37  ;;  %v470_v41 = vld [vmem:[%s4706_s10] sm:$0xff]  ;;  %v707_v44 = vunpack.c.l.s4 %v3832_v43  ;;  %vm796_vm2 = vcmask 31744   ;;  %vm1769_vm3 = vcmask 1043456  }
  0x86   : > { %s4092_s23 = scalar_lea.vmem %s4696_s0, %s3300_s15  ;;  %v809_v34 = vunpack.c.0.s8 %v808_v31  ;;  %v806_v49 = vcombine.high %v470_v41, %v470_v41  ;;  %s3833_s30 = smov 124   ;;  %vm1765_vm4 = vcmask 64512   ;;  %vm2889_vm6 = vcmask 130048  }
  0x87   : > { %v469_v0 = vld [vmem:[%s4092_s23] sm:$0xff]  ;;  %3387 = vmatpush3.bf16.msra.mxu1 %v3590_v6  ;;  %3403 = vmatpush3.bf16.msra.mxu0 %v3591_v7  ;;  %v676_v42 = vunpack.c.0.s8 %v675_v38  ;;  %v708_v54 = vunpack.c.0.s8 %v707_v44  ;;  %v4167_v7 = vsub.s32 0, %v4141_v35  ;;  %s3834_s21 = smov 4   ;;  %s3836_s29 = smov 16   ;;  %vm2891_vm7 = vcmask 195584  }
  0x88   : > { %v473_v1 = vmul.f32 %v469_v0, %v469_v0  ;;  %3392 = vmatprep.subr.bf16.mxu1 %v3825_v5  ;;  %3414 = vmatprep.subr.bf16.mxu0 %v3825_v5  ;;  %v4144_v40 = vsub.s32 %v809_v34, %v4141_v35  ;;  %s3837_s16 = smov 8   ;;  %s3838_s19 = smov 24   ;;  %vm3127_vm8 = vcmask 523264  }
  0x89   : > { %v4151_v52 = vsub.s32 %v676_v42, %v4141_v35  ;;  %v4164_v6 = vsub.s32 %v708_v54, %v4141_v35  ;;  %v471_v54 = vld [vmem:[%s4707_s11] sm:$0xff]  ;;  %s3342_s13 = sshll.u32 %s3926_s25, 7  ;;  %s4742_s26 = sld [smem:[#allocation22_spill]] }
  0x8a   : > { %v475_v2 = vsel %vm474_vm0, %v473_v1, 0.0  ;;  %v813_v47 = vrot.slane %v470_v41, %v4144_v40  ;;  %v4156_v62 = vrot.slane %v806_v49, %v4144_v40  ;;  %s3839_s28 = smov [#allocation10]  }
  0x8b   : > { %476 = vadd.xlane.f32.xlu0 %v475_v2 }
  0x8c   : > { %v829_v56 = vrot.slane %v813_v47, %v4144_v40  ;;  %v821_v63 = vcombine.high %v813_v47, %v813_v47 }
  0x8f   : > { %s4653_s27 = scalar_lea.hbm %s4742_s26, %s3342_s13 }
 0x118   : > { %v477_v8 = vpop.xlane.xlu0 %476 }
 0x119   : > { %v479_v9 = vmul.f32 0.03125, %v477_v8  ;;  %v851_v8 = vcombine.high %v829_v56, %v829_v56 }
 0x11b   : > { %v480_v10 = vadd.f32 1e-05, %v479_v9 }
 0x11d   : > { %3606 = vrsqrt.f32 %v480_v10 }
 0x127   : > { %v3607_v11 = vpop.eup %3606 }
 0x128   : > { %v482_v13 = vmul.f32 %v3607_v11, %v469_v0 }
 0x12a   : > { %v489_v14 = vmul.f32 %v3301_v12, %v482_v13 }
 0x12c   : > { %v490_v16 = vpack.c.bf16 %v489_v14, %v489_v14  ;;  %v4173_v14 = vrot.slane %v4156_v62, %v4144_v40 }
 0x12e   : > { %3389 = vmatmul.mubr.msk.bf16.vlgmr.msra.gmra.mrb[0].mxu1 %vm474_vm0, %v490_v16  ;;  %3405 = vmatmul.mubr.msk.bf16.vlgmr.msra.gmra.mrb[0].mxu0 %vm474_vm0, %v490_v16 }
 0x12f   : > { %3393 = vmatpush3.bf16.msra.mxu1 %v3592_v15  ;;  %3396 = vmatprep.mubr.msk.bf16.mxu1 %vm3826_vm1, %v3825_v5  ;;  %v4176_v15 = vrot.slane %v821_v63, %v4144_v40 }
 0x130   : > { %3394 = vmatprep.subr.bf16.mxu1 %v3825_v5  ;;  %3416 = vmatprep.mubr.msk.bf16.mxu0 %vm3826_vm1, %v3825_v5 }
 0x133   : > { %3395 = vmatpush3.bf16.msra.mxu1 %v3593_v17 }
 0x134   : > { %3408 = vmatprep.subr.bf16.mxu1 %v3825_v5 }
 0x136   : > { %3397 = vmatmul.mubr.msk.bf16.vlgmr.msra.gmra.mrb[4].mxu1 %vm474_vm0, %v490_v16 }
 0x137   : > { %3410 = vmatprep.mubr.msk.bf16.mxu1 %vm3826_vm1, %v3825_v5 }
 0x201   : > { %v544_v18 = vpop.f32.mrb[0].mxu1  ;;  %v4132_v19 = vpop.f32.mrb[0].mxu0 }
 0x202   : > { %v3390_v20 = vpop.f32.mrb[1].mxu1  ;;  %v3406_v21 = vpop.f32.mrb[1].mxu0 }
 0x203   : > { %v547_v22 = vpop.f32.mrb[2].mxu1  ;;  %v659_v23 = vpop.f32.mrb[2].mxu0  ;;  %v4182_v21 = vrot.slane %v829_v56, %v4167_v7 }
 0x204   : > { %v3391_v24 = vpop.f32.mrb[3].mxu1  ;;  %v3407_v25 = vpop.f32.mrb[3].mxu0  ;;  %v4185_v22 = vrot.slane %v851_v8, %v4167_v7  ;;  %v4189_v23 = vrot.slane %v4173_v14, %v4167_v7 }
 0x209   : > { %v600_v26 = vpop.f32.mrb[4].mxu1 }
 0x20a   : > { %1029 = vrot.lane.b32.xlu1 %v600_v26, %s3827_s20  ;;  %1026 = vrot.lane.b32.xlu0 %v600_v26, %s3828_s12  ;;  %v3398_v27 = vpop.f32.mrb[5].mxu1 }
 0x20b   : > { %v603_v28 = vpop.f32.mrb[6].mxu1 }
 0x20c   : > { %v3399_v29 = vpop.f32.mrb[7].mxu1 }
 0x20e   : > { %1032 = vrot.lane.b32.xlu1 %v600_v26, %s3829_s14  ;;  %666 = vrot.lane.b32.xlu0 %v544_v18, %s3827_s20 }
 0x212   : > { %663 = vrot.lane.b32.xlu1 %v544_v18, %s3828_s12 }
 0x216   : > { %669 = vrot.lane.b32.xlu1 %v544_v18, %s3829_s14 }
 0x27c   : > { %v1030_v33 = vpop.permute.xlu1 %1029  ;;  %v1027_v36 = vpop.permute.xlu0 %1026 }
 0x27d   : > { %v1035_v53 = vcombine.low %v600_v26, %v1030_v33  ;;  %v1036_v60 = vcombine.high %v600_v26, %v1030_v33  ;;  %v4195_v26 = vrot.slane %v4176_v15, %v4167_v7 }
 0x27f   : > { %v1043_v4 = vrot.slane %v1035_v53, %v4151_v52  ;;  %v1050_v13 = vrot.slane %v1036_v60, %v4151_v52 }
 0x280   : > { %v1033_v39 = vpop.permute.xlu1 %1032  ;;  %v667_v45 = vpop.permute.xlu0 %666 }
 0x281   : > { %v1051_v48 = vcombine.low %v1027_v36, %v1033_v39  ;;  %v672_v50 = vcombine.low %v544_v18, %v667_v45  ;;  %v673_v51 = vcombine.high %v544_v18, %v667_v45  ;;  %v1052_v57 = vcombine.high %v1027_v36, %v1033_v39 }
 0x283   : > { %v1059_v61 = vrot.slane %v1051_v48, %v4151_v52  ;;  %v680_v0 = vrot.slane %v672_v50, %v4151_v52  ;;  %v687_v1 = vrot.slane %v673_v51, %v4151_v52  ;;  %v1066_v9 = vrot.slane %v1052_v57, %v4151_v52 }
 0x284   : > { %v664_v46 = vpop.permute.xlu1 %663  ;;  %v911_v57 = vrot.slane %v471_v54, %v4144_v40 }
 0x285   : > { %v1067_v16 = vcombine.low %v1043_v4, %v1059_v61  ;;  %v1083_v24 = vcombine.low %v1050_v13, %v1066_v9  ;;  %v1068_v30 = vcombine.high %v1043_v4, %v1059_v61  ;;  %v1084_v34 = vcombine.high %v1050_v13, %v1066_v9 }
 0x286   : > { %v927_v60 = vrot.slane %v911_v57, %v4144_v40  ;;  %v904_v61 = vcombine.high %v471_v54, %v471_v54  ;;  %v919_v54 = vcombine.high %v911_v57, %v911_v57 }
 0x287   : > { %v4208_v31 = vrot.slane %v1067_v16, %v4164_v6  ;;  %v4214_v36 = vrot.slane %v1083_v24, %v4164_v6  ;;  %v4220_v37 = vrot.slane %v1068_v30, %v4164_v6  ;;  %v4223_v38 = vrot.slane %v1084_v34, %v4164_v6 }
 0x288   : > { %v670_v55 = vpop.permute.xlu1 %669  ;;  %v941_v57 = vrot.slane %v919_v54, %v4144_v40 }
 0x289   : > { %v688_v58 = vcombine.low %v664_v46, %v670_v55  ;;  %v689_v59 = vcombine.high %v664_v46, %v670_v55  ;;  %v4229_v39 = vcombine.high %v4214_v36, %v3825_v5  ;;  %v4237_v41 = vcombine.high %v4223_v38, %v3825_v5 }
 0x28a   : > { %v4245_v42 = vcombine.high %v4208_v31, %v3825_v5  ;;  %v4253_v43 = vcombine.high %v4220_v37, %v3825_v5  ;;  %v1167_v13 = vmul.f32 %v4208_v31, %v4182_v21  ;;  %v1169_v24 = vmul.f32 %v4220_v37, %v4185_v22 }
 0x28b   : > { %v696_v2 = vrot.slane %v688_v58, %v4151_v52  ;;  %v703_v3 = vrot.slane %v689_v59, %v4151_v52 }
 0x28d   : > { %v704_v10 = vcombine.low %v680_v0, %v696_v2  ;;  %v705_v11 = vcombine.high %v680_v0, %v696_v2  ;;  %v720_v12 = vcombine.low %v687_v1, %v703_v3  ;;  %v721_v44 = vcombine.high %v687_v1, %v703_v3 }
 0x28e   : > { %v956_v1 = vrot.slane %v927_v60, %v4167_v7  ;;  %v949_v2 = vcombine.high %v927_v60, %v927_v60  ;;  %v918_v3 = vrot.slane %v904_v61, %v4144_v40  ;;  %v1171_v61 = vmul.f32 %v4214_v36, %v4189_v23 }
 0x28f   : > { %v712_v17 = vrot.slane %v704_v10, %v4164_v6  ;;  %v728_v18 = vrot.slane %v720_v12, %v4164_v6  ;;  %v719_v20 = vrot.slane %v705_v11, %v4164_v6  ;;  %v4268_v45 = vrot.slane %v721_v44, %v4164_v6 }
 0x290   : > { %v934_v9 = vrot.slane %v918_v3, %v4144_v40  ;;  %v4317_v12 = vrot.slane %v949_v2, %v4167_v7  ;;  %v920_v60 = vcombine.high %v918_v3, %v918_v3 }
 0x291   : > { %748 = vrot.lane.b32.xlu1 %v712_v17, %s3833_s30  ;;  %v736_v25 = vcombine.high %v712_v17, %v3825_v5  ;;  %v4198_v27 = vmul.f32 %v4182_v21, %v712_v17  ;;  %v4201_v28 = vmul.f32 %v4185_v22, %v719_v20  ;;  %v4204_v29 = vmul.f32 %v4189_v23, %v728_v18 }
 0x292   : > { %v4281_v46 = vcombine.high %v719_v20, %v3825_v5  ;;  %v4286_v47 = vcombine.high %v728_v18, %v3825_v5  ;;  %v4292_v48 = vcombine.high %v4268_v45, %v3825_v5  ;;  %v948_v23 = vrot.slane %v920_v60, %v4144_v40 }
 0x293   : > { %750 = vrot.lane.b32.xlu0 %v736_v25, %s3833_s30  ;;  %v4211_v33 = vmul.f32 %v4195_v26, %v736_v25 }
 0x295   : > { %1111 = vrot.lane.b32.xlu1 %v4208_v31, %s3833_s30 }
 0x297   : > { %756 = vrot.lane.b32.xlu0 %v728_v18, %s3833_s30 }
 0x299   : > { %1115 = vrot.lane.b32.xlu1 %v4220_v37, %s3833_s30 }
 0x29b   : > { %1121 = vrot.lane.b32.xlu0 %v4229_v39, %s3833_s30 }
 0x29d   : > { %1119 = vrot.lane.b32.xlu1 %v4214_v36, %s3833_s30 }
 0x29f   : > { %1125 = vrot.lane.b32.xlu0 %v4237_v41, %s3833_s30 }
 0x2a1   : > { %1123 = vrot.lane.b32.xlu1 %v4223_v38, %s3833_s30 }
 0x2a3   : > { %1137 = vrot.lane.b32.xlu0 %v4245_v42, %s3834_s21 }
 0x2a5   : > { %1135 = vrot.lane.b32.xlu1 %v4208_v31, %s3834_s21 }
 0x2a7   : > { %1141 = vrot.lane.b32.xlu0 %v4253_v43, %s3834_s21 }
 0x2a9   : > { %1139 = vrot.lane.b32.xlu1 %v4220_v37, %s3834_s21 }
 0x2ab   : > { %1145 = vrot.lane.b32.xlu0 %v4229_v39, %s3834_s21 }
 0x2ad   : > { %1143 = vrot.lane.b32.xlu1 %v4214_v36, %s3834_s21 }
 0x2af   : > { %1149 = vrot.lane.b32.xlu0 %v4237_v41, %s3834_s21 }
 0x2b1   : > { %1147 = vrot.lane.b32.xlu1 %v4223_v38, %s3834_s21 }
 0x2b3   : > { %760 = vrot.lane.b32.xlu0 %v4268_v45, %s3833_s30 }
 0x2b5   : > { %1113 = vrot.lane.b32.xlu1 %v4245_v42, %s3833_s30 }
 0x2b7   : > { %772 = vrot.lane.b32.xlu0 %v712_v17, %s3834_s21 }
 0x2b9   : > { %1117 = vrot.lane.b32.xlu1 %v4253_v43, %s3833_s30 }
 0x2bb   : > { %776 = vrot.lane.b32.xlu0 %v719_v20, %s3834_s21 }
 0x2bd   : > { %752 = vrot.lane.b32.xlu1 %v719_v20, %s3833_s30  ;;  %v4323_v20 = vrot.slane %v934_v9, %v4167_v7 }
 0x2bf   : > { %780 = vrot.lane.b32.xlu0 %v728_v18, %s3834_s21 }
 0x2c1   : > { %754 = vrot.lane.b32.xlu1 %v4281_v46, %s3833_s30 }
 0x2c5   : > { %758 = vrot.lane.b32.xlu1 %v4286_v47, %s3833_s30 }
 0x2c9   : > { %762 = vrot.lane.b32.xlu1 %v4292_v48, %s3833_s30  ;;  %s461_s30 = sand.u32 1, %s3809_s22  }
 0x2ca   : > { %s3299_s24 = sshll.u32 %s461_s30, 3  ;;  %s3174_s25 = scalar_lea.sflag [#allocation4], %s461_s30 }
 0x2cd   : > { %774 = vrot.lane.b32.xlu1 %v736_v25, %s3834_s21  ;;  %v852_v25 = vcombine.high %v4173_v14, %v4173_v14 }
 0x2cf   : > { %v4334_v22 = vrot.slane %v852_v25, %v4167_v7 }
 0x303   : > { %v4297_v49 = vpop.permute.xlu1 %748 }
 0x305   : > { %v4299_v50 = vpop.permute.xlu0 %750 }
 0x307   : > { %v1112_v51 = vpop.permute.xlu1 %1111 }
 0x309   : > { %v4301_v53 = vpop.permute.xlu0 %756 }
 0x30b   : > { %v1116_v55 = vpop.permute.xlu1 %1115 }
 0x30d   : > { %v4306_v56 = vpop.permute.xlu0 %1121 }
 0x30f   : > { %v1120_v58 = vpop.permute.xlu1 %1119 }
 0x311   : > { %v4309_v59 = vpop.permute.xlu0 %1125 }
 0x313   : > { %v1124_v63 = vpop.permute.xlu1 %1123 }
 0x315   : > { %v1138_v0 = vpop.permute.xlu0 %1137 }
 0x317   : > { %v1136_v4 = vpop.permute.xlu1 %1135 }
 0x318   : > { %v1159_v8 = vsel %vm796_vm2, %v1112_v51, %v1136_v4  ;;  %v950_v51 = vcombine.high %v934_v9, %v934_v9  ;;  %v1173_v9 = vmul.f32 %v4223_v38, %v4334_v22 }
 0x319   : > { %v1175_v10 = vmul.f32 %v1159_v8, %v956_v1  ;;  %v1142_v11 = vpop.permute.xlu0 %1141 }
 0x31a   : > { %v4338_v2 = vrot.slane %v950_v51, %v4167_v7  ;;  %v4363_v51 = vrot.slane %v948_v23, %v4167_v7 }
 0x31b   : > { %v1140_v16 = vpop.permute.xlu1 %1139  ;;  %v1183_v17 = vadd.f32 %v1175_v10, %v1167_v13  ;;  %v853_v10 = vcombine.high %v4176_v15, %v4176_v15  ;;  %v1168_v15 = vmul.f32 %v4245_v42, %v4195_v26 }
 0x31c   : > { %v1161_v18 = vsel %vm796_vm2, %v1116_v55, %v1140_v16 }
 0x31d   : > { %v1177_v30 = vmul.f32 %v1161_v18, %v4317_v12  ;;  %v1146_v34 = vpop.permute.xlu0 %1145  ;;  %v1191_v44 = vpack.c.bf16 %v1183_v17, %v1183_v17  ;;  %v4353_v17 = vrot.slane %v941_v57, %v4167_v7 }
 0x31f   : > { %v1144_v21 = vpop.permute.xlu1 %1143  ;;  %1347 = vxpose.xlu0.c.b16.start.end [1/1] (short) (narrow) %v1191_v44, 16  ;;  %v1185_v31 = vadd.f32 %v1177_v30, %v1169_v24  ;;  %v951_v24 = vcombine.high %v941_v57, %v941_v57  ;;  %v952_v30 = vcombine.high %v948_v23, %v948_v23  ;;  %v4360_v44 = vrot.slane %v853_v10, %v4167_v7 }
 0x320   : > { %v1163_v55 = vsel %vm796_vm2, %v1120_v58, %v1144_v21  ;;  %v822_v58 = vcombine.high %v4156_v62, %v4156_v62 }
 0x321   : > { %v1179_v14 = vmul.f32 %v1163_v55, %v4323_v20  ;;  %v1150_v37 = vpop.permute.xlu0 %1149  ;;  %v1193_v4 = vpack.c.bf16 %v1185_v31, %v1185_v31  ;;  %v4367_v31 = vrot.slane %v951_v24, %v4167_v7 }
 0x323   : > { %v1148_v8 = vpop.permute.xlu1 %1147  ;;  %1379 = vxpose.xlu0.c.b16.start.end [1/1] (short) (narrow) %v1193_v4, 16  ;;  %v1187_v3 = vadd.f32 %v1179_v14, %v1171_v61  ;;  %v4377_v4 = vrot.slane %v952_v30, %v4167_v7 }
 0x324   : > { %v1165_v36 = vsel %vm796_vm2, %v1124_v63, %v1148_v8  ;;  %v850_v63 = vrot.slane %v822_v58, %v4144_v40  ;;  %v1164_v40 = vsel %vm796_vm2, %v4306_v56, %v1146_v34  ;;  %v1170_v8 = vmul.f32 %v4253_v43, %v4360_v44 }
 0x325   : > { %v1181_v13 = vmul.f32 %v1165_v36, %v4338_v2  ;;  %v4350_v16 = vpop.permute.xlu0 %760  ;;  %v1195_v18 = vpack.c.bf16 %v1187_v3, %v1187_v3  ;;  %v1180_v56 = vmul.f32 %v1164_v40, %v4363_v51  ;;  %v1166_v58 = vsel %vm796_vm2, %v4309_v59, %v1150_v37 }
 0x326   : > { %v4374_v61 = vrot.slane %v850_v63, %v4167_v7  ;;  %v854_v14 = vcombine.high %v850_v63, %v850_v63 }
 0x327   : > { %v1114_v62 = vpop.permute.xlu1 %1113  ;;  %1411 = vxpose.xlu1.c.b16.start.end [1/1] (short) (narrow) %v1195_v18, 16  ;;  %v1189_v25 = vadd.f32 %v1181_v13, %v1173_v9 }
 0x328   : > { %v1160_v38 = vsel %vm796_vm2, %v1114_v62, %v1138_v0  ;;  %v4390_v9 = vrot.slane %v854_v14, %v4167_v7 }
 0x329   : > { %v1176_v54 = vmul.f32 %v1160_v38, %v4353_v17  ;;  %v773_v21 = vpop.permute.xlu0 %772  ;;  %v1197_v60 = vpack.c.bf16 %v1189_v25, %v1189_v25 }
 0x32a   : > { %v797_v0 = vsel %vm796_vm2, %v4297_v49, %v773_v21  ;;  %v1174_v7 = vmul.f32 %v4237_v41, %v4390_v9 }
 0x32b   : > { %v993_v26 = vmul.f32 %v956_v1, %v797_v0  ;;  %v1118_v42 = vpop.permute.xlu1 %1117  ;;  %1443 = vxpose.xlu1.c.b16.start.end [1/1] (short) (narrow) %v1197_v60, 16  ;;  %v1184_v55 = vadd.f32 %v1176_v54, %v1168_v15 }
 0x32c   : > { %v1162_v57 = vsel %vm796_vm2, %v1118_v42, %v1142_v11  ;;  %v1172_v11 = vmul.f32 %v4229_v39, %v4374_v61 }
 0x32d   : > { %v1001_v49 = vadd.f32 %v993_v26, %v4198_v27  ;;  %v1178_v1 = vmul.f32 %v1162_v57, %v4367_v31  ;;  %v777_v34 = vpop.permute.xlu0 %776  ;;  %v1192_v3 = vpack.c.bf16 %v1184_v55, %v1184_v55  ;;  %v1182_v27 = vmul.f32 %v1166_v58, %v4377_v4 }
 0x32e   : > { %v1188_v24 = vadd.f32 %v1180_v56, %v1172_v11 }
 0x32f   : > { %v753_v23 = vpop.permute.xlu1 %752  ;;  %1363 = vxpose.xlu1.c.b16.start.end [1/1] (short) (narrow) %v1192_v3, 16  ;;  %v1186_v36 = vadd.f32 %v1178_v1, %v1170_v8  ;;  %v1190_v63 = vadd.f32 %v1182_v27, %v1174_v7  ;;  %v4406_v30 = vmul.f32 0.35355338, %v1001_v49 }
 0x330   : > { %v799_v43 = vsel %vm796_vm2, %v753_v23, %v777_v34  ;;  %v1196_v25 = vpack.c.bf16 %v1188_v24, %v1188_v24 }
 0x331   : > { %v995_v10 = vmul.f32 %v4317_v12, %v799_v43  ;;  %v781_v13 = vpop.permute.xlu0 %780  ;;  %v1194_v18 = vpack.c.bf16 %v1186_v36, %v1186_v36  ;;  %v1198_v38 = vpack.c.bf16 %v1190_v63, %v1190_v63  ;;  %v900_v63 = vmul.f32 %v4374_v61, %v4286_v47 }
 0x332   : > { %v801_v59 = vsel %vm796_vm2, %v4301_v53, %v781_v13 }
 0x333   : > { %v4398_v37 = vadd.f32 %v995_v10, %v4201_v28  ;;  %v997_v39 = vmul.f32 %v4323_v20, %v801_v59  ;;  %v755_v62 = vpop.permute.xlu1 %754  ;;  %778 = vrot.lane.b32.xlu1 %v4281_v46, %s3834_s21  ;;  %1395 = vxpose.xlu0.c.b16.start.end [1/1] (short) (narrow) %v1194_v18, 16 }
 0x335   : > { %v1005_v12 = vadd.f32 %v997_v39, %v4204_v29 }
 0x337   : > { %v4408_v53 = vmul.f32 0.35355338, %v1005_v12  ;;  %v759_v28 = vpop.permute.xlu1 %758  ;;  %782 = vrot.lane.b32.xlu1 %v4286_v47, %s3834_s21  ;;  %1427 = vxpose.xlu0.c.b16.start.end [1/1] (short) (narrow) %v1196_v25, 16 }
 0x339   : > { %v3311_v20 = vpack.c.bf16 %v4408_v53, %v4406_v30 }
 0x33b   : > { %v763_v15 = vpop.permute.xlu1 %762  ;;  %786 = vrot.lane.b32.xlu1 %v4292_v48, %s3834_s21  ;;  %1459 = vxpose.xlu0.c.b16.start.end [1/1] (short) (narrow) %v1198_v38, 16 }
 0x33f   : > { %v775_v29 = vpop.permute.xlu1 %774 }
 0x340   : > { %v798_v41 = vsel %vm796_vm2, %v4299_v50, %v775_v29  ;;  %v3835_v29 = vmov 0  }
 0x341   : > { %v994_v54 = vmul.f32 %v4353_v17, %v798_v41 }
 0x343   : > { %v1002_v21 = vadd.f32 %v994_v54, %v4211_v33 }
 0x344   : > { %784 = vrot.lane.b32.xlu0 %v4268_v45, %s3834_s21  ;;  %s4741_s21 = sld [smem:[#allocation20_spill]] }
 0x34a   : > { %p4743_p11 = scmp.ne.s32.totalorder %s4741_s21, 0 }
 0x385   : > { %v1355_v60 = vpop.trf.xlu0 }
 0x389   : > { %v1387_v0 = vpop.trf.xlu0 }
 0x38d   : > { %v1419_v40 = vpop.trf.xlu1 }
 0x38e   : > { %v1475_v55 = vcombine.low %v1355_v60, %v1419_v40 }
 0x390   : > { %v1482_v56 = vrot.slane %v1475_v55, %v4151_v52 }
 0x391   : > { %v1451_v26 = vpop.trf.xlu1 }
 0x392   : > { %v1483_v14 = vcombine.low %v1387_v0, %v1451_v26 }
 0x394   : > { %v1490_v50 = vrot.slane %v1483_v14, %v4151_v52 }
 0x395   : > { %v1371_v57 = vpop.trf.xlu1 }
 0x396   : > { %v1491_v33 = vcombine.low %v1482_v56, %v1490_v50  ;;  %v1492_v34 = vcombine.high %v1482_v56, %v1490_v50 }
 0x398   : > { %v1499_v43 = vrot.slane %v1491_v33, %v4164_v6  ;;  %v1506_v27 = vrot.slane %v1492_v34, %v4164_v6 }
 0x399   : > { %v1403_v42 = vpop.trf.xlu0 }
 0x39a   : > { %v1547_v54 = vshrl.u32 %v1499_v43, 16 }
 0x39d   : > { %v1435_v8 = vpop.trf.xlu0 }
 0x39e   : > { %v1509_v49 = vcombine.low %v1371_v57, %v1435_v8 }
 0x3a0   : > { %v1516_v3 = vrot.slane %v1509_v49, %v4151_v52 }
 0x3a1   : > { %v1467_v17 = vpop.trf.xlu0 }
 0x3a2   : > { %v1517_v1 = vcombine.low %v1403_v42, %v1467_v17  ;;  %v1010_v42 = vmul.f32 0.35355338, %v1002_v21 }
 0x3a4   : > { %v1524_v58 = vrot.slane %v1517_v1, %v4151_v52 }
 0x3a5   : > { %v779_v23 = vpop.permute.xlu1 %778 }
 0x3a6   : > { %v1525_v36 = vcombine.low %v1516_v3, %v1524_v58  ;;  %v1526_v11 = vcombine.high %v1516_v3, %v1524_v58  ;;  %v800_v18 = vsel %vm796_vm2, %v755_v62, %v779_v23  ;;  %v1507_v62 = vcombine.high %v1499_v43, %v3835_v29 }
 0x3a7   : > { %v996_v25 = vmul.f32 %v4367_v31, %v800_v18  ;;  %v902_v31 = vmul.f32 %v4390_v9, %v4292_v48  ;;  %v901_v23 = vmul.f32 %v4334_v22, %v4268_v45  ;;  %v1292_v45 = vrot.slane %v3311_v20, %v4151_v52 }
 0x3a8   : > { %v1533_v10 = vrot.slane %v1525_v36, %v4164_v6  ;;  %v1540_v13 = vrot.slane %v1526_v11, %v4164_v6  ;;  %v1555_v17 = vshrl.u32 %v1507_v62, 16 }
 0x3a9   : > { %v783_v24 = vpop.permute.xlu1 %782 }
 0x3aa   : > { %v802_v59 = vsel %vm796_vm2, %v759_v28, %v783_v24  ;;  %v1561_v39 = vpack.i.b16 %v1540_v13, %v1506_v27  ;;  %v1545_v7 = vpack.i.b16 %v1533_v10, %v1499_v43  ;;  %v1548_v12 = vshrl.u32 %v1533_v10, 16 }
 0x3ab   : > { %v998_v38 = vmul.f32 %v4363_v51, %v802_v59  ;;  %v1541_v41 = vcombine.high %v1533_v10, %v3835_v29  ;;  %v898_v28 = vmul.f32 %v4360_v44, %v4281_v46  ;;  %v1542_v47 = vcombine.high %v1540_v13, %v3835_v29 }
 0x3ac   : > { %1639 = vxpose.xlu1.c.b16.start.end [1/1] (short) (narrow) %v1561_v39, 16  ;;  %1575 = vxpose.xlu0.c.b16.start.end [1/1] (short) (narrow) %v1545_v7, 16  ;;  %v1549_v61 = vpack.i.b16 %v1548_v12, %v1547_v54  ;;  %v1564_v26 = vshrl.u32 %v1540_v13, 16  ;;  %v1508_v46 = vcombine.high %v1506_v27, %v3835_v29  ;;  %v1563_v44 = vshrl.u32 %v1506_v27, 16 }
 0x3ad   : > { %v1006_v60 = vadd.f32 %v998_v38, %v900_v63  ;;  %v787_v40 = vpop.permute.xlu1 %786  ;;  %v1553_v0 = vpack.i.b16 %v1541_v41, %v1507_v62  ;;  %v1004_v55 = vadd.f32 %v996_v25, %v898_v28  ;;  %v1556_v50 = vshrl.u32 %v1541_v41, 16 }
 0x3ae   : > { %v804_v51 = vsel %vm796_vm2, %v763_v15, %v787_v40  ;;  %v1569_v9 = vpack.i.b16 %v1542_v47, %v1508_v46  ;;  %v1565_v56 = vpack.i.b16 %v1564_v26, %v1563_v44  ;;  %v1572_v34 = vshrl.u32 %v1542_v47, 16 }
 0x3af   : > { %v1014_v14 = vmul.f32 0.35355338, %v1006_v60  ;;  %v1000_v57 = vmul.f32 %v4377_v4, %v804_v51  ;;  %v1012_v49 = vmul.f32 0.35355338, %v1004_v55  ;;  %v1557_v33 = vpack.i.b16 %v1556_v50, %v1555_v17 }
 0x3b0   : > { %1591 = vxpose.xlu1.c.b16.start.end [1/1] (short) (narrow) %v1549_v61, 16  ;;  %1607 = vxpose.xlu0.c.b16.start.end [1/1] (short) (narrow) %v1553_v0, 16  ;;  %v1571_v11 = vshrl.u32 %v1508_v46, 16  ;;  %v1011_v13 = vmul.f32 0.35355338, %v4398_v37 }
 0x3b1   : > { %v3313_v8 = vpack.c.bf16 %v1014_v14, %v1010_v42  ;;  %v1008_v48 = vadd.f32 %v1000_v57, %v902_v31 }
 0x3b2   : > { %v1573_v10 = vpack.i.b16 %v1572_v34, %v1571_v11 }
 0x3b3   : > { %v1016_v15 = vmul.f32 0.35355338, %v1008_v48  ;;  %v1317_v4 = vrot.slane %v3313_v8, %v4151_v52 }
 0x3b4   : > { %1671 = vxpose.xlu1.c.b16.start.end [1/1] (short) (narrow) %v1569_v9, 16  ;;  %1655 = vxpose.xlu0.c.b16.start.end [1/1] (short) (narrow) %v1565_v56, 16 }
 0x3b5   : > { %v3314_v21 = vpack.c.bf16 %v1016_v15, %v1012_v49 }
 0x3b6   : > { %v785_v1 = vpop.permute.xlu0 %784 }
 0x3b7   : > { %v1325_v3 = vrot.slane %v3314_v21, %v4151_v52  ;;  %v803_v58 = vsel %vm796_vm2, %v4350_v16, %v785_v1 }
 0x3b8   : > { %v999_v36 = vmul.f32 %v4338_v2, %v803_v58  ;;  %1200 = vrot.lane.b32.xlu1 %v4132_v19, %s3828_s12  ;;  %1623 = vxpose.xlu0.c.b16.start.end [1/1] (short) (narrow) %v1557_v33, 16 }
 0x3b9   : > { %v1326_v43 = vcombine.low %v1317_v4, %v1325_v3 }
 0x3ba   : > { %v1007_v27 = vadd.f32 %v999_v36, %v901_v23 }
 0x3bb   : > { %v1333_v22 = vrot.slane %v1326_v43, %v4164_v6 }
 0x3bc   : > { %v1015_v18 = vmul.f32 0.35355338, %v1007_v27  ;;  %1206 = vrot.lane.b32.xlu1 %v4132_v19, %s3829_s14  ;;  %1687 = vxpose.xlu0.c.b16.start.end [1/1] (short) (narrow) %v1573_v10, 16 }
 0x3bd   : > { %v4466_v37 = vcombine.high %v1333_v22, %v3835_v29  ;;  %v1339_v12 = vshrl.u32 %v1333_v22, 16 }
 0x3be   : > { %v3312_v16 = vpack.c.bf16 %v1015_v18, %v1011_v13 }
 0x3bf   : > { %v1345_v63 = vshrl.u32 %v4466_v37, 16 }
 0x3c0   : > { %v1300_v2 = vrot.slane %v3312_v16, %v4151_v52 }
 0x3c2   : > { %v1301_v24 = vcombine.low %v1292_v45, %v1300_v2 }
 0x3c4   : > { %v1308_v59 = vrot.slane %v1301_v24, %v4164_v6 }
 0x3c5   : > { %1203 = vrot.lane.b32.xlu0 %v4132_v19, %s3827_s20  ;;  %s3747_s20 = sshll.u32 %s3839_s28, 4  ;;  %s3748_s20 = int_to_ptr.vmem [resolvable:$false] %s3747_s20 }
 0x3c6   : > { %v1337_v39 = vpack.i.b16 %v1333_v22, %v1308_v59  ;;  %v1338_v7 = vshrl.u32 %v1308_v59, 16  ;;  %v1309_v25 = vcombine.high %v1308_v59, %v3835_v29  ;;  %v1954_v22 = vand.u32 127, %v677_v32  ;;  %s3749_s12 = scalar_lea.vmem %s3748_s20, 256 }
 0x3c8   : > { %v1340_v30 = vpack.i.b16 %v1339_v12, %v1338_v7  ;;  %v1343_v53 = vpack.i.b16 %v4466_v37, %v1309_v25  ;;  %v1344_v20 = vshrl.u32 %v1309_v25, 16  ;;  %vm1955_vm5 = vcmp.ge.s32.totalorder %v4141_v35, %v1954_v22 }
 0x3ca   : > { %v1346_v38 = vpack.i.b16 %v1345_v63, %v1344_v20 }
 0x412   : > { %v1647_v41 = vpop.trf.xlu1  ;;  %v1583_v54 = vpop.trf.xlu0 }
 0x413   : > { %v1703_v47 = vcombine.low %v1583_v54, %v1647_v41 }
 0x415   : > { %v1710_v0 = vrot.slane %v1703_v47, %v4151_v52 }
 0x416   : > { %v1599_v62 = vpop.trf.xlu1  ;;  %v1615_v28 = vpop.trf.xlu0 }
 0x41a   : > { %v1679_v60 = vpop.trf.xlu1  ;;  %v1663_v31 = vpop.trf.xlu0 }
 0x41b   : > { %v1711_v40 = vcombine.low %v1615_v28, %v1679_v60  ;;  %v1728_v26 = vcombine.low %v1599_v62, %v1663_v31 }
 0x41d   : > { %v1718_v51 = vrot.slane %v1711_v40, %v4151_v52  ;;  %v1735_v57 = vrot.slane %v1728_v26, %v4151_v52 }
 0x41e   : > { %v1631_v61 = vpop.trf.xlu0 }
 0x41f   : > { %v1719_v42 = vcombine.low %v1710_v0, %v1718_v51 }
 0x421   : > { %v1726_v44 = vrot.slane %v1719_v42, %v4164_v6 }
 0x422   : > { %v1695_v55 = vpop.trf.xlu0 }
 0x423   : > { %v1736_v14 = vcombine.low %v1631_v61, %v1695_v55  ;;  %v1727_v9 = vcombine.high %v1726_v44, %v3835_v29  ;;  %v1756_v50 = vshrl.u32 %v1726_v44, 16 }
 0x425   : > { %v1743_v46 = vrot.slane %v1736_v14, %v4151_v52  ;;  %v1762_v4 = vshrl.u32 %v1727_v9, 16 }
 0x427   : > { %v1744_v8 = vcombine.low %v1735_v57, %v1743_v46 }
 0x429   : > { %v1751_v48 = vrot.slane %v1744_v8, %v4164_v6 }
 0x42a   : > { %v4481_v17 = vpop.permute.xlu1 %1200 }
 0x42b   : > { %v1755_v56 = vpack.i.b16 %v1751_v48, %v1726_v44  ;;  %v1757_v49 = vshrl.u32 %v1751_v48, 16  ;;  %v1752_v15 = vcombine.high %v1751_v48, %v3835_v29 }
 0x42d   : > { %v1771_v21 = vsel %vm1769_vm3, %v1755_v56, 0  ;;  %v1758_v1 = vpack.i.b16 %v1757_v49, %v1756_v50  ;;  %v1761_v33 = vpack.i.b16 %v1752_v15, %v1727_v9  ;;  %v1763_v34 = vshrl.u32 %v1752_v15, 16 }
 0x42e   : > { %3409 = vmatpush3.bf16.msra.mxu1 %v1771_v21  ;;  %v1207_v36 = vpop.permute.xlu1 %1206 }
 0x42f   : > { %v1817_v3 = vsel %vm1769_vm3, %v1758_v1, 0  ;;  %3420 = vmatprep.subr.bf16.mxu1 %v3825_v5  ;;  %v1764_v58 = vpack.i.b16 %v1763_v34, %v1762_v4  ;;  %v1863_v23 = vsel %vm1769_vm3, %v1761_v33, 0  ;;  %v1226_v43 = vcombine.high %v4481_v17, %v1207_v36 }
 0x430   : > { %3415 = vmatpush3.bf16.msra.mxu0 %v1817_v3  ;;  %v1225_v47 = vcombine.low %v4481_v17, %v1207_v36 }
 0x431   : > { %3411 = vmatmul.mubr.msk.bf16.vlgmr.msra.gmra.mrb[8].mxu1 %vm1765_vm4, %v1337_v39  ;;  %3426 = vmatprep.subr.bf16.mxu0 %v3825_v5  ;;  %v1909_v11 = vsel %vm1769_vm3, %v1764_v58, 0  ;;  %v1240_v13 = vrot.slane %v1226_v43, %v4151_v52 }
 0x432   : > { %3421 = vmatpush3.bf16.msra.mxu1 %v1863_v23  ;;  %3422 = vmatprep.mubr.msk.bf16.mxu1 %vm3826_vm1, %v3825_v5  ;;  %v1233_v61 = vrot.slane %v1225_v47, %v4151_v52 }
 0x433   : > { %3417 = vmatmul.mubr.msk.bf16.vlgmr.msra.gmra.mrb[4].mxu0 %vm1765_vm4, %v1340_v30  ;;  %3432 = vmatprep.subr.bf16.mxu1 %v3825_v5 }
 0x434   : > { %3427 = vmatpush3.bf16.msra.mxu0 %v1909_v11  ;;  %3428 = vmatprep.mubr.msk.bf16.mxu0 %vm3826_vm1, %v3825_v5 }
 0x435   : > { %3438 = vmatprep.subr.bf16.mxu0 %v3825_v5 }
 0x437   : > { %v1204_v27 = vpop.permute.xlu0 %1203 }
 0x438   : > { %v1210_v10 = vcombine.high %v4132_v19, %v1204_v27  ;;  %v1209_v40 = vcombine.low %v4132_v19, %v1204_v27 }
 0x439   : > { %3423 = vmatmul.mubr.msk.bf16.vlgmr.msra.gmra.mrb[12].mxu1 %vm1765_vm4, %v1343_v53 }
 0x43a   : > { %v1224_v18 = vrot.slane %v1210_v10, %v4151_v52  ;;  %3434 = vmatprep.mubr.msk.bf16.mxu1 %vm3826_vm1, %v3825_v5  ;;  %v1217_v51 = vrot.slane %v1209_v40, %v4151_v52 }
 0x43b   : > { %3429 = vmatmul.mubr.msk.bf16.vlgmr.msra.gmra.mrb[8].mxu0 %vm1765_vm4, %v1346_v38 }
 0x43c   : > { %v1257_v16 = vcombine.low %v1224_v18, %v1240_v13  ;;  %v1258_v45 = vcombine.high %v1224_v18, %v1240_v13  ;;  %3440 = vmatprep.mubr.msk.bf16.mxu0 %vm3826_vm1, %v3825_v5  ;;  %v1241_v0 = vcombine.low %v1217_v51, %v1233_v61  ;;  %v1242_v8 = vcombine.high %v1217_v51, %v1233_v61 }
 0x43e   : > { %v1249_v26 = vrot.slane %v1241_v0, %v4164_v6  ;;  %v1256_v48 = vrot.slane %v1242_v8, %v4164_v6  ;;  %v1265_v56 = vrot.slane %v1257_v16, %v4164_v6  ;;  %v1272_v49 = vrot.slane %v1258_v45, %v4164_v6 }
 0x440   : > { %v1273_v42 = vcombine.high %v1249_v26, %v3825_v5  ;;  %v1277_v55 = vpack.c.bf16 %v1249_v26, %v1249_v26  ;;  %v1274_v9 = vcombine.high %v1256_v48, %v3825_v5  ;;  %v1275_v35 = vcombine.high %v1265_v56, %v3825_v5 }
 0x441   : > { %v1279_v15 = vpack.c.bf16 %v1256_v48, %v1256_v48  ;;  %v1276_v21 = vcombine.high %v1272_v49, %v3825_v5  ;;  %v1281_v1 = vpack.c.bf16 %v1265_v56, %v1265_v56  ;;  %v1283_v34 = vpack.c.bf16 %v1272_v49, %v1272_v49 }
 0x442   : > { %v1278_v14 = vpack.c.bf16 %v1273_v42, %v1273_v42  ;;  %v1280_v50 = vpack.c.bf16 %v1274_v9, %v1274_v9  ;;  %v1282_v17 = vpack.c.bf16 %v1275_v35, %v1275_v35 }
 0x443   : > { %v1284_v33 = vpack.c.bf16 %v1276_v21, %v1276_v21 }
 0x504   : > { %v1807_v2 = vpop.f32.mrb[8].mxu1 }
 0x505   : > { %v4511_v24 = vsel %vm1955_vm5, %v1807_v2, -1e+30  ;;  %v3412_v59 = vpop.f32.mrb[9].mxu1 }
 0x506   : > { %v1810_v37 = vpop.f32.mrb[10].mxu1  ;;  %v1853_v39 = vpop.f32.mrb[4].mxu0  ;;  %v1962_v7 = vsel %vm1765_vm4, %v4511_v24, -inf }
 0x507   : > { %v4517_v12 = vsel %vm1955_vm5, %v1853_v39, -1e+30  ;;  %v3418_v25 = vpop.f32.mrb[5].mxu0  ;;  %1963 = vmax.xlane.f32.xlu1 %v1962_v7  ;;  %v3413_v32 = vpop.f32.mrb[11].mxu1 }
 0x508   : > { %v1856_v30 = vpop.f32.mrb[6].mxu0  ;;  %v1965_v53 = vsel %vm1765_vm4, %v4517_v12, -inf }
 0x509   : > { %1966 = vmax.xlane.f32.xlu0 %v1965_v53  ;;  %v3419_v20 = vpop.f32.mrb[7].mxu0 }
 0x50c   : > { %v1899_v63 = vpop.f32.mrb[12].mxu1 }
 0x50d   : > { %v3424_v38 = vpop.f32.mrb[13].mxu1  ;;  %v4529_v57 = vsel %vm1955_vm5, %v1899_v63, -1e+30 }
 0x50e   : > { %v1902_v41 = vpop.f32.mrb[14].mxu1  ;;  %v1945_v54 = vpop.f32.mrb[8].mxu0  ;;  %v1968_v46 = vsel %vm1765_vm4, %v4529_v57, -inf }
 0x50f   : > { %v3425_v62 = vpop.f32.mrb[15].mxu1  ;;  %v3430_v28 = vpop.f32.mrb[9].mxu0  ;;  %v4533_v19 = vsel %vm1955_vm5, %v1945_v54, -1e+30 }
 0x510   : > { %v1948_v60 = vpop.f32.mrb[10].mxu0  ;;  %v1971_v44 = vsel %vm1765_vm4, %v4533_v19, -inf }
 0x511   : > { %v3431_v31 = vpop.f32.mrb[11].mxu0 }
 0x534   : > { %2010 = vxpose.xlu1.c.b16.start.end [1/1] (short) (narrow) %v1277_v55, 16 }
 0x536   : > { %2026 = vxpose.xlu0.c.b16.start.end [1/1] (short) (narrow) %v1278_v14, 16 }
 0x541   : > { %1969 = vmax.xlane.f32.xlu1 %v1968_v46 }
 0x543   : > { %1972 = vmax.xlane.f32.xlu0 %v1971_v44 }
 0x56e   : > { %2058 = vxpose.xlu1.c.b16.start.end [1/1] (short) (narrow) %v1280_v50, 16 }
 0x570   : > { %2042 = vxpose.xlu0.c.b16.start.end [1/1] (short) (narrow) %v1279_v15, 16 }
 0x572   : > { %2090 = vxpose.xlu1.c.b16.start.end [1/1] (short) (narrow) %v1282_v17, 16 }
 0x574   : > { %2074 = vxpose.xlu0.c.b16.start.end [1/1] (short) (narrow) %v1281_v1, 16 }
 0x576   : > { %2122 = vxpose.xlu1.c.b16.start.end [1/1] (short) (narrow) %v1284_v33, 16 }
 0x578   : > { %2106 = vxpose.xlu0.c.b16.start.end [1/1] (short) (narrow) %v1283_v34, 16 }
 0x594   : > { %v1964_v4 = vpop.xlane.xlu1 %1963 }
 0x595   : > { %v1974_v31 = vsub.f32 %v4511_v24, %v1964_v4 }
 0x596   : > { %v1967_v3 = vpop.xlane.xlu0 %1966 }
 0x597   : > { %v1975_v61 = vsub.f32 %v4517_v12, %v1967_v3  ;;  %v1978_v55 = vmul.f32 1.442695, %v1974_v31 }
 0x599   : > { %v1980_v8 = vmul.f32 1.442695, %v1975_v61  ;;  %3608 = vpow2.f32 %v1978_v55 }
 0x59a   : > { %v2018_v58 = vpop.trf.xlu1 }
 0x59b   : > { %3610 = vpow2.f32 %v1980_v8 }
 0x59c   : > { %v2034_v23 = vpop.trf.xlu0 }
 0x5a3   : > { %v3609_v35 = vpop.eup %3608 }
 0x5a4   : > { %v1986_v49 = vsel %vm1765_vm4, %v3609_v35, 0.0 }
 0x5ce   : > { %v1970_v36 = vpop.xlane.xlu1 %1969 }
 0x5cf   : > { %v1976_v14 = vsub.f32 %v4529_v57, %v1970_v36  ;;  %v3611_v57 = vpop.eup %3610 }
 0x5d0   : > { %v1973_v11 = vpop.xlane.xlu0 %1972 }
 0x5d1   : > { %v1977_v24 = vsub.f32 %v4533_v19, %v1973_v11  ;;  %v1982_v56 = vmul.f32 1.442695, %v1976_v14  ;;  %v1989_v19 = vsel %vm1765_vm4, %v3611_v57, 0.0 }
 0x5d3   : > { %v1984_v50 = vmul.f32 1.442695, %v1977_v24  ;;  %3612 = vpow2.f32 %v1982_v56 }
 0x5d4   : > { %v2066_v43 = vpop.trf.xlu1 }
 0x5d5   : > { %3614 = vpow2.f32 %v1984_v50 }
 0x5d6   : > { %v2050_v27 = vpop.trf.xlu0 }
 0x5d8   : > { %v2098_v10 = vpop.trf.xlu1 }
 0x5d9   : > { %v2172_v18 = vcombine.low %v2034_v23, %v2098_v10 }
 0x5da   : > { %v2082_v13 = vpop.trf.xlu0 }
 0x5db   : > { %v2138_v45 = vcombine.low %v2018_v58, %v2082_v13  ;;  %v2179_v59 = vrot.slane %v2172_v18, %v4151_v52 }
 0x5dc   : > { %v2130_v16 = vpop.trf.xlu1 }
 0x5dd   : > { %v2180_v22 = vcombine.low %v2066_v43, %v2130_v16  ;;  %v2145_v7 = vrot.slane %v2138_v45, %v4151_v52  ;;  %v3613_v15 = vpop.eup %3612 }
 0x5de   : > { %v2114_v2 = vpop.trf.xlu0  ;;  %v1992_v21 = vsel %vm1765_vm4, %v3613_v15, 0.0 }
 0x5df   : > { %v2187_v37 = vrot.slane %v2180_v22, %v4151_v52  ;;  %v2146_v39 = vcombine.low %v2050_v27, %v2114_v2  ;;  %v3615_v17 = vpop.eup %3614 }
 0x5e0   : > { %v1995_v1 = vsel %vm1765_vm4, %v3615_v17, 0.0 }
 0x5e1   : > { %v2188_v25 = vcombine.low %v2179_v59, %v2187_v37  ;;  %v2153_v32 = vrot.slane %v2146_v39, %v4151_v52  ;;  %v2189_v38 = vcombine.high %v2179_v59, %v2187_v37 }
 0x5e3   : > { %v2154_v30 = vcombine.low %v2145_v7, %v2153_v32  ;;  %v2196_v53 = vrot.slane %v2188_v25, %v4164_v6  ;;  %v2155_v20 = vcombine.high %v2145_v7, %v2153_v32  ;;  %v2203_v42 = vrot.slane %v2189_v38, %v4164_v6 }
 0x5e5   : > { %v2162_v63 = vrot.slane %v2154_v30, %v4164_v6  ;;  %v2211_v41 = vshrl.u32 %v2196_v53, 16  ;;  %v2204_v60 = vcombine.high %v2196_v53, %v3835_v29  ;;  %v2169_v51 = vrot.slane %v2155_v20, %v4164_v6 }
 0x5e6   : > { %v2227_v9 = vshrl.u32 %v2203_v42, 16  ;;  %v2205_v34 = vcombine.high %v2203_v42, %v3835_v29 }
 0x5e7   : > { %v2208_v54 = vpack.i.b16 %v2196_v53, %v2162_v63  ;;  %v2210_v62 = vshrl.u32 %v2162_v63, 16  ;;  %v2170_v28 = vcombine.high %v2162_v63, %v3835_v29  ;;  %v2219_v26 = vshrl.u32 %v2204_v60, 16 }
 0x5e8   : > { %v2226_v44 = vshrl.u32 %v2169_v51, 16  ;;  %v2224_v48 = vpack.i.b16 %v2203_v42, %v2169_v51  ;;  %v2171_v33 = vcombine.high %v2169_v51, %v3835_v29  ;;  %v2235_v58 = vshrl.u32 %v2205_v34, 16 }
 0x5e9   : > { %2238 = vxpose.xlu0.c.b16.start.end [1/1] (short) (narrow) %v2208_v54, 16  ;;  %v2212_v40 = vpack.i.b16 %v2211_v41, %v2210_v62  ;;  %v2218_v47 = vshrl.u32 %v2170_v28, 16  ;;  %v2216_v0 = vpack.i.b16 %v2204_v60, %v2170_v28 }
 0x5ea   : > { %v2228_v12 = vpack.i.b16 %v2227_v9, %v2226_v44  ;;  %v2234_v4 = vshrl.u32 %v2171_v33, 16  ;;  %v2232_v3 = vpack.i.b16 %v2205_v34, %v2171_v33 }
 0x5eb   : > { %2254 = vxpose.xlu1.c.b16.start.end [1/1] (short) (narrow) %v2212_v40, 16  ;;  %v2220_v46 = vpack.i.b16 %v2219_v26, %v2218_v47 }
 0x5ec   : > { %v2236_v23 = vpack.i.b16 %v2235_v58, %v2234_v4 }
 0x5ed   : > { %2270 = vxpose.xlu0.c.b16.start.end [1/1] (short) (narrow) %v2216_v0, 16 }
 0x5ef   : > { %2286 = vxpose.xlu1.c.b16.start.end [1/1] (short) (narrow) %v2220_v46, 16 }
 0x5f1   : > { %2302 = vxpose.xlu0.c.b16.start.end [1/1] (short) (narrow) %v2224_v48, 16 }
 0x5f3   : > { %2318 = vxpose.xlu1.c.b16.start.end [1/1] (short) (narrow) %v2228_v12, 16 }
 0x5fe   : > { %1987 = vadd.xlane.f32.xlu0 %v1986_v49 }
 0x600   : > { %1990 = vadd.xlane.f32.xlu1 %v1989_v19 }
 0x602   : > { %1993 = vadd.xlane.f32.xlu0 %v1992_v21 }
 0x604   : > { %1996 = vadd.xlane.f32.xlu1 %v1995_v1 }
 0x62f   : > { %2334 = vxpose.xlu0.c.b16.start.end [1/1] (short) (narrow) %v2232_v3, 16 }
 0x631   : > { %2350 = vxpose.xlu1.c.b16.start.end [1/1] (short) (narrow) %v2236_v23, 16 }
 0x64f   : > { %v2246_v36 = vpop.trf.xlu0 }
 0x651   : > { %v2262_v11 = vpop.trf.xlu1 }
 0x653   : > { %v2278_v43 = vpop.trf.xlu0 }
 0x655   : > { %v2294_v27 = vpop.trf.xlu1 }
 0x657   : > { %v2310_v10 = vpop.trf.xlu0 }
 0x658   : > { %v2366_v2 = vcombine.low %v2246_v36, %v2310_v10 }
 0x659   : > { %v2326_v13 = vpop.trf.xlu1 }
 0x65a   : > { %v2391_v39 = vcombine.low %v2262_v11, %v2326_v13  ;;  %v2373_v53 = vrot.slane %v2366_v2, %v4151_v52 }
 0x65c   : > { %v2398_v62 = vrot.slane %v2391_v39, %v4151_v52 }
 0x68b   : > { %v1988_v18 = vpop.xlane.xlu0 %1987 }
 0x68c   : > { %3616 = vrcp.f32 %v1988_v18 }
 0x68d   : > { %v1991_v16 = vpop.xlane.xlu1 %1990 }
 0x68e   : > { %3618 = vrcp.f32 %v1991_v16 }
 0x68f   : > { %v1994_v45 = vpop.xlane.xlu0 %1993 }
 0x690   : > { %3620 = vrcp.f32 %v1994_v45 }
 0x691   : > { %v1997_v22 = vpop.xlane.xlu1 %1996 }
 0x692   : > { %3622 = vrcp.f32 %v1997_v22 }
 0x695   : > { %v2342_v59 = vpop.trf.xlu0 }
 0x696   : > { %v3617_v37 = vpop.eup %3616  ;;  %v2374_v7 = vcombine.low %v2278_v43, %v2342_v59 }
 0x697   : > { %v2358_v25 = vpop.trf.xlu1  ;;  %v2002_v32 = vmul.f32 %v3617_v37, %v3609_v35 }
 0x698   : > { %v3619_v30 = vpop.eup %3618  ;;  %v2381_v20 = vrot.slane %v2374_v7, %v4151_v52  ;;  %v2399_v63 = vcombine.low %v2294_v27, %v2358_v25 }
 0x699   : > { %v2006_v38 = vpack.c.bf16 %v2002_v32, %v2002_v32  ;;  %v2003_v41 = vmul.f32 %v3619_v30, %v3611_v57 }
 0x69a   : > { %v3621_v54 = vpop.eup %3620  ;;  %v2382_v28 = vcombine.low %v2373_v53, %v2381_v20  ;;  %v2406_v60 = vrot.slane %v2399_v63, %v4151_v52 }
 0x69b   : > { %v2432_v31 = vsel %vm1765_vm4, %v2006_v38, 0  ;;  %v2007_v40 = vpack.c.bf16 %v2003_v41, %v2003_v41  ;;  %v2004_v47 = vmul.f32 %v3621_v54, %v3613_v15  ;;  %v3596_v38 = vld [vmem:[#allocation5] sm:$0xff]  }
 0x69c   : > { %v3623_v51 = vpop.eup %3622  ;;  %v2389_v61 = vrot.slane %v2382_v28, %v4164_v6  ;;  %v2407_v0 = vcombine.low %v2398_v62, %v2406_v60  ;;  %3433 = vmatpush3.bf16.xpose.msra.mxu1 %v2432_v31 }
 0x69d   : > { %v2478_v26 = vsel %vm1765_vm4, %v2007_v40, 0  ;;  %3444 = vmatprep.subr.bf16.mxu1 %v3825_v5  ;;  %v2005_v42 = vmul.f32 %v3623_v51, %v3615_v17  ;;  %v2008_v14 = vpack.c.bf16 %v2004_v47, %v2004_v47  ;;  %v3597_v51 = vld [vmem:[#allocation5 + $0x8] sm:$0xff]  }
 0x69e   : > { %v2414_v55 = vrot.slane %v2407_v0, %v4164_v6  ;;  %3439 = vmatpush3.bf16.xpose.msra.mxu0 %v2478_v26  ;;  %v2419_v46 = vshrl.u32 %v2389_v61, 16  ;;  %v2390_v12 = vcombine.high %v2389_v61, %v3835_v29 }
 0x69f   : > { %3450 = vmatprep.subr.bf16.mxu0 %v3825_v5  ;;  %v2009_v24 = vpack.c.bf16 %v2005_v42, %v2005_v42  ;;  %v2524_v56 = vsel %vm1765_vm4, %v2008_v14, 0 }
 0x6a0   : > { %v2418_v44 = vpack.i.b16 %v2414_v55, %v2389_v61  ;;  %v2420_v8 = vshrl.u32 %v2414_v55, 16  ;;  %v2415_v9 = vcombine.high %v2414_v55, %v3835_v29  ;;  %v2425_v57 = vshrl.u32 %v2390_v12, 16 }
 0x6a1   : > { %v2570_v50 = vsel %vm1765_vm4, %v2009_v24, 0 }
 0x6a2   : > { %v2421_v48 = vpack.i.b16 %v2420_v8, %v2419_v46  ;;  %v2426_v35 = vshrl.u32 %v2415_v9, 16  ;;  %v2424_v49 = vpack.i.b16 %v2415_v9, %v2390_v12 }
 0x6a3   : > { %3435 = vmatmul.mubr.msk.bf16.vlgmr.msra.gmra.mrb[16].mxu1 %vm1765_vm4, %v2418_v44 }
 0x6a4   : > { %3445 = vmatpush3.bf16.xpose.msra.mxu1 %v2524_v56  ;;  %3446 = vmatprep.mubr.msk.bf16.mxu1 %vm3826_vm1, %v3825_v5  ;;  %v2427_v15 = vpack.i.b16 %v2426_v35, %v2425_v57 }
 0x6a5   : > { %3441 = vmatmul.mubr.msk.bf16.vlgmr.msra.gmra.mrb[12].mxu0 %vm1765_vm4, %v2421_v48  ;;  %3456 = vmatprep.subr.bf16.mxu1 %v3825_v5 }
 0x6a6   : > { %3451 = vmatpush3.bf16.xpose.msra.mxu0 %v2570_v50  ;;  %3452 = vmatprep.mubr.msk.bf16.mxu0 %vm3826_vm1, %v3825_v5 }
 0x6a7   : > { %3464 = vmatprep.subr.bf16.mxu0 %v3825_v5 }
 0x6ab   : > { %3447 = vmatmul.mubr.msk.bf16.vlgmr.msra.gmra.mrb[20].mxu1 %vm1765_vm4, %v2424_v49 }
 0x6ac   : > { %3460 = vmatprep.mubr.msk.bf16.mxu1 %vm3826_vm1, %v3825_v5  ;;  %3457 = vmatpush3.bf16.msra.mxu1 %v3596_v38 }
 0x6ad   : > { %3453 = vmatmul.mubr.msk.bf16.vlgmr.msra.gmra.mrb[16].mxu0 %vm1765_vm4, %v2427_v15  ;;  %3458 = vmatprep.subr.bf16.mxu1 %v3825_v5 }
 0x6ae   : > { %3468 = vmatprep.mubr.msk.bf16.mxu0 %vm3826_vm1, %v3825_v5 }
 0x6b0   : > { %3459 = vmatpush3.bf16.msra.mxu1 %v3597_v51 }
 0x6b1   : > { %3472 = vmatprep.subr.bf16.mxu1 %v3825_v5 }
 0x776   : > { %v2468_v29 = vpop.f32.mrb[16].mxu1 }
 0x777   : > { %2612 = vxpose.xlu0.b32.start.end [1/1] (short) (narrow) %v2468_v29, 8  ;;  %v3436_v19 = vpop.f32.mrb[17].mxu1 }
 0x778   : > { %v2471_v17 = vpop.f32.mrb[18].mxu1  ;;  %v2514_v21 = vpop.f32.mrb[12].mxu0 }
 0x779   : > { %2644 = vxpose.xlu1.b32.start.end [1/1] (short) (narrow) %v2514_v21, 8  ;;  %v3437_v1 = vpop.f32.mrb[19].mxu1  ;;  %v3442_v33 = vpop.f32.mrb[13].mxu0  ;;  %v3630_v21 = vld [vmem:[%s4092_s23] sm:$0xff] }
 0x77a   : > { %v2517_v34 = vpop.f32.mrb[14].mxu0 }
 0x77b   : > { %v3443_v4 = vpop.f32.mrb[15].mxu0 }
 0x77e   : > { %v2560_v3 = vpop.f32.mrb[20].mxu1 }
 0x77f   : > { %2676 = vxpose.xlu0.b32.start.end [1/1] (short) (narrow) %v2560_v3, 8  ;;  %v3448_v58 = vpop.f32.mrb[21].mxu1 }
 0x780   : > { %v2563_v23 = vpop.f32.mrb[22].mxu1  ;;  %v2606_v36 = vpop.f32.mrb[16].mxu0 }
 0x781   : > { %v3449_v11 = vpop.f32.mrb[23].mxu1  ;;  %v3454_v43 = vpop.f32.mrb[17].mxu0  ;;  %v3598_v23 = vld [vmem:[#allocation7] sm:$0xff]  }
 0x782   : > { %v2609_v27 = vpop.f32.mrb[18].mxu0  ;;  %3465 = vmatpush3.bf16.msra.mxu0 %v3598_v23  ;;  %v3600_v11 = vld [vmem:[#allocation7 + $0x8] sm:$0xff]   ;;  %v3601_v43 = vld [vmem:[#allocation8 + $0x8] sm:$0xff]  }
 0x783   : > { %v3455_v10 = vpop.f32.mrb[19].mxu0  ;;  %2708 = vxpose.xlu0.b32.start.end [1/1] (short) (narrow) %v2606_v36, 8  ;;  %v3599_v36 = vld [vmem:[#allocation8] sm:$0xff]   ;;  %3466 = vmatprep.subr.bf16.mxu0 %v3825_v5 }
 0x786   : > { %3467 = vmatpush3.bf16.msra.mxu0 %v3600_v11 }
 0x787   : > { %3480 = vmatprep.subr.bf16.mxu0 %v3825_v5 }
 0x7f7   : > { %v2628_v13 = vpop.trf.xlu0 }
 0x7f9   : > { %v2660_v16 = vpop.trf.xlu1 }
 0x7ff   : > { %v2692_v18 = vpop.trf.xlu0 }
 0x800   : > { %v2740_v45 = vcombine.low %v2628_v13, %v2692_v18  ;;  %v2741_v22 = vcombine.high %v2628_v13, %v2692_v18 }
 0x802   : > { %v2748_v39 = vrot.slane %v2740_v45, %v4151_v52  ;;  %v2755_v7 = vrot.slane %v2741_v22, %v4151_v52 }
 0x803   : > { %v2724_v2 = vpop.trf.xlu0 }
 0x804   : > { %v2756_v59 = vcombine.low %v2660_v16, %v2724_v2  ;;  %v2757_v37 = vcombine.high %v2660_v16, %v2724_v2  ;;  %v3328_v16 = vld [vmem:[%s4705_s9] ss:$0 sm:$0xff] }
 0x806   : > { %v2764_v25 = vrot.slane %v2756_v59, %v4151_v52  ;;  %v2771_v32 = vrot.slane %v2757_v37, %v4151_v52  ;;  %v3602_v59 = vld [vmem:[%s4703_s7] sm:$0xff]   ;;  %v3603_v37 = vld [vmem:[%s4703_s7 + $0x8] sm:$0xff]  }
 0x808   : > { %v2772_v30 = vcombine.low %v2748_v39, %v2764_v25  ;;  %v2773_v53 = vcombine.high %v2748_v39, %v2764_v25  ;;  %v2788_v20 = vcombine.low %v2755_v7, %v2771_v32  ;;  %v2789_v63 = vcombine.high %v2755_v7, %v2771_v32  ;;  %v3604_v39 = vld [vmem:[%s4703_s7 + $0x10] sm:$0xff]   ;;  %v3605_v7 = vld [vmem:[%s4703_s7 + $0x18] sm:$0xff]  }
 0x80a   : > { %v2780_v41 = vrot.slane %v2772_v30, %v4164_v6  ;;  %v2787_v54 = vrot.slane %v2773_v53, %v4164_v6  ;;  %v2796_v62 = vrot.slane %v2788_v20, %v4164_v6  ;;  %v2803_v28 = vrot.slane %v2789_v63, %v4164_v6 }
 0x80c   : > { %v2808_v60 = vcombine.low %v2780_v41, %v2787_v54  ;;  %v3323_v31 = vcombine.high %v2780_v41, %v2787_v54  ;;  %v2824_v40 = vcombine.low %v2796_v62, %v2803_v28  ;;  %v3324_v47 = vcombine.high %v2796_v62, %v2803_v28 }
 0x80e   : > { %v2815_v61 = vrot.slane %v2808_v60, %v4151_v52  ;;  %v2823_v0 = vrot.slane %v3323_v31, %v4151_v52  ;;  %v2831_v26 = vrot.slane %v2824_v40, %v4151_v52  ;;  %v2839_v42 = vrot.slane %v3324_v47, %v4151_v52 }
 0x810   : > { %v2841_v55 = vcombine.high %v2815_v61, %v2823_v0  ;;  %v2857_v14 = vcombine.high %v2831_v26, %v2839_v42  ;;  %v2840_v46 = vcombine.low %v2815_v61, %v2823_v0  ;;  %v2856_v44 = vcombine.low %v2831_v26, %v2839_v42 }
 0x812   : > { %v2855_v8 = vrot.slane %v2841_v55, %v4164_v6  ;;  %v2871_v24 = vrot.slane %v2857_v14, %v4164_v6  ;;  %v2848_v48 = vrot.slane %v2840_v46, %v4164_v6  ;;  %v2864_v9 = vrot.slane %v2856_v44, %v4164_v6 }
 0x814   : > { %v2874_v56 = vcombine.low %v2855_v8, %v2871_v24  ;;  %v2873_v12 = vcombine.high %v2848_v48, %v2864_v9  ;;  %v2872_v50 = vcombine.low %v2848_v48, %v2864_v9  ;;  %v2875_v52 = vcombine.high %v2855_v8, %v2871_v24 }
 0x816   : > { %2881 = vrot.lane.b32.xlu1 %v2874_v56, %s3836_s29  ;;  %2877 = vrot.lane.b32.xlu0 %v2873_v12, %s3837_s16  ;;  %s463_s29 = scalar_lea.vmem [#allocation10], %s3299_s24 }
 0x817   : > { %s3187_s16 = sshll.u32 %s463_s29, 4  ;;  %s4655_s16 = int_to_ptr.vmem [resolvable:$true] %s3187_s16 }
 0x818   : > { %s3743_s17 = scalar_lea.vmem %s4655_s16, 128  ;;  %p3750_p6 = scmp.lt.s32.totalorder %s4655_s16, %s3748_s20 }
 0x819   : > { %p3744_p8 = scmp.ne.s32.totalorder %s4655_s16, %s3743_s17  ;;  %p3751_p9 = scmp.lt.s32.totalorder %s3749_s12, %s3743_s17 }
 0x81a   : > { %2885 = vrot.lane.b32.xlu1 %v2875_v52, %s3838_s19 }
 0x81b   : > { %p3745_p13 = pnand %p3744_p8, %p4743_p11  ;;  %p3752_p5 = por %p3751_p9, %p3750_p6 }
 0x81d   : > { %p3746_p1 = pneg %p3745_p13 }
 0x81f   : > { %p3753_p0 = pnand %p3752_p5, %p3746_p1 }
 0x888   : > { %v2882_v35 = vpop.permute.xlu1 %2881  ;;  %v2878_v57 = vpop.permute.xlu0 %2877 }
 0x889   : > { %v2888_v49 = vsel %vm1765_vm4, %v2872_v50, %v2878_v57 }
 0x88a   : > { %v2890_v29 = vsel %vm2889_vm6, %v2888_v49, %v2882_v35 }
 0x88c   : > { %v2886_v15 = vpop.permute.xlu1 %2885 }
 0x88d   : > { %v2892_v6 = vsel %vm2891_vm7, %v2890_v29, %v2886_v15 }
 0x88e   : > { %v2893_v19 = vpack.c.bf16 %v2892_v6, %v2892_v6 }
 0x890   : > { %3461 = vmatmul.mubr.msk.bf16.vlgmr.msra.gmra.mrb[24].mxu1 %vm474_vm0, %v2893_v19 }
 0x891   : > { %3476 = vmatprep.mubr.msk.bf16.mxu1 %vm3826_vm1, %v3825_v5  ;;  %3473 = vmatpush3.bf16.msra.mxu1 %v3599_v36 }
 0x892   : > { %3474 = vmatprep.subr.bf16.mxu1 %v3825_v5 }
 0x895   : > { %3475 = vmatpush3.bf16.msra.mxu1 %v3601_v43 }
 0x963   : > { %v2947_v17 = vpop.f32.mrb[24].mxu1 }
 0x964   : > { %v4616_v1 = vadd.f32 %v3630_v21, %v2947_v17  ;;  %v3462_v33 = vpop.f32.mrb[25].mxu1 }
 0x965   : > { %v2950_v34 = vpop.f32.mrb[26].mxu1 }
 0x966   : > { %v3463_v4 = vpop.f32.mrb[27].mxu1  ;;  %v2955_v3 = vmul.f32 %v4616_v1, %v4616_v1 }
 0x968   : > { %v2956_v58 = vsel %vm474_vm0, %v2955_v3, 0.0 }
 0x969   : > { %2957 = vadd.xlane.f32.xlu1 %v2956_v58 }
 0x9f6   : > { %v2958_v27 = vpop.xlane.xlu1 %2957 }
 0x9f7   : > { %v2959_v10 = vmul.f32 0.03125, %v2958_v27 }
 0x9f9   : > { %v2960_v13 = vadd.f32 1e-05, %v2959_v10 }
 0x9fb   : > { %3624 = vrsqrt.f32 %v2960_v13 }
 0xa05   : > { %v3625_v18 = vpop.eup %3624 }
 0xa06   : > { %v2962_v45 = vmul.f32 %v3625_v18, %v4616_v1 }
 0xa08   : > { %v2969_v22 = vmul.f32 %v3328_v16, %v2962_v45 }
 0xa0a   : > { %v2970_v2 = vpack.c.bf16 %v2969_v22, %v2969_v22 }
 0xa0c   : > { %3469 = vmatmul.mubr.msk.bf16.vlgmr.msra.gmra.mrb[20].mxu0 %vm474_vm0, %v2970_v2  ;;  %3477 = vmatmul.mubr.msk.bf16.vlgmr.msra.gmra.mrb[28].mxu1 %vm474_vm0, %v2970_v2 }
 0xa0d   : > { %3488 = vmatprep.mubr.msk.bf16.mxu0 %vm3826_vm1, %v3825_v5  ;;  %3481 = vmatpush3.bf16.msra.mxu0 %v3602_v59 }
 0xa0e   : > { %3482 = vmatprep.subr.bf16.mxu0 %v3825_v5 }
 0xa11   : > { %3483 = vmatpush3.bf16.msra.mxu0 %v3603_v37 }
 0xa12   : > { %3484 = vmatprep.subr.bf16.mxu0 %v3825_v5 }
 0xa15   : > { %3485 = vmatpush3.bf16.msra.mxu0 %v3604_v39 }
 0xa16   : > { %3486 = vmatprep.subr.bf16.mxu0 %v3825_v5 }
 0xa19   : > { %3487 = vmatpush3.bf16.msra.mxu0 %v3605_v7 }
 0xadf   : > { %v3024_v25 = vpop.f32.mrb[20].mxu0  ;;  %v3080_v32 = vpop.f32.mrb[28].mxu1 }
 0xae0   : > { %v3335_v30 = vmul.f32 -1.442695, %v3024_v25  ;;  %v3470_v53 = vpop.f32.mrb[21].mxu0  ;;  %v3478_v20 = vpop.f32.mrb[29].mxu1 }
 0xae1   : > { %v3027_v63 = vpop.f32.mrb[22].mxu0  ;;  %v3083_v38 = vpop.f32.mrb[30].mxu1 }
 0xae2   : > { %3626 = vpow2.f32 %v3335_v30  ;;  %v3471_v41 = vpop.f32.mrb[23].mxu0  ;;  %v3479_v54 = vpop.f32.mrb[31].mxu1 }
 0xaec   : > { %v3627_v62 = vpop.eup %3626 }
 0xaed   : > { %v3089_v28 = vadd.f32 1.0, %v3627_v62 }
 0xaef   : > { %3628 = vrcp.f32 %v3089_v28 }
 0xaf9   : > { %v3629_v5 = vpop.eup %3628 }
 0xafa   : > { %v3092_v60 = vmul.f32 %v3629_v5, %v3024_v25 }
 0xafc   : > { %v3093_v31 = vmul.f32 %v3092_v60, %v3080_v32 }
 0xafe   : > { %v3094_v40 = vpack.c.bf16 %v3093_v31, %v3093_v31 }
 0xb00   : > { %3489 = vmatmul.mubr.msk.bf16.vlgmr.msra.gmra.mrb[24].mxu0 %vm3127_vm8, %v3094_v40 }
 0xbd3   : > { %v3165_v47 = vpop.f32.mrb[24].mxu0 }
 0xbd4   : > { %v3171_v51 = vadd.f32 %v3165_v47, %v4616_v1  ;;  %v3490_v61 = vpop.f32.mrb[25].mxu0 }
 0xbd5   : > { %v3168_v0 = vpop.f32.mrb[26].mxu0 }
 0xbd6   : > { %v3491_v26 = vpop.f32.mrb[27].mxu0  ;;  %3172 = vst.msk [vmem:[%s463_s29] sm:$0xff] %vm474_vm0, %v3171_v51 }
 0xbd7   : > { %3756 = shalt.err (!%p3753_p0)
}
 0xbd8   : > { %s3757_s14 = scalar_lea.hbm %s4653_s27, 128  ;;  %s3761_s30 = scalar_lea.hbm %s4742_s26, 256 }
 0xbd9   : > { %p3758_p10 = scmp.ne.s32.totalorder %s4653_s27, %s3757_s14  ;;  %p3762_p4 = scmp.lt.u32.totalorder %s4653_s27, %s4742_s26 }
 0xbda   : > { %p3763_p12 = scmp.lt.u32.totalorder %s3761_s30, %s3757_s14  ;;  %p3765_p8 = scmp.lt.u32.totalorder %s3757_s14, %s4653_s27 }
 0xbdb   : > { %p3759_p2 = pnand %p3758_p10, %p4743_p11 }
 0xbdc   : > { %p3764_p7 = por %p3763_p12, %p3762_p4 }
 0xbdd   : > { %p3760_p3 = pneg %p3759_p2 }
 0xbde   : > { %p3766_p13 = por %p3765_p8, %p3764_p7 }
 0xbe0   : > { %p3767_p1 = pnand %p3766_p13, %p3760_p3 }
 0xbe2   : > { %3770 = shalt.err (!%p3767_p1)
}
 0xbe3   : > { %3508 = dma.vmem_to_hbm [thread:$0]  (%p4743_p11), %s4655_s16, 128, %s4653_s27, %s3174_s25  }
 0xbe4 PF: > { %s4744_s29 = sld [smem:[#allocation17_spill]]  ;;  %s4745_s19 = sld [smem:[#allocation15_spill]] }
 0xbe5   : > { %s4746_s23 = sld [smem:[#allocation21_spill]] }
 0xbea   : > { %p3535_p6 = scmp.ge.s32.totalorder %s4744_s29, 2  ;;  %s3199_s17 = sand.u32 1, %s4745_s19  }
 0xbeb   : > { %p4747_p9 = scmp.ne.s32.totalorder %s4746_s23, 0  ;;  %s3200_s28 = scalar_lea.sflag [#allocation4], %s3199_s17 }
 0xbed   : > { %p3524_p5 = pnand %p3535_p6, %p4747_p9 }
 0xbef   : > { %3800 = dma.done.wait (!%p3524_p5), %s3200_s28, 128  }
 0xbf0   : > { %3802 = vsyncadd (!%p3524_p5), %s3200_s28, 4294967168  ;;  %s4748_s24 = sld [smem:[#allocation18_spill]]  ;;  %s4749_s20 = sld [smem:[#allocation16_spill]] }
 0xbf1   : > { %s4750_s23 = sld [smem:[#allocation19_spill]]  ;;  %s4751_s21 = smov %s3809_s22 }
 0xbf6   : > { %p25_p0 = scmp.ge.s32.totalorder %s4748_s24, 4   ;;  %s4752_s22 = smov %s4749_s20 }
 0xbf8   :  { %27 = sbr.rel (!%p25_p0) target bundleno = 8 (0x8), region = 120 }
 0xbff   :  { %3205 = vsyncpa [#allocation3], 1 }
 0xc00   :  { %3207 = vsyncpa [#allocation3 + $0x1], 1 }
 0xc01   :  { %3208 = vsyncpa [#allocation6], 1 }
 0xc02   :  { %3209 = vsyncpa [#allocation9], 1 }
 0xc03   :  { %3210 = vsyncpa [#allocation4], 1 }
 0xc04   :  { %3212 = vsyncpa [#allocation4 + $0x1], 1 }

// kernel: tpu_custom_call.1
= control target key start
LH: loop header
LB: loop body
LE: loop exit
PB: predicated region body
PF: predicated region fallthrough
CT: control target
= control target key end

     0   :  { %s4696_s0 = inlined_call_operand.vmem [shape: f32[2,8,32], index: 0, kind: input, shape index: {}]   ;;  %s4697_s1 = inlined_call_operand.vmem [shape: bf16[32,32], index: 1, kind: input, shape index: {}]   ;;  %s4698_s2 = inlined_call_operand.vmem [shape: bf16[32,32], index: 2, kind: input, shape index: {}]   ;;  %s4699_s3 = inlined_call_operand.hbm [shape: bf16[32,32], index: 3, kind: input, shape index: {}]   ;;  %s4700_s4 = inlined_call_operand.hbm [shape: bf16[32,32], index: 4, kind: input, shape index: {}]   ;;  %s4701_s5 = inlined_call_operand.hbm [shape: bf16[32,64], index: 5, kind: input, shape index: {}]   ;;  %s4702_s6 = inlined_call_operand.hbm [shape: bf16[32,64], index: 6, kind: input, shape index: {}]   ;;  %s4703_s7 = inlined_call_operand.vmem [shape: bf16[64,32], index: 7, kind: input, shape index: {}]   ;;  %s4704_s8 = inlined_call_operand.vmem [shape: f32[1,32], index: 8, kind: input, shape index: {}]   ;;  %s4705_s9 = inlined_call_operand.vmem [shape: f32[1,32], index: 9, kind: input, shape index: {}]   ;;  %s4706_s10 = inlined_call_operand.vmem [shape: f32[8,8], index: 10, kind: input, shape index: {}]   ;;  %s4707_s11 = inlined_call_operand.vmem [shape: f32[8,8], index: 11, kind: input, shape index: {}]   ;;  %s4708_s12 = inlined_call_operand.hbm [shape: f32[2,8,32], index: 12, kind: output, shape index: {}]  }
   0x1   :  { %4721 = sst [smem:[#allocation22_spill]] %s4708_s12 }
   0x2   :  { %17 = vsyncpa [#allocation3], 0 }
   0x3   :  { %18 = vsyncpa [#allocation6], 0 }
   0x4   :  { %19 = vsyncpa [#allocation9], 0 }
   0x5   :  { %20 = vsyncpa [#allocation4], 0 }
   0x6   :  { %22 = vsyncpa [#allocation4 + $0x1], 0  ;;  %s3905_s21 = smov 0   ;;  %s3907_s22 = smov 0  }
   0x7   :  { %s3909_s23 = smov 0   ;;  %s3911_s24 = smov 0  }
   0x8 LB: > { %4722 = sst [smem:[#allocation15_spill]] %s3805_s21  ;;  %s3926_s25 = sadd.s32 4294967295, %s3817_s24   ;;  %s3817_s24 = sphi %s3911_s24, %s4748_s24   ;;  %s3813_s23 = sphi %s3909_s23, %s4750_s23   ;;  %s3809_s22 = sphi %s3907_s22, %s4752_s22   ;;  %s3805_s21 = sphi %s3905_s21, %s4751_s21  }
   0x9   : > { %4723 = sst [smem:[#allocation16_spill]] %s3813_s23  ;;  %s3287_s26 = sadd.s32 4294967294, %s3817_s24  }
   0xa   : > { %4724 = sst [smem:[#allocation17_spill]] %s3817_s24  ;;  %s3930_s27 = sadd.s32 1, %s3817_s24  }
   0xb   : > { %4725 = sst [smem:[#allocation18_spill]] %s3930_s27  ;;  %s292_s28 = sadd.s32 1, %s3813_s23 }
   0xc   : > { %s289_s29 = ssub.s32 %s3817_s24, %s3930_s27  ;;  %p302_p0 = scmp.ne.s32.totalorder %s3813_s23, %s3809_s22 }
   0xd   : > { %p290_p1 = scmp.eq.s32.totalorder %s289_s29, 0  ;;  %p303_p2 = scmp.eq.s32.totalorder %s3926_s25, 1 }
   0xe   : > { %p308_p3 = scmp.ne.s32.totalorder %s3809_s22, %s3805_s21  ;;  %p309_p4 = scmp.eq.s32.totalorder %s3287_s26, 1 }
   0xf   : > { %s3941_s30 = scalar_select %p290_p1, %s3813_s23, %s292_s28  }
  0x10   : > { %p3943_p5 = por %p303_p2, %p302_p0  ;;  %p3947_p6 = por %p309_p4, %p308_p3 }
  0x11   : > { %4726 = sst [smem:[#allocation19_spill]] %s3941_s30  ;;  %p3288_p7 = scmp.ge.s32.totalorder %s3817_s24, 1 }
  0x12   : > { %s4727_s13 = scalar_select %p3943_p5, 1, 0 }
  0x13   : > { %s4729_s14 = scalar_select %p3947_p6, 1, 0 }
  0x14   : > { %4728 = sst [smem:[#allocation20_spill]] %s4727_s13  ;;  %p316_p8 = scmp.lt.s32.totalorder %s3817_s24, 3 }
  0x15   : > { %4730 = sst [smem:[#allocation21_spill]] %s4729_s14  ;;  %p4713_p9 = scmp.eq.s32.totalorder %s3926_s25, 0 }
  0x16   : > { %p3954_p10 = pnand %p3288_p7, %p316_p8  ;;  %s3819_s16 = smov [#allocation5]  }
  0x17   : > { %s347_s17 = sshll.u32 %s3819_s16, 4  ;;  %s3820_s19 = smov [#allocation2]   ;;  %s3960_s17 = int_to_ptr.vmem [resolvable:$true] %s347_s17 }
  0x18   : > { %s4731_s15 = scalar_select %p3954_p10, 1, 0 }
  0x19   : > { %p3510_p11 = pneg %p3954_p10  ;;  %s334_s20 = sshll.u32 %s3820_s19, 4  ;;  %s3968_s20 = int_to_ptr.vmem [resolvable:$true] %s334_s20 }
  0x1a   : > { %s3821_s26 = smov [#allocation7]   ;;  %s3631_s23 = scalar_lea.hbm %s4700_s4, 256 }
  0x1b   : > { %p3964_p12 = pnand %p4713_p9, %p3510_p11  ;;  %s3970_s28 = sshll.u32 %s3821_s26, 4  ;;  %s361_s28 = int_to_ptr.vmem [resolvable:$true] %s3970_s28 }
  0x1c   : > { %p3632_p13 = scmp.ne.s32.totalorder %s4700_s4, %s3631_s23  ;;  %p3638_p3 = scmp.lt.u32.totalorder %s3631_s23, %s4700_s4 }
  0x1d   : > { %p3980_p0 = pneg %p3964_p12 }
  0x1f   : > { %p3634_p1 = pnand %p3980_p0, %p3632_p13 }
  0x21   : > { %p3635_p2 = pneg %p3634_p1 }
  0x23   : > { %p3640_p4 = pnand %p3638_p3, %p3635_p2 }
  0x25   : > { %3643 = shalt.err (!%p3640_p4)
}
  0x26   : > { %s3644_s27 = scalar_lea.vmem %s3960_s17, 256  ;;  %p3652_p9 = scmp.lt.s32.totalorder %s3960_s17, %s3960_s17 }
  0x27   : > { %p3645_p7 = scmp.ne.s32.totalorder %s3960_s17, %s3644_s27  ;;  %p3653_p6 = scmp.lt.s32.totalorder %s3644_s27, %s3644_s27 }
  0x29   : > { %p3647_p8 = pnand %p3645_p7, %p3980_p0  ;;  %p3654_p13 = por %p3653_p6, %p3652_p9 }
  0x2b   : > { %p3648_p11 = pneg %p3647_p8 }
  0x2d   : > { %p3655_p1 = pnand %p3654_p13, %p3648_p11 }
  0x2f   : > { %3658 = shalt.err (!%p3655_p1)
}
  0x30   : > { %s3822_s30 = smov 64   ;;  %s3823_s23 = smov 4  }
  0x31   : > { %3516 = dma.hbm_to_vmem [thread:$0]  (!%p3964_p12), %s4700_s4, 256, %s3960_s17, [#allocation6], %s3822_s30, %s3822_s30, %s3823_s23  }
  0x32   : > { %s3659_s27 = scalar_lea.hbm %s4699_s3, 256 }
  0x33   : > { %p3660_p6 = scmp.ne.s32.totalorder %s4699_s3, %s3659_s27  ;;  %p3666_p3 = scmp.lt.u32.totalorder %s3659_s27, %s4699_s3 }
  0x35   : > { %p3662_p9 = pnand %p3660_p6, %p3980_p0 }
  0x37   : > { %p3663_p2 = pneg %p3662_p9 }
  0x39   : > { %p3668_p4 = pnand %p3666_p3, %p3663_p2 }
  0x3b   : > { %3671 = shalt.err (!%p3668_p4)
}
  0x3c   : > { %s3672_s17 = scalar_lea.vmem %s3968_s20, 256  ;;  %p3680_p13 = scmp.lt.s32.totalorder %s3968_s20, %s3968_s20 }
  0x3d   : > { %p3673_p7 = scmp.ne.s32.totalorder %s3968_s20, %s3672_s17  ;;  %p3681_p1 = scmp.lt.s32.totalorder %s3672_s17, %s3672_s17 }
  0x3f   : > { %p3675_p8 = pnand %p3673_p7, %p3980_p0  ;;  %p3682_p6 = por %p3681_p1, %p3680_p13 }
  0x41   : > { %p3676_p11 = pneg %p3675_p8 }
  0x43   : > { %p3683_p9 = pnand %p3682_p6, %p3676_p11 }
  0x45   : > { %3686 = shalt.err (!%p3683_p9)
}
  0x46   : > { %3513 = dma.hbm_to_vmem [thread:$0]  (!%p3964_p12), %s4699_s3, 256, %s3968_s20, [#allocation3], %s3822_s30, %s3822_s30, %s3823_s23  }
  0x47   : > { %s3687_s29 = scalar_lea.hbm %s4701_s5, 256 }
  0x48   : > { %p3688_p2 = scmp.ne.s32.totalorder %s4701_s5, %s3687_s29  ;;  %p3694_p7 = scmp.lt.u32.totalorder %s3687_s29, %s4701_s5 }
  0x4a   : > { %p3690_p3 = pnand %p3688_p2, %p3980_p0 }
  0x4c   : > { %p3691_p4 = pneg %p3690_p3 }
  0x4e   : > { %p3696_p8 = pnand %p3694_p7, %p3691_p4 }
  0x50   : > { %3699 = shalt.err (!%p3696_p8)
}
  0x51   : > { %s3700_s17 = scalar_lea.vmem %s361_s28, 256  ;;  %p3708_p6 = scmp.lt.s32.totalorder %s361_s28, %s361_s28 }
  0x52   : > { %p3701_p11 = scmp.ne.s32.totalorder %s361_s28, %s3700_s17  ;;  %p3709_p9 = scmp.lt.s32.totalorder %s3700_s17, %s3700_s17 }
  0x54   : > { %p3703_p13 = pnand %p3701_p11, %p3980_p0  ;;  %p3710_p5 = por %p3709_p9, %p3708_p6 }
  0x56   : > { %p3704_p1 = pneg %p3703_p13 }
  0x58   : > { %p3711_p10 = pnand %p3710_p5, %p3704_p1 }
  0x5a   : > { %3714 = shalt.err (!%p3711_p10)
}
  0x5b   : > { %3519 = dma.hbm_to_vmem [thread:$0]  (!%p3964_p12), %s4701_s5, 256, %s361_s28, [#allocation6], %s3822_s30, %s3822_s30, %s3823_s23  }
  0x5c   : > { %s3824_s21 = smov [#allocation8]   ;;  %s3715_s16 = scalar_lea.hbm %s4702_s6, 256 }
  0x5d   : > { %s373_s24 = sshll.u32 %s3824_s21, 4  ;;  %p3716_p5 = scmp.ne.s32.totalorder %s4702_s6, %s3715_s16  ;;  %s374_s24 = int_to_ptr.vmem [resolvable:$true] %s373_s24 }
  0x5e   : > { %p3722_p3 = scmp.lt.u32.totalorder %s3715_s16, %s4702_s6 }
  0x5f   : > { %p3718_p10 = pnand %p3716_p5, %p3980_p0 }
  0x61   : > { %p3719_p2 = pneg %p3718_p10 }
  0x63   : > { %p3724_p4 = pnand %p3722_p3, %p3719_p2 }
  0x65   : > { %3727 = shalt.err (!%p3724_p4)
}
  0x66   : > { %s3728_s28 = scalar_lea.vmem %s374_s24, 256  ;;  %p3736_p13 = scmp.lt.s32.totalorder %s374_s24, %s374_s24 }
  0x67   : > { %p3729_p7 = scmp.ne.s32.totalorder %s374_s24, %s3728_s28  ;;  %p3737_p1 = scmp.lt.s32.totalorder %s3728_s28, %s3728_s28 }
  0x69   : > { %p3731_p8 = pnand %p3729_p7, %p3980_p0  ;;  %p3738_p6 = por %p3737_p1, %p3736_p13 }
  0x6b   : > { %p3732_p11 = pneg %p3731_p8 }
  0x6d   : > { %p3739_p9 = pnand %p3738_p6, %p3732_p11 }
  0x6f   : > { %3742 = shalt.err (!%p3739_p9)
}
  0x70   : > { %3522 = dma.hbm_to_vmem [thread:$0]  (!%p3964_p12), %s4702_s6, 256, %s374_s24, [#allocation9], %s3822_s30, %s3822_s30, %s3823_s23  }
  0x71   : > { %p4734_p5 = scmp.ne.s32.totalorder %s4731_s15, 0 }
  0x72   : > { %p4735_p0 = scmp.eq.s32.totalorder (!%p4734_p5), %s3926_s25, 0 }
  0x73   : > { %411 = sbr.rel (%p4734_p5) target bundleno = 3044 (0xbe4), region = 68 }
  0x7a   : > { %3788 = dma.done.wait (%p4735_p0), [#allocation3], 256   ;;  %p4736_p10 = pmov %p4735_p0 }
  0x7b   : > { %p4737_p2 = pmov %p4735_p0 }
  0x7c   : > { %3790 = vsyncadd (%p4736_p10), [#allocation3], 4294967040 }
  0x7d   : > { %3792 = dma.done.wait (%p4737_p2), [#allocation6], 512   ;;  %p4738_p3 = pmov %p4735_p0 }
  0x7e   : > { %p4739_p4 = pmov %p4735_p0 }
  0x7f   : > { %3794 = vsyncadd (%p4738_p3), [#allocation6], 4294966784 }
  0x80   : > { %3796 = dma.done.wait (%p4739_p4), [#allocation9], 256   ;;  %p4740_p12 = pmov %p4735_p0 }
  0x81   : > { %p464_p7 = scmp.lt.s32.totalorder %s3926_s25, 1  ;;  %vm474_vm0 = vcmask 261120   ;;  %v3588_v3 = vld [vmem:[%s4697_s1] sm:$0xff]   ;;  %v3825_v5 = vmov 0.0   ;;  %v3590_v6 = vld [vmem:[%s4697_s1 + $0x8] sm:$0xff]   ;;  %vm3826_vm1 = vmmov 0   ;;  %v677_v32 = vlaneseq }
  0x82   : > { %3798 = vsyncadd (%p4740_p12), [#allocation9], 4294967040  ;;  %v3589_v4 = vld [vmem:[#allocation2] sm:$0xff]   ;;  %3384 = vmatprep.subr.bf16.mxu1 %v3825_v5  ;;  %3400 = vmatprep.subr.bf16.mxu0 %v3825_v5  ;;  %v3591_v7 = vld [vmem:[#allocation2 + $0x8] sm:$0xff]   ;;  %s3827_s20 = smov 112   ;;  %s3828_s12 = smov 120  }
  0x83   : > { %s465_s14 = scalar_select %p464_p7, %s3926_s25, 1  ;;  %3385 = vmatpush3.bf16.msra.mxu1 %v3588_v3  ;;  %3401 = vmatpush3.bf16.msra.mxu0 %v3589_v4  ;;  %v3301_v12 = vld [vmem:[%s4704_s8] ss:$0 sm:$0xff]  ;;  %v3593_v17 = vld [vmem:[%s4698_s2 + $0x8] sm:$0xff]   ;;  %v3830_v30 = vmov 1966171168  }
  0x84   : > { %3386 = vmatprep.subr.bf16.mxu1 %v3825_v5  ;;  %3402 = vmatprep.subr.bf16.mxu0 %v3825_v5  ;;  %v3592_v15 = vld [vmem:[%s4698_s2] sm:$0xff]   ;;  %v808_v31 = vunpack.c.l.s4 %v3830_v30  ;;  %v4141_v35 = vshrl.u32 %v677_v32, 7  ;;  %v3831_v37 = vmov 1983009808   ;;  %v3832_v43 = vmov 1934713408  }
  0x85   : > { %s3300_s15 = sshll.u32 %s465_s14, 3  ;;  %3388 = vmatprep.mubr.msk.bf16.mxu1 %vm3826_vm1, %v3825_v5  ;;  %3404 = vmatprep.mubr.msk.bf16.mxu0 %vm3826_vm1, %v3825_v5  ;;  %s3829_s14 = smov 104   ;;  %v675_v38 = vunpack.c.l.s4 %v3831_v37  ;;  %v470_v41 = vld [vmem:[%s4706_s10] sm:$0xff]  ;;  %v707_v44 = vunpack.c.l.s4 %v3832_v43  ;;  %vm796_vm2 = vcmask 31744   ;;  %vm1769_vm3 = vcmask 1043456  }
  0x86   : > { %s4092_s23 = scalar_lea.vmem %s4696_s0, %s3300_s15  ;;  %v809_v34 = vunpack.c.0.s8 %v808_v31  ;;  %v806_v49 = vcombine.high %v470_v41, %v470_v41  ;;  %s3833_s30 = smov 124   ;;  %vm1765_vm4 = vcmask 64512   ;;  %vm2889_vm6 = vcmask 130048  }
  0x87   : > { %v469_v0 = vld [vmem:[%s4092_s23] sm:$0xff]  ;;  %3387 = vmatpush3.bf16.msra.mxu1 %v3590_v6  ;;  %3403 = vmatpush3.bf16.msra.mxu0 %v3591_v7  ;;  %v676_v42 = vunpack.c.0.s8 %v675_v38  ;;  %v708_v54 = vunpack.c.0.s8 %v707_v44  ;;  %v4167_v7 = vsub.s32 0, %v4141_v35  ;;  %s3834_s21 = smov 4   ;;  %s3836_s29 = smov 16   ;;  %vm2891_vm7 = vcmask 195584  }
  0x88   : > { %v473_v1 = vmul.f32 %v469_v0, %v469_v0  ;;  %3392 = vmatprep.subr.bf16.mxu1 %v3825_v5  ;;  %3414 = vmatprep.subr.bf16.mxu0 %v3825_v5  ;;  %v4144_v40 = vsub.s32 %v809_v34, %v4141_v35  ;;  %s3837_s16 = smov 8   ;;  %s3838_s19 = smov 24   ;;  %vm3127_vm8 = vcmask 523264  }
  0x89   : > { %v4151_v52 = vsub.s32 %v676_v42, %v4141_v35  ;;  %v4164_v6 = vsub.s32 %v708_v54, %v4141_v35  ;;  %v471_v54 = vld [vmem:[%s4707_s11] sm:$0xff]  ;;  %s3342_s13 = sshll.u32 %s3926_s25, 7  ;;  %s4742_s26 = sld [smem:[#allocation22_spill]] }
  0x8a   : > { %v475_v2 = vsel %vm474_vm0, %v473_v1, 0.0  ;;  %v813_v47 = vrot.slane %v470_v41, %v4144_v40  ;;  %v4156_v62 = vrot.slane %v806_v49, %v4144_v40  ;;  %s3839_s28 = smov [#allocation10]  }
  0x8b   : > { %476 = vadd.xlane.f32.xlu0 %v475_v2 }
  0x8c   : > { %v829_v56 = vrot.slane %v813_v47, %v4144_v40  ;;  %v821_v63 = vcombine.high %v813_v47, %v813_v47 }
  0x8f   : > { %s4653_s27 = scalar_lea.hbm %s4742_s26, %s3342_s13 }
 0x118   : > { %v477_v8 = vpop.xlane.xlu0 %476 }
 0x119   : > { %v479_v9 = vmul.f32 0.03125, %v477_v8  ;;  %v851_v8 = vcombine.high %v829_v56, %v829_v56 }
 0x11b   : > { %v480_v10 = vadd.f32 1e-05, %v479_v9 }
 0x11d   : > { %3606 = vrsqrt.f32 %v480_v10 }
 0x127   : > { %v3607_v11 = vpop.eup %3606 }
 0x128   : > { %v482_v13 = vmul.f32 %v3607_v11, %v469_v0 }
 0x12a   : > { %v489_v14 = vmul.f32 %v3301_v12, %v482_v13 }
 0x12c   : > { %v490_v16 = vpack.c.bf16 %v489_v14, %v489_v14  ;;  %v4173_v14 = vrot.slane %v4156_v62, %v4144_v40 }
 0x12e   : > { %3389 = vmatmul.mubr.msk.bf16.vlgmr.msra.gmra.mrb[0].mxu1 %vm474_vm0, %v490_v16  ;;  %3405 = vmatmul.mubr.msk.bf16.vlgmr.msra.gmra.mrb[0].mxu0 %vm474_vm0, %v490_v16 }
 0x12f   : > { %3393 = vmatpush3.bf16.msra.mxu1 %v3592_v15  ;;  %3396 = vmatprep.mubr.msk.bf16.mxu1 %vm3826_vm1, %v3825_v5  ;;  %v4176_v15 = vrot.slane %v821_v63, %v4144_v40 }
 0x130   : > { %3394 = vmatprep.subr.bf16.mxu1 %v3825_v5  ;;  %3416 = vmatprep.mubr.msk.bf16.mxu0 %vm3826_vm1, %v3825_v5 }
 0x133   : > { %3395 = vmatpush3.bf16.msra.mxu1 %v3593_v17 }
 0x134   : > { %3408 = vmatprep.subr.bf16.mxu1 %v3825_v5 }
 0x136   : > { %3397 = vmatmul.mubr.msk.bf16.vlgmr.msra.gmra.mrb[4].mxu1 %vm474_vm0, %v490_v16 }
 0x137   : > { %3410 = vmatprep.mubr.msk.bf16.mxu1 %vm3826_vm1, %v3825_v5 }
 0x201   : > { %v544_v18 = vpop.f32.mrb[0].mxu1  ;;  %v4132_v19 = vpop.f32.mrb[0].mxu0 }
 0x202   : > { %v3390_v20 = vpop.f32.mrb[1].mxu1  ;;  %v3406_v21 = vpop.f32.mrb[1].mxu0 }
 0x203   : > { %v547_v22 = vpop.f32.mrb[2].mxu1  ;;  %v659_v23 = vpop.f32.mrb[2].mxu0  ;;  %v4182_v21 = vrot.slane %v829_v56, %v4167_v7 }
 0x204   : > { %v3391_v24 = vpop.f32.mrb[3].mxu1  ;;  %v3407_v25 = vpop.f32.mrb[3].mxu0  ;;  %v4185_v22 = vrot.slane %v851_v8, %v4167_v7  ;;  %v4189_v23 = vrot.slane %v4173_v14, %v4167_v7 }
 0x209   : > { %v600_v26 = vpop.f32.mrb[4].mxu1 }
 0x20a   : > { %1029 = vrot.lane.b32.xlu1 %v600_v26, %s3827_s20  ;;  %1026 = vrot.lane.b32.xlu0 %v600_v26, %s3828_s12  ;;  %v3398_v27 = vpop.f32.mrb[5].mxu1 }
 0x20b   : > { %v603_v28 = vpop.f32.mrb[6].mxu1 }
 0x20c   : > { %v3399_v29 = vpop.f32.mrb[7].mxu1 }
 0x20e   : > { %1032 = vrot.lane.b32.xlu1 %v600_v26, %s3829_s14  ;;  %666 = vrot.lane.b32.xlu0 %v544_v18, %s3827_s20 }
 0x212   : > { %663 = vrot.lane.b32.xlu1 %v544_v18, %s3828_s12 }
 0x216   : > { %669 = vrot.lane.b32.xlu1 %v544_v18, %s3829_s14 }
 0x27c   : > { %v1030_v33 = vpop.permute.xlu1 %1029  ;;  %v1027_v36 = vpop.permute.xlu0 %1026 }
 0x27d   : > { %v1035_v53 = vcombine.low %v600_v26, %v1030_v33  ;;  %v1036_v60 = vcombine.high %v600_v26, %v1030_v33  ;;  %v4195_v26 = vrot.slane %v4176_v15, %v4167_v7 }
 0x27f   : > { %v1043_v4 = vrot.slane %v1035_v53, %v4151_v52  ;;  %v1050_v13 = vrot.slane %v1036_v60, %v4151_v52 }
 0x280   : > { %v1033_v39 = vpop.permute.xlu1 %1032  ;;  %v667_v45 = vpop.permute.xlu0 %666 }
 0x281   : > { %v1051_v48 = vcombine.low %v1027_v36, %v1033_v39  ;;  %v672_v50 = vcombine.low %v544_v18, %v667_v45  ;;  %v673_v51 = vcombine.high %v544_v18, %v667_v45  ;;  %v1052_v57 = vcombine.high %v1027_v36, %v1033_v39 }
 0x283   : > { %v1059_v61 = vrot.slane %v1051_v48, %v4151_v52  ;;  %v680_v0 = vrot.slane %v672_v50, %v4151_v52  ;;  %v687_v1 = vrot.slane %v673_v51, %v4151_v52  ;;  %v1066_v9 = vrot.slane %v1052_v57, %v4151_v52 }
 0x284   : > { %v664_v46 = vpop.permute.xlu1 %663  ;;  %v911_v57 = vrot.slane %v471_v54, %v4144_v40 }
 0x285   : > { %v1067_v16 = vcombine.low %v1043_v4, %v1059_v61  ;;  %v1083_v24 = vcombine.low %v1050_v13, %v1066_v9  ;;  %v1068_v30 = vcombine.high %v1043_v4, %v1059_v61  ;;  %v1084_v34 = vcombine.high %v1050_v13, %v1066_v9 }
 0x286   : > { %v927_v60 = vrot.slane %v911_v57, %v4144_v40  ;;  %v904_v61 = vcombine.high %v471_v54, %v471_v54  ;;  %v919_v54 = vcombine.high %v911_v57, %v911_v57 }
 0x287   : > { %v4208_v31 = vrot.slane %v1067_v16, %v4164_v6  ;;  %v4214_v36 = vrot.slane %v1083_v24, %v4164_v6  ;;  %v4220_v37 = vrot.slane %v1068_v30, %v4164_v6  ;;  %v4223_v38 = vrot.slane %v1084_v34, %v4164_v6 }
 0x288   : > { %v670_v55 = vpop.permute.xlu1 %669  ;;  %v941_v57 = vrot.slane %v919_v54, %v4144_v40 }
 0x289   : > { %v688_v58 = vcombine.low %v664_v46, %v670_v55  ;;  %v689_v59 = vcombine.high %v664_v46, %v670_v55  ;;  %v4229_v39 = vcombine.high %v4214_v36, %v3825_v5  ;;  %v4237_v41 = vcombine.high %v4223_v38, %v3825_v5 }
 0x28a   : > { %v4245_v42 = vcombine.high %v4208_v31, %v3825_v5  ;;  %v4253_v43 = vcombine.high %v4220_v37, %v3825_v5  ;;  %v1167_v13 = vmul.f32 %v4208_v31, %v4182_v21  ;;  %v1169_v24 = vmul.f32 %v4220_v37, %v4185_v22 }
 0x28b   : > { %v696_v2 = vrot.slane %v688_v58, %v4151_v52  ;;  %v703_v3 = vrot.slane %v689_v59, %v4151_v52 }
 0x28d   : > { %v704_v10 = vcombine.low %v680_v0, %v696_v2  ;;  %v705_v11 = vcombine.high %v680_v0, %v696_v2  ;;  %v720_v12 = vcombine.low %v687_v1, %v703_v3  ;;  %v721_v44 = vcombine.high %v687_v1, %v703_v3 }
 0x28e   : > { %v956_v1 = vrot.slane %v927_v60, %v4167_v7  ;;  %v949_v2 = vcombine.high %v927_v60, %v927_v60  ;;  %v918_v3 = vrot.slane %v904_v61, %v4144_v40  ;;  %v1171_v61 = vmul.f32 %v4214_v36, %v4189_v23 }
 0x28f   : > { %v712_v17 = vrot.slane %v704_v10, %v4164_v6  ;;  %v728_v18 = vrot.slane %v720_v12, %v4164_v6  ;;  %v719_v20 = vrot.slane %v705_v11, %v4164_v6  ;;  %v4268_v45 = vrot.slane %v721_v44, %v4164_v6 }
 0x290   : > { %v934_v9 = vrot.slane %v918_v3, %v4144_v40  ;;  %v4317_v12 = vrot.slane %v949_v2, %v4167_v7  ;;  %v920_v60 = vcombine.high %v918_v3, %v918_v3 }
 0x291   : > { %748 = vrot.lane.b32.xlu1 %v712_v17, %s3833_s30  ;;  %v736_v25 = vcombine.high %v712_v17, %v3825_v5  ;;  %v4198_v27 = vmul.f32 %v4182_v21, %v712_v17  ;;  %v4201_v28 = vmul.f32 %v4185_v22, %v719_v20  ;;  %v4204_v29 = vmul.f32 %v4189_v23, %v728_v18 }
 0x292   : > { %v4281_v46 = vcombine.high %v719_v20, %v3825_v5  ;;  %v4286_v47 = vcombine.high %v728_v18, %v3825_v5  ;;  %v4292_v48 = vcombine.high %v4268_v45, %v3825_v5  ;;  %v948_v23 = vrot.slane %v920_v60, %v4144_v40 }
 0x293   : > { %750 = vrot.lane.b32.xlu0 %v736_v25, %s3833_s30  ;;  %v4211_v33 = vmul.f32 %v4195_v26, %v736_v25 }
 0x295   : > { %1111 = vrot.lane.b32.xlu1 %v4208_v31, %s3833_s30 }
 0x297   : > { %756 = vrot.lane.b32.xlu0 %v728_v18, %s3833_s30 }
 0x299   : > { %1115 = vrot.lane.b32.xlu1 %v4220_v37, %s3833_s30 }
 0x29b   : > { %1121 = vrot.lane.b32.xlu0 %v4229_v39, %s3833_s30 }
 0x29d   : > { %1119 = vrot.lane.b32.xlu1 %v4214_v36, %s3833_s30 }
 0x29f   : > { %1125 = vrot.lane.b32.xlu0 %v4237_v41, %s3833_s30 }
 0x2a1   : > { %1123 = vrot.lane.b32.xlu1 %v4223_v38, %s3833_s30 }
 0x2a3   : > { %1137 = vrot.lane.b32.xlu0 %v4245_v42, %s3834_s21 }
 0x2a5   : > { %1135 = vrot.lane.b32.xlu1 %v4208_v31, %s3834_s21 }
 0x2a7   : > { %1141 = vrot.lane.b32.xlu0 %v4253_v43, %s3834_s21 }
 0x2a9   : > { %1139 = vrot.lane.b32.xlu1 %v4220_v37, %s3834_s21 }
 0x2ab   : > { %1145 = vrot.lane.b32.xlu0 %v4229_v39, %s3834_s21 }
 0x2ad   : > { %1143 = vrot.lane.b32.xlu1 %v4214_v36, %s3834_s21 }
 0x2af   : > { %1149 = vrot.lane.b32.xlu0 %v4237_v41, %s3834_s21 }
 0x2b1   : > { %1147 = vrot.lane.b32.xlu1 %v4223_v38, %s3834_s21 }
 0x2b3   : > { %760 = vrot.lane.b32.xlu0 %v4268_v45, %s3833_s30 }
 0x2b5   : > { %1113 = vrot.lane.b32.xlu1 %v4245_v42, %s3833_s30 }
 0x2b7   : > { %772 = vrot.lane.b32.xlu0 %v712_v17, %s3834_s21 }
 0x2b9   : > { %1117 = vrot.lane.b32.xlu1 %v4253_v43, %s3833_s30 }
 0x2bb   : > { %776 = vrot.lane.b32.xlu0 %v719_v20, %s3834_s21 }
 0x2bd   : > { %752 = vrot.lane.b32.xlu1 %v719_v20, %s3833_s30  ;;  %v4323_v20 = vrot.slane %v934_v9, %v4167_v7 }
 0x2bf   : > { %780 = vrot.lane.b32.xlu0 %v728_v18, %s3834_s21 }
 0x2c1   : > { %754 = vrot.lane.b32.xlu1 %v4281_v46, %s3833_s30 }
 0x2c5   : > { %758 = vrot.lane.b32.xlu1 %v4286_v47, %s3833_s30 }
 0x2c9   : > { %762 = vrot.lane.b32.xlu1 %v4292_v48, %s3833_s30  ;;  %s461_s30 = sand.u32 1, %s3809_s22  }
 0x2ca   : > { %s3299_s24 = sshll.u32 %s461_s30, 3  ;;  %s3174_s25 = scalar_lea.sflag [#allocation4], %s461_s30 }
 0x2cd   : > { %774 = vrot.lane.b32.xlu1 %v736_v25, %s3834_s21  ;;  %v852_v25 = vcombine.high %v4173_v14, %v4173_v14 }
 0x2cf   : > { %v4334_v22 = vrot.slane %v852_v25, %v4167_v7 }
 0x303   : > { %v4297_v49 = vpop.permute.xlu1 %748 }
 0x305   : > { %v4299_v50 = vpop.permute.xlu0 %750 }
 0x307   : > { %v1112_v51 = vpop.permute.xlu1 %1111 }
 0x309   : > { %v4301_v53 = vpop.permute.xlu0 %756 }
 0x30b   : > { %v1116_v55 = vpop.permute.xlu1 %1115 }
 0x30d   : > { %v4306_v56 = vpop.permute.xlu0 %1121 }
 0x30f   : > { %v1120_v58 = vpop.permute.xlu1 %1119 }
 0x311   : > { %v4309_v59 = vpop.permute.xlu0 %1125 }
 0x313   : > { %v1124_v63 = vpop.permute.xlu1 %1123 }
 0x315   : > { %v1138_v0 = vpop.permute.xlu0 %1137 }
 0x317   : > { %v1136_v4 = vpop.permute.xlu1 %1135 }
 0x318   : > { %v1159_v8 = vsel %vm796_vm2, %v1112_v51, %v1136_v4  ;;  %v950_v51 = vcombine.high %v934_v9, %v934_v9  ;;  %v1173_v9 = vmul.f32 %v4223_v38, %v4334_v22 }
 0x319   : > { %v1175_v10 = vmul.f32 %v1159_v8, %v956_v1  ;;  %v1142_v11 = vpop.permute.xlu0 %1141 }
 0x31a   : > { %v4338_v2 = vrot.slane %v950_v51, %v4167_v7  ;;  %v4363_v51 = vrot.slane %v948_v23, %v4167_v7 }
 0x31b   : > { %v1140_v16 = vpop.permute.xlu1 %1139  ;;  %v1183_v17 = vadd.f32 %v1175_v10, %v1167_v13  ;;  %v853_v10 = vcombine.high %v4176_v15, %v4176_v15  ;;  %v1168_v15 = vmul.f32 %v4245_v42, %v4195_v26 }
 0x31c   : > { %v1161_v18 = vsel %vm796_vm2, %v1116_v55, %v1140_v16 }
 0x31d   : > { %v1177_v30 = vmul.f32 %v1161_v18, %v4317_v12  ;;  %v1146_v34 = vpop.permute.xlu0 %1145  ;;  %v1191_v44 = vpack.c.bf16 %v1183_v17, %v1183_v17  ;;  %v4353_v17 = vrot.slane %v941_v57, %v4167_v7 }
 0x31f   : > { %v1144_v21 = vpop.permute.xlu1 %1143  ;;  %1347 = vxpose.xlu0.c.b16.start.end [1/1] (short) (narrow) %v1191_v44, 16  ;;  %v1185_v31 = vadd.f32 %v1177_v30, %v1169_v24  ;;  %v951_v24 = vcombine.high %v941_v57, %v941_v57  ;;  %v952_v30 = vcombine.high %v948_v23, %v948_v23  ;;  %v4360_v44 = vrot.slane %v853_v10, %v4167_v7 }
 0x320   : > { %v1163_v55 = vsel %vm796_vm2, %v1120_v58, %v1144_v21  ;;  %v822_v58 = vcombine.high %v4156_v62, %v4156_v62 }
 0x321   : > { %v1179_v14 = vmul.f32 %v1163_v55, %v4323_v20  ;;  %v1150_v37 = vpop.permute.xlu0 %1149  ;;  %v1193_v4 = vpack.c.bf16 %v1185_v31, %v1185_v31  ;;  %v4367_v31 = vrot.slane %v951_v24, %v4167_v7 }
 0x323   : > { %v1148_v8 = vpop.permute.xlu1 %1147  ;;  %1379 = vxpose.xlu0.c.b16.start.end [1/1] (short) (narrow) %v1193_v4, 16  ;;  %v1187_v3 = vadd.f32 %v1179_v14, %v1171_v61  ;;  %v4377_v4 = vrot.slane %v952_v30, %v4167_v7 }
 0x324   : > { %v1165_v36 = vsel %vm796_vm2, %v1124_v63, %v1148_v8  ;;  %v850_v63 = vrot.slane %v822_v58, %v4144_v40  ;;  %v1164_v40 = vsel %vm796_vm2, %v4306_v56, %v1146_v34  ;;  %v1170_v8 = vmul.f32 %v4253_v43, %v4360_v44 }
 0x325   : > { %v1181_v13 = vmul.f32 %v1165_v36, %v4338_v2  ;;  %v4350_v16 = vpop.permute.xlu0 %760  ;;  %v1195_v18 = vpack.c.bf16 %v1187_v3, %v1187_v3  ;;  %v1180_v56 = vmul.f32 %v1164_v40, %v4363_v51  ;;  %v1166_v58 = vsel %vm796_vm2, %v4309_v59, %v1150_v37 }
 0x326   : > { %v4374_v61 = vrot.slane %v850_v63, %v4167_v7  ;;  %v854_v14 = vcombine.high %v850_v63, %v850_v63 }
 0x327   : > { %v1114_v62 = vpop.permute.xlu1 %1113  ;;  %1411 = vxpose.xlu1.c.b16.start.end [1/1] (short) (narrow) %v1195_v18, 16  ;;  %v1189_v25 = vadd.f32 %v1181_v13, %v1173_v9 }
 0x328   : > { %v1160_v38 = vsel %vm796_vm2, %v1114_v62, %v1138_v0  ;;  %v4390_v9 = vrot.slane %v854_v14, %v4167_v7 }
 0x329   : > { %v1176_v54 = vmul.f32 %v1160_v38, %v4353_v17  ;;  %v773_v21 = vpop.permute.xlu0 %772  ;;  %v1197_v60 = vpack.c.bf16 %v1189_v25, %v1189_v25 }
 0x32a   : > { %v797_v0 = vsel %vm796_vm2, %v4297_v49, %v773_v21  ;;  %v1174_v7 = vmul.f32 %v4237_v41, %v4390_v9 }
 0x32b   : > { %v993_v26 = vmul.f32 %v956_v1, %v797_v0  ;;  %v1118_v42 = vpop.permute.xlu1 %1117  ;;  %1443 = vxpose.xlu1.c.b16.start.end [1/1] (short) (narrow) %v1197_v60, 16  ;;  %v1184_v55 = vadd.f32 %v1176_v54, %v1168_v15 }
 0x32c   : > { %v1162_v57 = vsel %vm796_vm2, %v1118_v42, %v1142_v11  ;;  %v1172_v11 = vmul.f32 %v4229_v39, %v4374_v61 }
 0x32d   : > { %v1001_v49 = vadd.f32 %v993_v26, %v4198_v27  ;;  %v1178_v1 = vmul.f32 %v1162_v57, %v4367_v31  ;;  %v777_v34 = vpop.permute.xlu0 %776  ;;  %v1192_v3 = vpack.c.bf16 %v1184_v55, %v1184_v55  ;;  %v1182_v27 = vmul.f32 %v1166_v58, %v4377_v4 }
 0x32e   : > { %v1188_v24 = vadd.f32 %v1180_v56, %v1172_v11 }
 0x32f   : > { %v753_v23 = vpop.permute.xlu1 %752  ;;  %1363 = vxpose.xlu1.c.b16.start.end [1/1] (short) (narrow) %v1192_v3, 16  ;;  %v1186_v36 = vadd.f32 %v1178_v1, %v1170_v8  ;;  %v1190_v63 = vadd.f32 %v1182_v27, %v1174_v7  ;;  %v4406_v30 = vmul.f32 0.35355338, %v1001_v49 }
 0x330   : > { %v799_v43 = vsel %vm796_vm2, %v753_v23, %v777_v34  ;;  %v1196_v25 = vpack.c.bf16 %v1188_v24, %v1188_v24 }
 0x331   : > { %v995_v10 = vmul.f32 %v4317_v12, %v799_v43  ;;  %v781_v13 = vpop.permute.xlu0 %780  ;;  %v1194_v18 = vpack.c.bf16 %v1186_v36, %v1186_v36  ;;  %v1198_v38 = vpack.c.bf16 %v1190_v63, %v1190_v63  ;;  %v900_v63 = vmul.f32 %v4374_v61, %v4286_v47 }
 0x332   : > { %v801_v59 = vsel %vm796_vm2, %v4301_v53, %v781_v13 }
 0x333   : > { %v4398_v37 = vadd.f32 %v995_v10, %v4201_v28  ;;  %v997_v39 = vmul.f32 %v4323_v20, %v801_v59  ;;  %v755_v62 = vpop.permute.xlu1 %754  ;;  %778 = vrot.lane.b32.xlu1 %v4281_v46, %s3834_s21  ;;  %1395 = vxpose.xlu0.c.b16.start.end [1/1] (short) (narrow) %v1194_v18, 16 }
 0x335   : > { %v1005_v12 = vadd.f32 %v997_v39, %v4204_v29 }
 0x337   : > { %v4408_v53 = vmul.f32 0.35355338, %v1005_v12  ;;  %v759_v28 = vpop.permute.xlu1 %758  ;;  %782 = vrot.lane.b32.xlu1 %v4286_v47, %s3834_s21  ;;  %1427 = vxpose.xlu0.c.b16.start.end [1/1] (short) (narrow) %v1196_v25, 16 }
 0x339   : > { %v3311_v20 = vpack.c.bf16 %v4408_v53, %v4406_v30 }
 0x33b   : > { %v763_v15 = vpop.permute.xlu1 %762  ;;  %786 = vrot.lane.b32.xlu1 %v4292_v48, %s3834_s21  ;;  %1459 = vxpose.xlu0.c.b16.start.end [1/1] (short) (narrow) %v1198_v38, 16 }
 0x33f   : > { %v775_v29 = vpop.permute.xlu1 %774 }
 0x340   : > { %v798_v41 = vsel %vm796_vm2, %v4299_v50, %v775_v29  ;;  %v3835_v29 = vmov 0  }
 0x341   : > { %v994_v54 = vmul.f32 %v4353_v17, %v798_v41 }
 0x343   : > { %v1002_v21 = vadd.f32 %v994_v54, %v4211_v33 }
 0x344   : > { %784 = vrot.lane.b32.xlu0 %v4268_v45, %s3834_s21  ;;  %s4741_s21 = sld [smem:[#allocation20_spill]] }
 0x34a   : > { %p4743_p11 = scmp.ne.s32.totalorder %s4741_s21, 0 }
 0x385   : > { %v1355_v60 = vpop.trf.xlu0 }
 0x389   : > { %v1387_v0 = vpop.trf.xlu0 }
 0x38d   : > { %v1419_v40 = vpop.trf.xlu1 }
 0x38e   : > { %v1475_v55 = vcombine.low %v1355_v60, %v1419_v40 }
 0x390   : > { %v1482_v56 = vrot.slane %v1475_v55, %v4151_v52 }
 0x391   : > { %v1451_v26 = vpop.trf.xlu1 }
 0x392   : > { %v1483_v14 = vcombine.low %v1387_v0, %v1451_v26 }
 0x394   : > { %v1490_v50 = vrot.slane %v1483_v14, %v4151_v52 }
 0x395   : > { %v1371_v57 = vpop.trf.xlu1 }
 0x396   : > { %v1491_v33 = vcombine.low %v1482_v56, %v1490_v50  ;;  %v1492_v34 = vcombine.high %v1482_v56, %v1490_v50 }
 0x398   : > { %v1499_v43 = vrot.slane %v1491_v33, %v4164_v6  ;;  %v1506_v27 = vrot.slane %v1492_v34, %v4164_v6 }
 0x399   : > { %v1403_v42 = vpop.trf.xlu0 }
 0x39a   : > { %v1547_v54 = vshrl.u32 %v1499_v43, 16 }
 0x39d   : > { %v1435_v8 = vpop.trf.xlu0 }
 0x39e   : > { %v1509_v49 = vcombine.low %v1371_v57, %v1435_v8 }
 0x3a0   : > { %v1516_v3 = vrot.slane %v1509_v49, %v4151_v52 }
 0x3a1   : > { %v1467_v17 = vpop.trf.xlu0 }
 0x3a2   : > { %v1517_v1 = vcombine.low %v1403_v42, %v1467_v17  ;;  %v1010_v42 = vmul.f32 0.35355338, %v1002_v21 }
 0x3a4   : > { %v1524_v58 = vrot.slane %v1517_v1, %v4151_v52 }
 0x3a5   : > { %v779_v23 = vpop.permute.xlu1 %778 }
 0x3a6   : > { %v1525_v36 = vcombine.low %v1516_v3, %v1524_v58  ;;  %v1526_v11 = vcombine.high %v1516_v3, %v1524_v58  ;;  %v800_v18 = vsel %vm796_vm2, %v755_v62, %v779_v23  ;;  %v1507_v62 = vcombine.high %v1499_v43, %v3835_v29 }
 0x3a7   : > { %v996_v25 = vmul.f32 %v4367_v31, %v800_v18  ;;  %v902_v31 = vmul.f32 %v4390_v9, %v4292_v48  ;;  %v901_v23 = vmul.f32 %v4334_v22, %v4268_v45  ;;  %v1292_v45 = vrot.slane %v3311_v20, %v4151_v52 }
 0x3a8   : > { %v1533_v10 = vrot.slane %v1525_v36, %v4164_v6  ;;  %v1540_v13 = vrot.slane %v1526_v11, %v4164_v6  ;;  %v1555_v17 = vshrl.u32 %v1507_v62, 16 }
 0x3a9   : > { %v783_v24 = vpop.permute.xlu1 %782 }
 0x3aa   : > { %v802_v59 = vsel %vm796_vm2, %v759_v28, %v783_v24  ;;  %v1561_v39 = vpack.i.b16 %v1540_v13, %v1506_v27  ;;  %v1545_v7 = vpack.i.b16 %v1533_v10, %v1499_v43  ;;  %v1548_v12 = vshrl.u32 %v1533_v10, 16 }
 0x3ab   : > { %v998_v38 = vmul.f32 %v4363_v51, %v802_v59  ;;  %v1541_v41 = vcombine.high %v1533_v10, %v3835_v29  ;;  %v898_v28 = vmul.f32 %v4360_v44, %v4281_v46  ;;  %v1542_v47 = vcombine.high %v1540_v13, %v3835_v29 }
 0x3ac   : > { %1639 = vxpose.xlu1.c.b16.start.end [1/1] (short) (narrow) %v1561_v39, 16  ;;  %1575 = vxpose.xlu0.c.b16.start.end [1/1] (short) (narrow) %v1545_v7, 16  ;;  %v1549_v61 = vpack.i.b16 %v1548_v12, %v1547_v54  ;;  %v1564_v26 = vshrl.u32 %v1540_v13, 16  ;;  %v1508_v46 = vcombine.high %v1506_v27, %v3835_v29  ;;  %v1563_v44 = vshrl.u32 %v1506_v27, 16 }
 0x3ad   : > { %v1006_v60 = vadd.f32 %v998_v38, %v900_v63  ;;  %v787_v40 = vpop.permute.xlu1 %786  ;;  %v1553_v0 = vpack.i.b16 %v1541_v41, %v1507_v62  ;;  %v1004_v55 = vadd.f32 %v996_v25, %v898_v28  ;;  %v1556_v50 = vshrl.u32 %v1541_v41, 16 }
 0x3ae   : > { %v804_v51 = vsel %vm796_vm2, %v763_v15, %v787_v40  ;;  %v1569_v9 = vpack.i.b16 %v1542_v47, %v1508_v46  ;;  %v1565_v56 = vpack.i.b16 %v1564_v26, %v1563_v44  ;;  %v1572_v34 = vshrl.u32 %v1542_v47, 16 }
 0x3af   : > { %v1014_v14 = vmul.f32 0.35355338, %v1006_v60  ;;  %v1000_v57 = vmul.f32 %v4377_v4, %v804_v51  ;;  %v1012_v49 = vmul.f32 0.35355338, %v1004_v55  ;;  %v1557_v33 = vpack.i.b16 %v1556_v50, %v1555_v17 }
 0x3b0   : > { %1591 = vxpose.xlu1.c.b16.start.end [1/1] (short) (narrow) %v1549_v61, 16  ;;  %1607 = vxpose.xlu0.c.b16.start.end [1/1] (short) (narrow) %v1553_v0, 16  ;;  %v1571_v11 = vshrl.u32 %v1508_v46, 16  ;;  %v1011_v13 = vmul.f32 0.35355338, %v4398_v37 }
 0x3b1   : > { %v3313_v8 = vpack.c.bf16 %v1014_v14, %v1010_v42  ;;  %v1008_v48 = vadd.f32 %v1000_v57, %v902_v31 }
 0x3b2   : > { %v1573_v10 = vpack.i.b16 %v1572_v34, %v1571_v11 }
 0x3b3   : > { %v1016_v15 = vmul.f32 0.35355338, %v1008_v48  ;;  %v1317_v4 = vrot.slane %v3313_v8, %v4151_v52 }
 0x3b4   : > { %1671 = vxpose.xlu1.c.b16.start.end [1/1] (short) (narrow) %v1569_v9, 16  ;;  %1655 = vxpose.xlu0.c.b16.start.end [1/1] (short) (narrow) %v1565_v56, 16 }
 0x3b5   : > { %v3314_v21 = vpack.c.bf16 %v1016_v15, %v1012_v49 }
 0x3b6   : > { %v785_v1 = vpop.permute.xlu0 %784 }
 0x3b7   : > { %v1325_v3 = vrot.slane %v3314_v21, %v4151_v52  ;;  %v803_v58 = vsel %vm796_vm2, %v4350_v16, %v785_v1 }
 0x3b8   : > { %v999_v36 = vmul.f32 %v4338_v2, %v803_v58  ;;  %1200 = vrot.lane.b32.xlu1 %v4132_v19, %s3828_s12  ;;  %1623 = vxpose.xlu0.c.b16.start.end [1/1] (short) (narrow) %v1557_v33, 16 }
 0x3b9   : > { %v1326_v43 = vcombine.low %v1317_v4, %v1325_v3 }
 0x3ba   : > { %v1007_v27 = vadd.f32 %v999_v36, %v901_v23 }
 0x3bb   : > { %v1333_v22 = vrot.slane %v1326_v43, %v4164_v6 }
 0x3bc   : > { %v1015_v18 = vmul.f32 0.35355338, %v1007_v27  ;;  %1206 = vrot.lane.b32.xlu1 %v4132_v19, %s3829_s14  ;;  %1687 = vxpose.xlu0.c.b16.start.end [1/1] (short) (narrow) %v1573_v10, 16 }
 0x3bd   : > { %v4466_v37 = vcombine.high %v1333_v22, %v3835_v29  ;;  %v1339_v12 = vshrl.u32 %v1333_v22, 16 }
 0x3be   : > { %v3312_v16 = vpack.c.bf16 %v1015_v18, %v1011_v13 }
 0x3bf   : > { %v1345_v63 = vshrl.u32 %v4466_v37, 16 }
 0x3c0   : > { %v1300_v2 = vrot.slane %v3312_v16, %v4151_v52 }
 0x3c2   : > { %v1301_v24 = vcombine.low %v1292_v45, %v1300_v2 }
 0x3c4   : > { %v1308_v59 = vrot.slane %v1301_v24, %v4164_v6 }
 0x3c5   : > { %1203 = vrot.lane.b32.xlu0 %v4132_v19, %s3827_s20  ;;  %s3747_s20 = sshll.u32 %s3839_s28, 4  ;;  %s3748_s20 = int_to_ptr.vmem [resolvable:$false] %s3747_s20 }
 0x3c6   : > { %v1337_v39 = vpack.i.b16 %v1333_v22, %v1308_v59  ;;  %v1338_v7 = vshrl.u32 %v1308_v59, 16  ;;  %v1309_v25 = vcombine.high %v1308_v59, %v3835_v29  ;;  %v1954_v22 = vand.u32 127, %v677_v32  ;;  %s3749_s12 = scalar_lea.vmem %s3748_s20, 256 }
 0x3c8   : > { %v1340_v30 = vpack.i.b16 %v1339_v12, %v1338_v7  ;;  %v1343_v53 = vpack.i.b16 %v4466_v37, %v1309_v25  ;;  %v1344_v20 = vshrl.u32 %v1309_v25, 16  ;;  %vm1955_vm5 = vcmp.ge.s32.totalorder %v4141_v35, %v1954_v22 }
 0x3ca   : > { %v1346_v38 = vpack.i.b16 %v1345_v63, %v1344_v20 }
 0x412   : > { %v1647_v41 = vpop.trf.xlu1  ;;  %v1583_v54 = vpop.trf.xlu0 }
 0x413   : > { %v1703_v47 = vcombine.low %v1583_v54, %v1647_v41 }
 0x415   : > { %v1710_v0 = vrot.slane %v1703_v47, %v4151_v52 }
 0x416   : > { %v1599_v62 = vpop.trf.xlu1  ;;  %v1615_v28 = vpop.trf.xlu0 }
 0x41a   : > { %v1679_v60 = vpop.trf.xlu1  ;;  %v1663_v31 = vpop.trf.xlu0 }
 0x41b   : > { %v1711_v40 = vcombine.low %v1615_v28, %v1679_v60  ;;  %v1728_v26 = vcombine.low %v1599_v62, %v1663_v31 }
 0x41d   : > { %v1718_v51 = vrot.slane %v1711_v40, %v4151_v52  ;;  %v1735_v57 = vrot.slane %v1728_v26, %v4151_v52 }
 0x41e   : > { %v1631_v61 = vpop.trf.xlu0 }
 0x41f   : > { %v1719_v42 = vcombine.low %v1710_v0, %v1718_v51 }
 0x421   : > { %v1726_v44 = vrot.slane %v1719_v42, %v4164_v6 }
 0x422   : > { %v1695_v55 = vpop.trf.xlu0 }
 0x423   : > { %v1736_v14 = vcombine.low %v1631_v61, %v1695_v55  ;;  %v1727_v9 = vcombine.high %v1726_v44, %v3835_v29  ;;  %v1756_v50 = vshrl.u32 %v1726_v44, 16 }
 0x425   : > { %v1743_v46 = vrot.slane %v1736_v14, %v4151_v52  ;;  %v1762_v4 = vshrl.u32 %v1727_v9, 16 }
 0x427   : > { %v1744_v8 = vcombine.low %v1735_v57, %v1743_v46 }
 0x429   : > { %v1751_v48 = vrot.slane %v1744_v8, %v4164_v6 }
 0x42a   : > { %v4481_v17 = vpop.permute.xlu1 %1200 }
 0x42b   : > { %v1755_v56 = vpack.i.b16 %v1751_v48, %v1726_v44  ;;  %v1757_v49 = vshrl.u32 %v1751_v48, 16  ;;  %v1752_v15 = vcombine.high %v1751_v48, %v3835_v29 }
 0x42d   : > { %v1771_v21 = vsel %vm1769_vm3, %v1755_v56, 0  ;;  %v1758_v1 = vpack.i.b16 %v1757_v49, %v1756_v50  ;;  %v1761_v33 = vpack.i.b16 %v1752_v15, %v1727_v9  ;;  %v1763_v34 = vshrl.u32 %v1752_v15, 16 }
 0x42e   : > { %3409 = vmatpush3.bf16.msra.mxu1 %v1771_v21  ;;  %v1207_v36 = vpop.permute.xlu1 %1206 }
 0x42f   : > { %v1817_v3 = vsel %vm1769_vm3, %v1758_v1, 0  ;;  %3420 = vmatprep.subr.bf16.mxu1 %v3825_v5  ;;  %v1764_v58 = vpack.i.b16 %v1763_v34, %v1762_v4  ;;  %v1863_v23 = vsel %vm1769_vm3, %v1761_v33, 0  ;;  %v1226_v43 = vcombine.high %v4481_v17, %v1207_v36 }
 0x430   : > { %3415 = vmatpush3.bf16.msra.mxu0 %v1817_v3  ;;  %v1225_v47 = vcombine.low %v4481_v17, %v1207_v36 }
 0x431   : > { %3411 = vmatmul.mubr.msk.bf16.vlgmr.msra.gmra.mrb[8].mxu1 %vm1765_vm4, %v1337_v39  ;;  %3426 = vmatprep.subr.bf16.mxu0 %v3825_v5  ;;  %v1909_v11 = vsel %vm1769_vm3, %v1764_v58, 0  ;;  %v1240_v13 = vrot.slane %v1226_v43, %v4151_v52 }
 0x432   : > { %3421 = vmatpush3.bf16.msra.mxu1 %v1863_v23  ;;  %3422 = vmatprep.mubr.msk.bf16.mxu1 %vm3826_vm1, %v3825_v5  ;;  %v1233_v61 = vrot.slane %v1225_v47, %v4151_v52 }
 0x433   : > { %3417 = vmatmul.mubr.msk.bf16.vlgmr.msra.gmra.mrb[4].mxu0 %vm1765_vm4, %v1340_v30  ;;  %3432 = vmatprep.subr.bf16.mxu1 %v3825_v5 }
 0x434   : > { %3427 = vmatpush3.bf16.msra.mxu0 %v1909_v11  ;;  %3428 = vmatprep.mubr.msk.bf16.mxu0 %vm3826_vm1, %v3825_v5 }
 0x435   : > { %3438 = vmatprep.subr.bf16.mxu0 %v3825_v5 }
 0x437   : > { %v1204_v27 = vpop.permute.xlu0 %1203 }
 0x438   : > { %v1210_v10 = vcombine.high %v4132_v19, %v1204_v27  ;;  %v1209_v40 = vcombine.low %v4132_v19, %v1204_v27 }
 0x439   : > { %3423 = vmatmul.mubr.msk.bf16.vlgmr.msra.gmra.mrb[12].mxu1 %vm1765_vm4, %v1343_v53 }
 0x43a   : > { %v1224_v18 = vrot.slane %v1210_v10, %v4151_v52  ;;  %3434 = vmatprep.mubr.msk.bf16.mxu1 %vm3826_vm1, %v3825_v5  ;;  %v1217_v51 = vrot.slane %v1209_v40, %v4151_v52 }
 0x43b   : > { %3429 = vmatmul.mubr.msk.bf16.vlgmr.msra.gmra.mrb[8].mxu0 %vm1765_vm4, %v1346_v38 }
 0x43c   : > { %v1257_v16 = vcombine.low %v1224_v18, %v1240_v13  ;;  %v1258_v45 = vcombine.high %v1224_v18, %v1240_v13  ;;  %3440 = vmatprep.mubr.msk.bf16.mxu0 %vm3826_vm1, %v3825_v5  ;;  %v1241_v0 = vcombine.low %v1217_v51, %v1233_v61  ;;  %v1242_v8 = vcombine.high %v1217_v51, %v1233_v61 }
 0x43e   : > { %v1249_v26 = vrot.slane %v1241_v0, %v4164_v6  ;;  %v1256_v48 = vrot.slane %v1242_v8, %v4164_v6  ;;  %v1265_v56 = vrot.slane %v1257_v16, %v4164_v6  ;;  %v1272_v49 = vrot.slane %v1258_v45, %v4164_v6 }
 0x440   : > { %v1273_v42 = vcombine.high %v1249_v26, %v3825_v5  ;;  %v1277_v55 = vpack.c.bf16 %v1249_v26, %v1249_v26  ;;  %v1274_v9 = vcombine.high %v1256_v48, %v3825_v5  ;;  %v1275_v35 = vcombine.high %v1265_v56, %v3825_v5 }
 0x441   : > { %v1279_v15 = vpack.c.bf16 %v1256_v48, %v1256_v48  ;;  %v1276_v21 = vcombine.high %v1272_v49, %v3825_v5  ;;  %v1281_v1 = vpack.c.bf16 %v1265_v56, %v1265_v56  ;;  %v1283_v34 = vpack.c.bf16 %v1272_v49, %v1272_v49 }
 0x442   : > { %v1278_v14 = vpack.c.bf16 %v1273_v42, %v1273_v42  ;;  %v1280_v50 = vpack.c.bf16 %v1274_v9, %v1274_v9  ;;  %v1282_v17 = vpack.c.bf16 %v1275_v35, %v1275_v35 }
 0x443   : > { %v1284_v33 = vpack.c.bf16 %v1276_v21, %v1276_v21 }
 0x504   : > { %v1807_v2 = vpop.f32.mrb[8].mxu1 }
 0x505   : > { %v4511_v24 = vsel %vm1955_vm5, %v1807_v2, -1e+30  ;;  %v3412_v59 = vpop.f32.mrb[9].mxu1 }
 0x506   : > { %v1810_v37 = vpop.f32.mrb[10].mxu1  ;;  %v1853_v39 = vpop.f32.mrb[4].mxu0  ;;  %v1962_v7 = vsel %vm1765_vm4, %v4511_v24, -inf }
 0x507   : > { %v4517_v12 = vsel %vm1955_vm5, %v1853_v39, -1e+30  ;;  %v3418_v25 = vpop.f32.mrb[5].mxu0  ;;  %1963 = vmax.xlane.f32.xlu1 %v1962_v7  ;;  %v3413_v32 = vpop.f32.mrb[11].mxu1 }
 0x508   : > { %v1856_v30 = vpop.f32.mrb[6].mxu0  ;;  %v1965_v53 = vsel %vm1765_vm4, %v4517_v12, -inf }
 0x509   : > { %1966 = vmax.xlane.f32.xlu0 %v1965_v53  ;;  %v3419_v20 = vpop.f32.mrb[7].mxu0 }
 0x50c   : > { %v1899_v63 = vpop.f32.mrb[12].mxu1 }
 0x50d   : > { %v3424_v38 = vpop.f32.mrb[13].mxu1  ;;  %v4529_v57 = vsel %vm1955_vm5, %v1899_v63, -1e+30 }
 0x50e   : > { %v1902_v41 = vpop.f32.mrb[14].mxu1  ;;  %v1945_v54 = vpop.f32.mrb[8].mxu0  ;;  %v1968_v46 = vsel %vm1765_vm4, %v4529_v57, -inf }
 0x50f   : > { %v3425_v62 = vpop.f32.mrb[15].mxu1  ;;  %v3430_v28 = vpop.f32.mrb[9].mxu0  ;;  %v4533_v19 = vsel %vm1955_vm5, %v1945_v54, -1e+30 }
 0x510   : > { %v1948_v60 = vpop.f32.mrb[10].mxu0  ;;  %v1971_v44 = vsel %vm1765_vm4, %v4533_v19, -inf }
 0x511   : > { %v3431_v31 = vpop.f32.mrb[11].mxu0 }
 0x534   : > { %2010 = vxpose.xlu1.c.b16.start.end [1/1] (short) (narrow) %v1277_v55, 16 }
 0x536   : > { %2026 = vxpose.xlu0.c.b16.start.end [1/1] (short) (narrow) %v1278_v14, 16 }
 0x541   : > { %1969 = vmax.xlane.f32.xlu1 %v1968_v46 }
 0x543   : > { %1972 = vmax.xlane.f32.xlu0 %v1971_v44 }
 0x56e   : > { %2058 = vxpose.xlu1.c.b16.start.end [1/1] (short) (narrow) %v1280_v50, 16 }
 0x570   : > { %2042 = vxpose.xlu0.c.b16.start.end [1/1] (short) (narrow) %v1279_v15, 16 }
 0x572   : > { %2090 = vxpose.xlu1.c.b16.start.end [1/1] (short) (narrow) %v1282_v17, 16 }
 0x574   : > { %2074 = vxpose.xlu0.c.b16.start.end [1/1] (short) (narrow) %v1281_v1, 16 }
 0x576   : > { %2122 = vxpose.xlu1.c.b16.start.end [1/1] (short) (narrow) %v1284_v33, 16 }
 0x578   : > { %2106 = vxpose.xlu0.c.b16.start.end [1/1] (short) (narrow) %v1283_v34, 16 }
 0x594   : > { %v1964_v4 = vpop.xlane.xlu1 %1963 }
 0x595   : > { %v1974_v31 = vsub.f32 %v4511_v24, %v1964_v4 }
 0x596   : > { %v1967_v3 = vpop.xlane.xlu0 %1966 }
 0x597   : > { %v1975_v61 = vsub.f32 %v4517_v12, %v1967_v3  ;;  %v1978_v55 = vmul.f32 1.442695, %v1974_v31 }
 0x599   : > { %v1980_v8 = vmul.f32 1.442695, %v1975_v61  ;;  %3608 = vpow2.f32 %v1978_v55 }
 0x59a   : > { %v2018_v58 = vpop.trf.xlu1 }
 0x59b   : > { %3610 = vpow2.f32 %v1980_v8 }
 0x59c   : > { %v2034_v23 = vpop.trf.xlu0 }
 0x5a3   : > { %v3609_v35 = vpop.eup %3608 }
 0x5a4   : > { %v1986_v49 = vsel %vm1765_vm4, %v3609_v35, 0.0 }
 0x5ce   : > { %v1970_v36 = vpop.xlane.xlu1 %1969 }
 0x5cf   : > { %v1976_v14 = vsub.f32 %v4529_v57, %v1970_v36  ;;  %v3611_v57 = vpop.eup %3610 }
 0x5d0   : > { %v1973_v11 = vpop.xlane.xlu0 %1972 }
 0x5d1   : > { %v1977_v24 = vsub.f32 %v4533_v19, %v1973_v11  ;;  %v1982_v56 = vmul.f32 1.442695, %v1976_v14  ;;  %v1989_v19 = vsel %vm1765_vm4, %v3611_v57, 0.0 }
 0x5d3   : > { %v1984_v50 = vmul.f32 1.442695, %v1977_v24  ;;  %3612 = vpow2.f32 %v1982_v56 }
 0x5d4   : > { %v2066_v43 = vpop.trf.xlu1 }
 0x5d5   : > { %3614 = vpow2.f32 %v1984_v50 }
 0x5d6   : > { %v2050_v27 = vpop.trf.xlu0 }
 0x5d8   : > { %v2098_v10 = vpop.trf.xlu1 }
 0x5d9   : > { %v2172_v18 = vcombine.low %v2034_v23, %v2098_v10 }
 0x5da   : > { %v2082_v13 = vpop.trf.xlu0 }
 0x5db   : > { %v2138_v45 = vcombine.low %v2018_v58, %v2082_v13  ;;  %v2179_v59 = vrot.slane %v2172_v18, %v4151_v52 }
 0x5dc   : > { %v2130_v16 = vpop.trf.xlu1 }
 0x5dd   : > { %v2180_v22 = vcombine.low %v2066_v43, %v2130_v16  ;;  %v2145_v7 = vrot.slane %v2138_v45, %v4151_v52  ;;  %v3613_v15 = vpop.eup %3612 }
 0x5de   : > { %v2114_v2 = vpop.trf.xlu0  ;;  %v1992_v21 = vsel %vm1765_vm4, %v3613_v15, 0.0 }
 0x5df   : > { %v2187_v37 = vrot.slane %v2180_v22, %v4151_v52  ;;  %v2146_v39 = vcombine.low %v2050_v27, %v2114_v2  ;;  %v3615_v17 = vpop.eup %3614 }
 0x5e0   : > { %v1995_v1 = vsel %vm1765_vm4, %v3615_v17, 0.0 }
 0x5e1   : > { %v2188_v25 = vcombine.low %v2179_v59, %v2187_v37  ;;  %v2153_v32 = vrot.slane %v2146_v39, %v4151_v52  ;;  %v2189_v38 = vcombine.high %v2179_v59, %v2187_v37 }
 0x5e3   : > { %v2154_v30 = vcombine.low %v2145_v7, %v2153_v32  ;;  %v2196_v53 = vrot.slane %v2188_v25, %v4164_v6  ;;  %v2155_v20 = vcombine.high %v2145_v7, %v2153_v32  ;;  %v2203_v42 = vrot.slane %v2189_v38, %v4164_v6 }
 0x5e5   : > { %v2162_v63 = vrot.slane %v2154_v30, %v4164_v6  ;;  %v2211_v41 = vshrl.u32 %v2196_v53, 16  ;;  %v2204_v60 = vcombine.high %v2196_v53, %v3835_v29  ;;  %v2169_v51 = vrot.slane %v2155_v20, %v4164_v6 }
 0x5e6   : > { %v2227_v9 = vshrl.u32 %v2203_v42, 16  ;;  %v2205_v34 = vcombine.high %v2203_v42, %v3835_v29 }
 0x5e7   : > { %v2208_v54 = vpack.i.b16 %v2196_v53, %v2162_v63  ;;  %v2210_v62 = vshrl.u32 %v2162_v63, 16  ;;  %v2170_v28 = vcombine.high %v2162_v63, %v3835_v29  ;;  %v2219_v26 = vshrl.u32 %v2204_v60, 16 }
 0x5e8   : > { %v2226_v44 = vshrl.u32 %v2169_v51, 16  ;;  %v2224_v48 = vpack.i.b16 %v2203_v42, %v2169_v51  ;;  %v2171_v33 = vcombine.high %v2169_v51, %v3835_v29  ;;  %v2235_v58 = vshrl.u32 %v2205_v34, 16 }
 0x5e9   : > { %2238 = vxpose.xlu0.c.b16.start.end [1/1] (short) (narrow) %v2208_v54, 16  ;;  %v2212_v40 = vpack.i.b16 %v2211_v41, %v2210_v62  ;;  %v2218_v47 = vshrl.u32 %v2170_v28, 16  ;;  %v2216_v0 = vpack.i.b16 %v2204_v60, %v2170_v28 }
 0x5ea   : > { %v2228_v12 = vpack.i.b16 %v2227_v9, %v2226_v44  ;;  %v2234_v4 = vshrl.u32 %v2171_v33, 16  ;;  %v2232_v3 = vpack.i.b16 %v2205_v34, %v2171_v33 }
 0x5eb   : > { %2254 = vxpose.xlu1.c.b16.start.end [1/1] (short) (narrow) %v2212_v40, 16  ;;  %v2220_v46 = vpack.i.b16 %v2219_v26, %v2218_v47 }
 0x5ec   : > { %v2236_v23 = vpack.i.b16 %v2235_v58, %v2234_v4 }
 0x5ed   : > { %2270 = vxpose.xlu0.c.b16.start.end [1/1] (short) (narrow) %v2216_v0, 16 }
 0x5ef   : > { %2286 = vxpose.xlu1.c.b16.start.end [1/1] (short) (narrow) %v2220_v46, 16 }
 0x5f1   : > { %2302 = vxpose.xlu0.c.b16.start.end [1/1] (short) (narrow) %v2224_v48, 16 }
 0x5f3   : > { %2318 = vxpose.xlu1.c.b16.start.end [1/1] (short) (narrow) %v2228_v12, 16 }
 0x5fe   : > { %1987 = vadd.xlane.f32.xlu0 %v1986_v49 }
 0x600   : > { %1990 = vadd.xlane.f32.xlu1 %v1989_v19 }
 0x602   : > { %1993 = vadd.xlane.f32.xlu0 %v1992_v21 }
 0x604   : > { %1996 = vadd.xlane.f32.xlu1 %v1995_v1 }
 0x62f   : > { %2334 = vxpose.xlu0.c.b16.start.end [1/1] (short) (narrow) %v2232_v3, 16 }
 0x631   : > { %2350 = vxpose.xlu1.c.b16.start.end [1/1] (short) (narrow) %v2236_v23, 16 }
 0x64f   : > { %v2246_v36 = vpop.trf.xlu0 }
 0x651   : > { %v2262_v11 = vpop.trf.xlu1 }
 0x653   : > { %v2278_v43 = vpop.trf.xlu0 }
 0x655   : > { %v2294_v27 = vpop.trf.xlu1 }
 0x657   : > { %v2310_v10 = vpop.trf.xlu0 }
 0x658   : > { %v2366_v2 = vcombine.low %v2246_v36, %v2310_v10 }
 0x659   : > { %v2326_v13 = vpop.trf.xlu1 }
 0x65a   : > { %v2391_v39 = vcombine.low %v2262_v11, %v2326_v13  ;;  %v2373_v53 = vrot.slane %v2366_v2, %v4151_v52 }
 0x65c   : > { %v2398_v62 = vrot.slane %v2391_v39, %v4151_v52 }
 0x68b   : > { %v1988_v18 = vpop.xlane.xlu0 %1987 }
 0x68c   : > { %3616 = vrcp.f32 %v1988_v18 }
 0x68d   : > { %v1991_v16 = vpop.xlane.xlu1 %1990 }
 0x68e   : > { %3618 = vrcp.f32 %v1991_v16 }
 0x68f   : > { %v1994_v45 = vpop.xlane.xlu0 %1993 }
 0x690   : > { %3620 = vrcp.f32 %v1994_v45 }
 0x691   : > { %v1997_v22 = vpop.xlane.xlu1 %1996 }
 0x692   : > { %3622 = vrcp.f32 %v1997_v22 }
 0x695   : > { %v2342_v59 = vpop.trf.xlu0 }
 0x696   : > { %v3617_v37 = vpop.eup %3616  ;;  %v2374_v7 = vcombine.low %v2278_v43, %v2342_v59 }
 0x697   : > { %v2358_v25 = vpop.trf.xlu1  ;;  %v2002_v32 = vmul.f32 %v3617_v37, %v3609_v35 }
 0x698   : > { %v3619_v30 = vpop.eup %3618  ;;  %v2381_v20 = vrot.slane %v2374_v7, %v4151_v52  ;;  %v2399_v63 = vcombine.low %v2294_v27, %v2358_v25 }
 0x699   : > { %v2006_v38 = vpack.c.bf16 %v2002_v32, %v2002_v32  ;;  %v2003_v41 = vmul.f32 %v3619_v30, %v3611_v57 }
 0x69a   : > { %v3621_v54 = vpop.eup %3620  ;;  %v2382_v28 = vcombine.low %v2373_v53, %v2381_v20  ;;  %v2406_v60 = vrot.slane %v2399_v63, %v4151_v52 }
 0x69b   : > { %v2432_v31 = vsel %vm1765_vm4, %v2006_v38, 0  ;;  %v2007_v40 = vpack.c.bf16 %v2003_v41, %v2003_v41  ;;  %v2004_v47 = vmul.f32 %v3621_v54, %v3613_v15  ;;  %v3596_v38 = vld [vmem:[#allocation5] sm:$0xff]  }
 0x69c   : > { %v3623_v51 = vpop.eup %3622  ;;  %v2389_v61 = vrot.slane %v2382_v28, %v4164_v6  ;;  %v2407_v0 = vcombine.low %v2398_v62, %v2406_v60  ;;  %3433 = vmatpush3.bf16.xpose.msra.mxu1 %v2432_v31 }
 0x69d   : > { %v2478_v26 = vsel %vm1765_vm4, %v2007_v40, 0  ;;  %3444 = vmatprep.subr.bf16.mxu1 %v3825_v5  ;;  %v2005_v42 = vmul.f32 %v3623_v51, %v3615_v17  ;;  %v2008_v14 = vpack.c.bf16 %v2004_v47, %v2004_v47  ;;  %v3597_v51 = vld [vmem:[#allocation5 + $0x8] sm:$0xff]  }
 0x69e   : > { %v2414_v55 = vrot.slane %v2407_v0, %v4164_v6  ;;  %3439 = vmatpush3.bf16.xpose.msra.mxu0 %v2478_v26  ;;  %v2419_v46 = vshrl.u32 %v2389_v61, 16  ;;  %v2390_v12 = vcombine.high %v2389_v61, %v3835_v29 }
 0x69f   : > { %3450 = vmatprep.subr.bf16.mxu0 %v3825_v5  ;;  %v2009_v24 = vpack.c.bf16 %v2005_v42, %v2005_v42  ;;  %v2524_v56 = vsel %vm1765_vm4, %v2008_v14, 0 }
 0x6a0   : > { %v2418_v44 = vpack.i.b16 %v2414_v55, %v2389_v61  ;;  %v2420_v8 = vshrl.u32 %v2414_v55, 16  ;;  %v2415_v9 = vcombine.high %v2414_v55, %v3835_v29  ;;  %v2425_v57 = vshrl.u32 %v2390_v12, 16 }
 0x6a1   : > { %v2570_v50 = vsel %vm1765_vm4, %v2009_v24, 0 }
 0x6a2   : > { %v2421_v48 = vpack.i.b16 %v2420_v8, %v2419_v46  ;;  %v2426_v35 = vshrl.u32 %v2415_v9, 16  ;;  %v2424_v49 = vpack.i.b16 %v2415_v9, %v2390_v12 }
 0x6a3   : > { %3435 = vmatmul.mubr.msk.bf16.vlgmr.msra.gmra.mrb[16].mxu1 %vm1765_vm4, %v2418_v44 }
 0x6a4   : > { %3445 = vmatpush3.bf16.xpose.msra.mxu1 %v2524_v56  ;;  %3446 = vmatprep.mubr.msk.bf16.mxu1 %vm3826_vm1, %v3825_v5  ;;  %v2427_v15 = vpack.i.b16 %v2426_v35, %v2425_v57 }
 0x6a5   : > { %3441 = vmatmul.mubr.msk.bf16.vlgmr.msra.gmra.mrb[12].mxu0 %vm1765_vm4, %v2421_v48  ;;  %3456 = vmatprep.subr.bf16.mxu1 %v3825_v5 }
 0x6a6   : > { %3451 = vmatpush3.bf16.xpose.msra.mxu0 %v2570_v50  ;;  %3452 = vmatprep.mubr.msk.bf16.mxu0 %vm3826_vm1, %v3825_v5 }
 0x6a7   : > { %3464 = vmatprep.subr.bf16.mxu0 %v3825_v5 }
 0x6ab   : > { %3447 = vmatmul.mubr.msk.bf16.vlgmr.msra.gmra.mrb[20].mxu1 %vm1765_vm4, %v2424_v49 }
 0x6ac   : > { %3460 = vmatprep.mubr.msk.bf16.mxu1 %vm3826_vm1, %v3825_v5  ;;  %3457 = vmatpush3.bf16.msra.mxu1 %v3596_v38 }
 0x6ad   : > { %3453 = vmatmul.mubr.msk.bf16.vlgmr.msra.gmra.mrb[16].mxu0 %vm1765_vm4, %v2427_v15  ;;  %3458 = vmatprep.subr.bf16.mxu1 %v3825_v5 }
 0x6ae   : > { %3468 = vmatprep.mubr.msk.bf16.mxu0 %vm3826_vm1, %v3825_v5 }
 0x6b0   : > { %3459 = vmatpush3.bf16.msra.mxu1 %v3597_v51 }
 0x6b1   : > { %3472 = vmatprep.subr.bf16.mxu1 %v3825_v5 }
 0x776   : > { %v2468_v29 = vpop.f32.mrb[16].mxu1 }
 0x777   : > { %2612 = vxpose.xlu0.b32.start.end [1/1] (short) (narrow) %v2468_v29, 8  ;;  %v3436_v19 = vpop.f32.mrb[17].mxu1 }
 0x778   : > { %v2471_v17 = vpop.f32.mrb[18].mxu1  ;;  %v2514_v21 = vpop.f32.mrb[12].mxu0 }
 0x779   : > { %2644 = vxpose.xlu1.b32.start.end [1/1] (short) (narrow) %v2514_v21, 8  ;;  %v3437_v1 = vpop.f32.mrb[19].mxu1  ;;  %v3442_v33 = vpop.f32.mrb[13].mxu0  ;;  %v3630_v21 = vld [vmem:[%s4092_s23] sm:$0xff] }
 0x77a   : > { %v2517_v34 = vpop.f32.mrb[14].mxu0 }
 0x77b   : > { %v3443_v4 = vpop.f32.mrb[15].mxu0 }
 0x77e   : > { %v2560_v3 = vpop.f32.mrb[20].mxu1 }
 0x77f   : > { %2676 = vxpose.xlu0.b32.start.end [1/1] (short) (narrow) %v2560_v3, 8  ;;  %v3448_v58 = vpop.f32.mrb[21].mxu1 }
 0x780   : > { %v2563_v23 = vpop.f32.mrb[22].mxu1  ;;  %v2606_v36 = vpop.f32.mrb[16].mxu0 }
 0x781   : > { %v3449_v11 = vpop.f32.mrb[23].mxu1  ;;  %v3454_v43 = vpop.f32.mrb[17].mxu0  ;;  %v3598_v23 = vld [vmem:[#allocation7] sm:$0xff]  }
 0x782   : > { %v2609_v27 = vpop.f32.mrb[18].mxu0  ;;  %3465 = vmatpush3.bf16.msra.mxu0 %v3598_v23  ;;  %v3600_v11 = vld [vmem:[#allocation7 + $0x8] sm:$0xff]   ;;  %v3601_v43 = vld [vmem:[#allocation8 + $0x8] sm:$0xff]  }
 0x783   : > { %v3455_v10 = vpop.f32.mrb[19].mxu0  ;;  %2708 = vxpose.xlu0.b32.start.end [1/1] (short) (narrow) %v2606_v36, 8  ;;  %v3599_v36 = vld [vmem:[#allocation8] sm:$0xff]   ;;  %3466 = vmatprep.subr.bf16.mxu0 %v3825_v5 }
 0x786   : > { %3467 = vmatpush3.bf16.msra.mxu0 %v3600_v11 }
 0x787   : > { %3480 = vmatprep.subr.bf16.mxu0 %v3825_v5 }
 0x7f7   : > { %v2628_v13 = vpop.trf.xlu0 }
 0x7f9   : > { %v2660_v16 = vpop.trf.xlu1 }
 0x7ff   : > { %v2692_v18 = vpop.trf.xlu0 }
 0x800   : > { %v2740_v45 = vcombine.low %v2628_v13, %v2692_v18  ;;  %v2741_v22 = vcombine.high %v2628_v13, %v2692_v18 }
 0x802   : > { %v2748_v39 = vrot.slane %v2740_v45, %v4151_v52  ;;  %v2755_v7 = vrot.slane %v2741_v22, %v4151_v52 }
 0x803   : > { %v2724_v2 = vpop.trf.xlu0 }
 0x804   : > { %v2756_v59 = vcombine.low %v2660_v16, %v2724_v2  ;;  %v2757_v37 = vcombine.high %v2660_v16, %v2724_v2  ;;  %v3328_v16 = vld [vmem:[%s4705_s9] ss:$0 sm:$0xff] }
 0x806   : > { %v2764_v25 = vrot.slane %v2756_v59, %v4151_v52  ;;  %v2771_v32 = vrot.slane %v2757_v37, %v4151_v52  ;;  %v3602_v59 = vld [vmem:[%s4703_s7] sm:$0xff]   ;;  %v3603_v37 = vld [vmem:[%s4703_s7 + $0x8] sm:$0xff]  }
 0x808   : > { %v2772_v30 = vcombine.low %v2748_v39, %v2764_v25  ;;  %v2773_v53 = vcombine.high %v2748_v39, %v2764_v25  ;;  %v2788_v20 = vcombine.low %v2755_v7, %v2771_v32  ;;  %v2789_v63 = vcombine.high %v2755_v7, %v2771_v32  ;;  %v3604_v39 = vld [vmem:[%s4703_s7 + $0x10] sm:$0xff]   ;;  %v3605_v7 = vld [vmem:[%s4703_s7 + $0x18] sm:$0xff]  }
 0x80a   : > { %v2780_v41 = vrot.slane %v2772_v30, %v4164_v6  ;;  %v2787_v54 = vrot.slane %v2773_v53, %v4164_v6  ;;  %v2796_v62 = vrot.slane %v2788_v20, %v4164_v6  ;;  %v2803_v28 = vrot.slane %v2789_v63, %v4164_v6 }
 0x80c   : > { %v2808_v60 = vcombine.low %v2780_v41, %v2787_v54  ;;  %v3323_v31 = vcombine.high %v2780_v41, %v2787_v54  ;;  %v2824_v40 = vcombine.low %v2796_v62, %v2803_v28  ;;  %v3324_v47 = vcombine.high %v2796_v62, %v2803_v28 }
 0x80e   : > { %v2815_v61 = vrot.slane %v2808_v60, %v4151_v52  ;;  %v2823_v0 = vrot.slane %v3323_v31, %v4151_v52  ;;  %v2831_v26 = vrot.slane %v2824_v40, %v4151_v52  ;;  %v2839_v42 = vrot.slane %v3324_v47, %v4151_v52 }
 0x810   : > { %v2841_v55 = vcombine.high %v2815_v61, %v2823_v0  ;;  %v2857_v14 = vcombine.high %v2831_v26, %v2839_v42  ;;  %v2840_v46 = vcombine.low %v2815_v61, %v2823_v0  ;;  %v2856_v44 = vcombine.low %v2831_v26, %v2839_v42 }
 0x812   : > { %v2855_v8 = vrot.slane %v2841_v55, %v4164_v6  ;;  %v2871_v24 = vrot.slane %v2857_v14, %v4164_v6  ;;  %v2848_v48 = vrot.slane %v2840_v46, %v4164_v6  ;;  %v2864_v9 = vrot.slane %v2856_v44, %v4164_v6 }
 0x814   : > { %v2874_v56 = vcombine.low %v2855_v8, %v2871_v24  ;;  %v2873_v12 = vcombine.high %v2848_v48, %v2864_v9  ;;  %v2872_v50 = vcombine.low %v2848_v48, %v2864_v9  ;;  %v2875_v52 = vcombine.high %v2855_v8, %v2871_v24 }
 0x816   : > { %2881 = vrot.lane.b32.xlu1 %v2874_v56, %s3836_s29  ;;  %2877 = vrot.lane.b32.xlu0 %v2873_v12, %s3837_s16  ;;  %s463_s29 = scalar_lea.vmem [#allocation10], %s3299_s24 }
 0x817   : > { %s3187_s16 = sshll.u32 %s463_s29, 4  ;;  %s4655_s16 = int_to_ptr.vmem [resolvable:$true] %s3187_s16 }
 0x818   : > { %s3743_s17 = scalar_lea.vmem %s4655_s16, 128  ;;  %p3750_p6 = scmp.lt.s32.totalorder %s4655_s16, %s3748_s20 }
 0x819   : > { %p3744_p8 = scmp.ne.s32.totalorder %s4655_s16, %s3743_s17  ;;  %p3751_p9 = scmp.lt.s32.totalorder %s3749_s12, %s3743_s17 }
 0x81a   : > { %2885 = vrot.lane.b32.xlu1 %v2875_v52, %s3838_s19 }
 0x81b   : > { %p3745_p13 = pnand %p3744_p8, %p4743_p11  ;;  %p3752_p5 = por %p3751_p9, %p3750_p6 }
 0x81d   : > { %p3746_p1 = pneg %p3745_p13 }
 0x81f   : > { %p3753_p0 = pnand %p3752_p5, %p3746_p1 }
 0x888   : > { %v2882_v35 = vpop.permute.xlu1 %2881  ;;  %v2878_v57 = vpop.permute.xlu0 %2877 }
 0x889   : > { %v2888_v49 = vsel %vm1765_vm4, %v2872_v50, %v2878_v57 }
 0x88a   : > { %v2890_v29 = vsel %vm2889_vm6, %v2888_v49, %v2882_v35 }
 0x88c   : > { %v2886_v15 = vpop.permute.xlu1 %2885 }
 0x88d   : > { %v2892_v6 = vsel %vm2891_vm7, %v2890_v29, %v2886_v15 }
 0x88e   : > { %v2893_v19 = vpack.c.bf16 %v2892_v6, %v2892_v6 }
 0x890   : > { %3461 = vmatmul.mubr.msk.bf16.vlgmr.msra.gmra.mrb[24].mxu1 %vm474_vm0, %v2893_v19 }
 0x891   : > { %3476 = vmatprep.mubr.msk.bf16.mxu1 %vm3826_vm1, %v3825_v5  ;;  %3473 = vmatpush3.bf16.msra.mxu1 %v3599_v36 }
 0x892   : > { %3474 = vmatprep.subr.bf16.mxu1 %v3825_v5 }
 0x895   : > { %3475 = vmatpush3.bf16.msra.mxu1 %v3601_v43 }
 0x963   : > { %v2947_v17 = vpop.f32.mrb[24].mxu1 }
 0x964   : > { %v4616_v1 = vadd.f32 %v3630_v21, %v2947_v17  ;;  %v3462_v33 = vpop.f32.mrb[25].mxu1 }
 0x965   : > { %v2950_v34 = vpop.f32.mrb[26].mxu1 }
 0x966   : > { %v3463_v4 = vpop.f32.mrb[27].mxu1  ;;  %v2955_v3 = vmul.f32 %v4616_v1, %v4616_v1 }
 0x968   : > { %v2956_v58 = vsel %vm474_vm0, %v2955_v3, 0.0 }
 0x969   : > { %2957 = vadd.xlane.f32.xlu1 %v2956_v58 }
 0x9f6   : > { %v2958_v27 = vpop.xlane.xlu1 %2957 }
 0x9f7   : > { %v2959_v10 = vmul.f32 0.03125, %v2958_v27 }
 0x9f9   : > { %v2960_v13 = vadd.f32 1e-05, %v2959_v10 }
 0x9fb   : > { %3624 = vrsqrt.f32 %v2960_v13 }
 0xa05   : > { %v3625_v18 = vpop.eup %3624 }
 0xa06   : > { %v2962_v45 = vmul.f32 %v3625_v18, %v4616_v1 }
 0xa08   : > { %v2969_v22 = vmul.f32 %v3328_v16, %v2962_v45 }
 0xa0a   : > { %v2970_v2 = vpack.c.bf16 %v2969_v22, %v2969_v22 }
 0xa0c   : > { %3469 = vmatmul.mubr.msk.bf16.vlgmr.msra.gmra.mrb[20].mxu0 %vm474_vm0, %v2970_v2  ;;  %3477 = vmatmul.mubr.msk.bf16.vlgmr.msra.gmra.mrb[28].mxu1 %vm474_vm0, %v2970_v2 }
 0xa0d   : > { %3488 = vmatprep.mubr.msk.bf16.mxu0 %vm3826_vm1, %v3825_v5  ;;  %3481 = vmatpush3.bf16.msra.mxu0 %v3602_v59 }
 0xa0e   : > { %3482 = vmatprep.subr.bf16.mxu0 %v3825_v5 }
 0xa11   : > { %3483 = vmatpush3.bf16.msra.mxu0 %v3603_v37 }
 0xa12   : > { %3484 = vmatprep.subr.bf16.mxu0 %v3825_v5 }
 0xa15   : > { %3485 = vmatpush3.bf16.msra.mxu0 %v3604_v39 }
 0xa16   : > { %3486 = vmatprep.subr.bf16.mxu0 %v3825_v5 }
 0xa19   : > { %3487 = vmatpush3.bf16.msra.mxu0 %v3605_v7 }
 0xadf   : > { %v3024_v25 = vpop.f32.mrb[20].mxu0  ;;  %v3080_v32 = vpop.f32.mrb[28].mxu1 }
 0xae0   : > { %v3335_v30 = vmul.f32 -1.442695, %v3024_v25  ;;  %v3470_v53 = vpop.f32.mrb[21].mxu0  ;;  %v3478_v20 = vpop.f32.mrb[29].mxu1 }
 0xae1   : > { %v3027_v63 = vpop.f32.mrb[22].mxu0  ;;  %v3083_v38 = vpop.f32.mrb[30].mxu1 }
 0xae2   : > { %3626 = vpow2.f32 %v3335_v30  ;;  %v3471_v41 = vpop.f32.mrb[23].mxu0  ;;  %v3479_v54 = vpop.f32.mrb[31].mxu1 }
 0xaec   : > { %v3627_v62 = vpop.eup %3626 }
 0xaed   : > { %v3089_v28 = vadd.f32 1.0, %v3627_v62 }
 0xaef   : > { %3628 = vrcp.f32 %v3089_v28 }
 0xaf9   : > { %v3629_v5 = vpop.eup %3628 }
 0xafa   : > { %v3092_v60 = vmul.f32 %v3629_v5, %v3024_v25 }
 0xafc   : > { %v3093_v31 = vmul.f32 %v3092_v60, %v3080_v32 }
 0xafe   : > { %v3094_v40 = vpack.c.bf16 %v3093_v31, %v3093_v31 }
 0xb00   : > { %3489 = vmatmul.mubr.msk.bf16.vlgmr.msra.gmra.mrb[24].mxu0 %vm3127_vm8, %v3094_v40 }
 0xbd3   : > { %v3165_v47 = vpop.f32.mrb[24].mxu0 }
 0xbd4   : > { %v3171_v51 = vadd.f32 %v3165_v47, %v4616_v1  ;;  %v3490_v61 = vpop.f32.mrb[25].mxu0 }
 0xbd5   : > { %v3168_v0 = vpop.f32.mrb[26].mxu0 }
 0xbd6   : > { %v3491_v26 = vpop.f32.mrb[27].mxu0  ;;  %3172 = vst.msk [vmem:[%s463_s29] sm:$0xff] %vm474_vm0, %v3171_v51 }
 0xbd7   : > { %3756 = shalt.err (!%p3753_p0)
}
 0xbd8   : > { %s3757_s14 = scalar_lea.hbm %s4653_s27, 128  ;;  %s3761_s30 = scalar_lea.hbm %s4742_s26, 256 }
 0xbd9   : > { %p3758_p10 = scmp.ne.s32.totalorder %s4653_s27, %s3757_s14  ;;  %p3762_p4 = scmp.lt.u32.totalorder %s4653_s27, %s4742_s26 }
 0xbda   : > { %p3763_p12 = scmp.lt.u32.totalorder %s3761_s30, %s3757_s14  ;;  %p3765_p8 = scmp.lt.u32.totalorder %s3757_s14, %s4653_s27 }
 0xbdb   : > { %p3759_p2 = pnand %p3758_p10, %p4743_p11 }
 0xbdc   : > { %p3764_p7 = por %p3763_p12, %p3762_p4 }
 0xbdd   : > { %p3760_p3 = pneg %p3759_p2 }
 0xbde   : > { %p3766_p13 = por %p3765_p8, %p3764_p7 }
 0xbe0   : > { %p3767_p1 = pnand %p3766_p13, %p3760_p3 }
 0xbe2   : > { %3770 = shalt.err (!%p3767_p1)
}
 0xbe3   : > { %3508 = dma.vmem_to_hbm [thread:$0]  (%p4743_p11), %s4655_s16, 128, %s4653_s27, %s3174_s25  }
 0xbe4 PF: > { %s4744_s29 = sld [smem:[#allocation17_spill]]  ;;  %s4745_s19 = sld [smem:[#allocation15_spill]] }
 0xbe5   : > { %s4746_s23 = sld [smem:[#allocation21_spill]] }
 0xbea   : > { %p3535_p6 = scmp.ge.s32.totalorder %s4744_s29, 2  ;;  %s3199_s17 = sand.u32 1, %s4745_s19  }
 0xbeb   : > { %p4747_p9 = scmp.ne.s32.totalorder %s4746_s23, 0  ;;  %s3200_s28 = scalar_lea.sflag [#allocation4], %s3199_s17 }
 0xbed   : > { %p3524_p5 = pnand %p3535_p6, %p4747_p9 }
 0xbef   : > { %3800 = dma.done.wait (!%p3524_p5), %s3200_s28, 128  }
 0xbf0   : > { %3802 = vsyncadd (!%p3524_p5), %s3200_s28, 4294967168  ;;  %s4748_s24 = sld [smem:[#allocation18_spill]]  ;;  %s4749_s20 = sld [smem:[#allocation16_spill]] }
 0xbf1   : > { %s4750_s23 = sld [smem:[#allocation19_spill]]  ;;  %s4751_s21 = smov %s3809_s22 }
 0xbf6   : > { %p25_p0 = scmp.ge.s32.totalorder %s4748_s24, 4   ;;  %s4752_s22 = smov %s4749_s20 }
 0xbf8   :  { %27 = sbr.rel (!%p25_p0) target bundleno = 8 (0x8), region = 120 }
 0xbff   :  { %3205 = vsyncpa [#allocation3], 1 }
 0xc00   :  { %3207 = vsyncpa [#allocation3 + $0x1], 1 }
 0xc01   :  { %3208 = vsyncpa [#allocation6], 1 }
 0xc02   :  { %3209 = vsyncpa [#allocation9], 1 }
 0xc03   :  { %3210 = vsyncpa [#allocation4], 1 }
 0xc04   :  { %3212 = vsyncpa [#allocation4 + $0x1], 1 }

</bundles_post_ra>
